<compile_context>
chip_gen: v5e
topology: v5e:2x2
jax: 0.10.0
libtpu: 0.0.40
codegen_flags: <defaults>
</compile_context>

<pallas_src>
import functools

import jax
import jax.numpy as jnp
from jax.experimental import pallas as pl
from jax.experimental.pallas import tpu as pltpu


def _segment_mm_kernel(range_a_ref, range_b_ref,   # scalar-prefetch (SMEM)
                       seg_a_ref, seg_b_ref,       # (tm,1), (1,tn) segment ids
                       a_ref, bT_ref,              # (tm,tk), (tk,tn)
                       o_ref,                      # (tm,tn)
                       acc_ref):                   # (tm,tn) f32 scratch
    i = pl.program_id(0)
    j = pl.program_id(1)
    k = pl.program_id(2)
    nk = pl.num_programs(2)

    # Per-tile segment id ranges (valid bounds whether or not ids are sorted).
    a_min = range_a_ref[i, 0]
    a_max = range_a_ref[i, 1]
    b_min = range_b_ref[j, 0]
    b_max = range_b_ref[j, 1]
    overlap = jnp.logical_and(a_min <= b_max, b_min <= a_max)

    @pl.when(jnp.logical_and(overlap, k == 0))
    def _init():
        acc_ref[...] = jnp.zeros_like(acc_ref)

    @pl.when(overlap)
    def _accumulate():
        # MXU-native (tm,tk) x (tk,tn) -> (tm,tn), f32 accumulation.
        acc_ref[...] += jnp.dot(a_ref[...], bT_ref[...],
                                preferred_element_type=jnp.float32)

    @pl.when(k == nk - 1)
    def _finalize():
        # Fast path: whole tile lies inside a single segment -> no mask needed.
        interior = jnp.logical_and(
            a_min == a_max,
            jnp.logical_and(b_min == b_max, a_min == b_min))

        @pl.when(jnp.logical_and(overlap, interior))
        def _():
            o_ref[...] = acc_ref[...].astype(o_ref.dtype)

        @pl.when(jnp.logical_and(overlap, jnp.logical_not(interior)))
        def _():
            mask = seg_a_ref[...] == seg_b_ref[...]   # (tm,1)==(1,tn) -> (tm,tn)
            o_ref[...] = jnp.where(mask, acc_ref[...], 0.0).astype(o_ref.dtype)

        @pl.when(jnp.logical_not(overlap))
        def _():
            # Entirely off the block diagonal: pure zeros, matmul was skipped.
            o_ref[...] = jnp.zeros_like(o_ref)


def _tile_ranges(seg, tile):
    """Per-tile [min, max] segment id, shape (n_tiles, 2) int32."""
    n = seg.shape[0]
    r = seg.reshape(n // tile, tile)
    return jnp.stack([r.min(axis=1), r.max(axis=1)], axis=1).astype(jnp.int32)


def _pad_up(x, m):
    return ((x + m - 1) // m) * m


def _vmem_budget_bytes(tm, tn, tk, out_bytes):
    """Double-buffered, (8,128)-padded tile footprint + accumulator, with headroom."""
    def tile(r, c, b):
        return _pad_up(r, 8) * _pad_up(c, 128) * b
    need = (2 * tile(tm, tk, 4)          # A tiles
            + 2 * tile(tk, tn, 4)        # B^T tiles
            + 2 * tile(tm, tn, out_bytes)  # output tiles
            + 2 * tile(tm, 1, 4)         # A segment ids
            + 2 * tile(1, tn, 4)         # B segment ids
            + tile(tm, tn, 4))           # accumulator scratch
    # 2x headroom for compiler internals; floor 32 MiB, cap 48 MiB (v7x has 64 MiB).
    return min(48 * 1024 * 1024, max(2 * need + (4 << 20), 32 * 1024 * 1024))


def segment_mm(mat_A, mat_B, segment_id_A, segment_id_B, *,
               tm=256, tn=512, max_tk=2048, out_dtype=jnp.float32):
    """Dense segment-restricted matmul: C = (A @ B^T) masked to matching segments."""
    N, K = mat_A.shape
    M, Kb = mat_B.shape
    assert K == Kb, "inner dims must match"

    tm = min(tm, N)
    tn = min(tn, M)
    assert N % tm == 0 and M % tn == 0, "N, M must be multiples of the tile sizes"

    # K split (last grid axis, 'arbitrary') keeps per-step tiles small on v7x.
    tk = K if K <= max_tk else max_tk
    assert K % tk == 0, "K must be a multiple of the K tile"
    if tk != K:
        assert tk % 128 == 0, "partial K tiles must be lane-aligned (multiple of 128)"

    # Lane-dense RHS: present B as (K, M) so the kernel tile is (tk, tn).
    mat_BT = jnp.transpose(mat_B)

    seg_a_col = segment_id_A.astype(jnp.int32).reshape(N, 1)
    seg_b_row = segment_id_B.astype(jnp.int32).reshape(1, M)

    # Per-tile segment ranges, scalar-prefetched into SMEM for tile skipping.
    range_a = _tile_ranges(segment_id_A.astype(jnp.int32), tm)   # (N//tm, 2)
    range_b = _tile_ranges(segment_id_B.astype(jnp.int32), tn)   # (M//tn, 2)

    grid = (N // tm, M // tn, K // tk)
    out_bytes = jnp.dtype(out_dtype).itemsize
    vmem_limit = _vmem_budget_bytes(tm, tn, tk, out_bytes)

    return pl.pallas_call(
        _segment_mm_kernel,
        out_shape=jax.ShapeDtypeStruct((N, M), out_dtype),
        grid_spec=pltpu.PrefetchScalarGridSpec(
            num_scalar_prefetch=2,
            grid=grid,
            in_specs=[
                pl.BlockSpec((tm, 1), lambda i, j, k, ra, rb: (i, 0)),   # A seg ids
                pl.BlockSpec((1, tn), lambda i, j, k, ra, rb: (0, j)),   # B seg ids
                pl.BlockSpec((tm, tk), lambda i, j, k, ra, rb: (i, k)),  # A tile
                pl.BlockSpec((tk, tn), lambda i, j, k, ra, rb: (k, j)),  # B^T tile
            ],
            out_specs=pl.BlockSpec((tm, tn), lambda i, j, k, ra, rb: (i, j)),
            scratch_shapes=[pltpu.VMEM((tm, tn), jnp.float32)],
        ),
        compiler_params=pltpu.CompilerParams(
            dimension_semantics=("parallel", "parallel", "arbitrary"),
            vmem_limit_bytes=vmem_limit,
        ),
    )(range_a, range_b, seg_a_col, seg_b_row, mat_A, mat_BT)


def _segment_mm_ref(mat_A, mat_B, segment_id_A, segment_id_B):
    c = mat_A.astype(jnp.float32) @ mat_B.astype(jnp.float32).T
    mask = segment_id_A[:, None] == segment_id_B[None, :]
    return jnp.where(mask, c, 0.0)


def _make_segments(sizes):
    return jnp.concatenate(
        [jnp.full((s,), i, dtype=jnp.int32) for i, s in enumerate(sizes)])


if __name__ == "__main__":
    key = jax.random.PRNGKey(0)

    # --- Case 1: small K (single K step), default lane-dense tiles (256x512) ---
    k_a, k_b, key = (*jax.random.split(key, 2), key)
    N, M, K = 512, 512, 32
    mat_A = jax.random.normal(k_a, (N, K), dtype=jnp.float32)
    mat_B = jax.random.normal(k_b, (M, K), dtype=jnp.float32)
    seg_A = _make_segments([160, 96, 192, 64])          # uneven, sums to N
    seg_B = _make_segments([128, 128, 128, 128])        # even, sums to M

    out = jax.block_until_ready(segment_mm(mat_A, mat_B, seg_A, seg_B))
    ref = _segment_mm_ref(mat_A, mat_B, seg_A, seg_B)
    assert out.shape == (N, M)
    assert jnp.allclose(out, ref, atol=1e-4, rtol=1e-4), "case 1 mismatch"

    # --- Case 2: smaller tiles to exercise the off-diagonal zero-skip path ------
    out2 = jax.block_until_ready(
        segment_mm(mat_A, mat_B, seg_A, seg_B, tm=256, tn=256))
    assert jnp.allclose(out2, ref, atol=1e-4, rtol=1e-4), "case 2 mismatch"

    # --- Case 3: K split across the grid (accumulator path, tk=128, nk=2) -------
    k_a2, k_b2 = jax.random.split(jax.random.PRNGKey(1))
    N3, M3, K3 = 256, 256, 256
    mat_A3 = jax.random.normal(k_a2, (N3, K3), dtype=jnp.float32)
    mat_B3 = jax.random.normal(k_b2, (M3, K3), dtype=jnp.float32)
    seg_A3 = _make_segments([96, 160])
    seg_B3 = _make_segments([128, 128])

    out3 = jax.block_until_ready(
        segment_mm(mat_A3, mat_B3, seg_A3, seg_B3, tm=128, tn=128, max_tk=128))
    ref3 = _segment_mm_ref(mat_A3, mat_B3, seg_A3, seg_B3)
    assert jnp.allclose(out3, ref3, atol=1e-3, rtol=1e-3), "case 3 mismatch"

    print("KERNEL_OK")
</pallas_src>

<mosaic_0001>
module attributes {stable_mosaic.version = 11 : i64} {
  func.func @_segment_mm_kernel(%arg0: i32, %arg1: i32, %arg2: i32, %arg3: memref<2x2xi32, #tpu.memory_space<smem>>, %arg4: memref<1x2xi32, #tpu.memory_space<smem>>, %arg5: memref<256x1xi32, #tpu.memory_space<vmem>>, %arg6: memref<1x512xi32, #tpu.memory_space<vmem>>, %arg7: memref<256x32xf32, #tpu.memory_space<vmem>>, %arg8: memref<32x512xf32, #tpu.memory_space<vmem>>, %arg9: memref<256x512xf32, #tpu.memory_space<vmem>>, %arg10: memref<256x512xf32, #tpu.memory_space<vmem>>) attributes {dimension_semantics = [#tpu.dimension_semantics<parallel>, #tpu.dimension_semantics<parallel>, #tpu.dimension_semantics<arbitrary>], iteration_bounds = array<i64: 2, 1, 1>, scalar_prefetch = 2 : i64, scratch_operands = 1 : i64, tpu.core_type = #tpu.core_type<tc>, window_params = [{transform_indices = @transform_0, window_bounds = array<i64: 256, 1>}, {transform_indices = @transform_1, window_bounds = array<i64: 1, 512>}, {transform_indices = @transform_2, window_bounds = array<i64: 256, 32>}, {transform_indices = @transform_3, window_bounds = array<i64: 32, 512>}, {transform_indices = @transform_4, window_bounds = array<i64: 256, 512>}]} {
    %0 = arith.index_cast %arg0 : i32 to index
    %c0 = arith.constant 0 : index
    %1 = memref.load %arg3[%0, %c0] : memref<2x2xi32, #tpu.memory_space<smem>>
    %2 = arith.index_cast %arg0 : i32 to index
    %c1 = arith.constant 1 : index
    %3 = memref.load %arg3[%2, %c1] : memref<2x2xi32, #tpu.memory_space<smem>>
    %4 = arith.index_cast %arg1 : i32 to index
    %c0_0 = arith.constant 0 : index
    %5 = memref.load %arg4[%4, %c0_0] : memref<1x2xi32, #tpu.memory_space<smem>>
    %6 = arith.index_cast %arg1 : i32 to index
    %c1_1 = arith.constant 1 : index
    %7 = memref.load %arg4[%6, %c1_1] : memref<1x2xi32, #tpu.memory_space<smem>>
    %8 = arith.cmpi sle, %1, %7 : i32
    %9 = arith.cmpi sle, %5, %3 : i32
    %10 = arith.andi %8, %9 : i1
    %c0_i32 = arith.constant 0 : i32
    %11 = arith.cmpi eq, %arg2, %c0_i32 : i32
    %12 = arith.andi %10, %11 : i1
    %13 = arith.extui %12 : i1 to i32
    %c0_i32_2 = arith.constant 0 : i32
    %14 = arith.cmpi ne, %13, %c0_i32_2 : i32
    scf.if %14 {
      %cst = arith.constant 0.000000e+00 : f32
      %20 = vector.broadcast %cst : f32 to vector<256x512xf32>
      %c0_6 = arith.constant 0 : index
      %c0_7 = arith.constant 0 : index
      %21 = vector.load %arg10[%c0_6, %c0_7] : memref<256x512xf32, #tpu.memory_space<vmem>>, vector<256x512xf32>
      tpu.vector_store %arg10[%c0_6, %c0_7], %20 {strides = array<i32>} : memref<256x512xf32, #tpu.memory_space<vmem>>, vector<256x512xf32>,
    } else {
    }
    %15 = arith.extui %10 : i1 to i32
    %c0_i32_3 = arith.constant 0 : i32
    %16 = arith.cmpi ne, %15, %c0_i32_3 : i32
    scf.if %16 {
      %c0_6 = arith.constant 0 : index
      %c0_7 = arith.constant 0 : index
      %20 = vector.load %arg10[%c0_6, %c0_7] : memref<256x512xf32, #tpu.memory_space<vmem>>, vector<256x512xf32>
      %c0_8 = arith.constant 0 : index
      %c0_9 = arith.constant 0 : index
      %21 = vector.load %arg7[%c0_8, %c0_9] : memref<256x32xf32, #tpu.memory_space<vmem>>, vector<256x32xf32>
      %c0_10 = arith.constant 0 : index
      %c0_11 = arith.constant 0 : index
      %22 = vector.load %arg8[%c0_10, %c0_11] : memref<32x512xf32, #tpu.memory_space<vmem>>, vector<32x512xf32>
      %cst = arith.constant dense<0.000000e+00> : vector<256x512xf32>
      %23 = tpu.matmul %21, %22, %cst {dimension_numbers = #tpu.dot_dimension_numbers<[1], [0], [0], [1], [0, 0, 1, 1], [], []>} : vector<256x32xf32>, vector<32x512xf32>, vector<256x512xf32> -> vector<256x512xf32>
      %24 = arith.addf %20, %23 : vector<256x512xf32>
      %c0_12 = arith.constant 0 : index
      %c0_13 = arith.constant 0 : index
      %25 = vector.load %arg10[%c0_12, %c0_13] : memref<256x512xf32, #tpu.memory_space<vmem>>, vector<256x512xf32>
      tpu.vector_store %arg10[%c0_12, %c0_13], %24 {strides = array<i32>} : memref<256x512xf32, #tpu.memory_space<vmem>>, vector<256x512xf32>,
    } else {
    }
    %c0_i32_4 = arith.constant 0 : i32
    %17 = arith.cmpi eq, %arg2, %c0_i32_4 : i32
    %18 = arith.extui %17 : i1 to i32
    %c0_i32_5 = arith.constant 0 : i32
    %19 = arith.cmpi ne, %18, %c0_i32_5 : i32
    scf.if %19 {
      %20 = arith.cmpi eq, %1, %3 : i32
      %21 = arith.cmpi eq, %5, %7 : i32
      %22 = arith.cmpi eq, %1, %5 : i32
      %23 = arith.andi %21, %22 : i1
      %24 = arith.andi %20, %23 : i1
      %25 = arith.andi %10, %24 : i1
      %26 = arith.extui %25 : i1 to i32
      %c0_i32_6 = arith.constant 0 : i32
      %27 = arith.cmpi ne, %26, %c0_i32_6 : i32
      scf.if %27 {
        %c0_10 = arith.constant 0 : index
        %c0_11 = arith.constant 0 : index
        %35 = vector.load %arg10[%c0_10, %c0_11] : memref<256x512xf32, #tpu.memory_space<vmem>>, vector<256x512xf32>
        %c0_12 = arith.constant 0 : index
        %c0_13 = arith.constant 0 : index
        %36 = vector.load %arg9[%c0_12, %c0_13] : memref<256x512xf32, #tpu.memory_space<vmem>>, vector<256x512xf32>
        tpu.vector_store %arg9[%c0_12, %c0_13], %35 {strides = array<i32>} : memref<256x512xf32, #tpu.memory_space<vmem>>, vector<256x512xf32>,
      } else {
      }
      %true = arith.constant true
      %28 = arith.xori %24, %true : i1
      %29 = arith.andi %10, %28 : i1
      %30 = arith.extui %29 : i1 to i32
      %c0_i32_7 = arith.constant 0 : i32
      %31 = arith.cmpi ne, %30, %c0_i32_7 : i32
      scf.if %31 {
        %c0_10 = arith.constant 0 : index
        %c0_11 = arith.constant 0 : index
        %35 = vector.load %arg5[%c0_10, %c0_11] : memref<256x1xi32, #tpu.memory_space<vmem>>, vector<256x1xi32>
        %c0_12 = arith.constant 0 : index
        %c0_13 = arith.constant 0 : index
        %36 = vector.load %arg6[%c0_12, %c0_13] : memref<1x512xi32, #tpu.memory_space<vmem>>, vector<1x512xi32>
        %37 = vector.broadcast %35 : vector<256x1xi32> to vector<256x512xi32>
        %38 = vector.broadcast %36 : vector<1x512xi32> to vector<256x512xi32>
        %39 = arith.cmpi eq, %37, %38 : vector<256x512xi32>
        %c0_14 = arith.constant 0 : index
        %c0_15 = arith.constant 0 : index
        %40 = vector.load %arg10[%c0_14, %c0_15] : memref<256x512xf32, #tpu.memory_space<vmem>>, vector<256x512xf32>
        %cst = arith.constant 0.000000e+00 : f32
        %41 = vector.broadcast %cst : f32 to vector<256x512xf32>
        %42 = arith.select %39, %40, %41 : vector<256x512xi1>, vector<256x512xf32>
        %c0_16 = arith.constant 0 : index
        %c0_17 = arith.constant 0 : index
        %43 = vector.load %arg9[%c0_16, %c0_17] : memref<256x512xf32, #tpu.memory_space<vmem>>, vector<256x512xf32>
        tpu.vector_store %arg9[%c0_16, %c0_17], %42 {strides = array<i32>} : memref<256x512xf32, #tpu.memory_space<vmem>>, vector<256x512xf32>,
      } else {
      }
      %true_8 = arith.constant true
      %32 = arith.xori %10, %true_8 : i1
      %33 = arith.extui %32 : i1 to i32
      %c0_i32_9 = arith.constant 0 : i32
      %34 = arith.cmpi ne, %33, %c0_i32_9 : i32
      scf.if %34 {
        %cst = arith.constant 0.000000e+00 : f32
        %35 = vector.broadcast %cst : f32 to vector<256x512xf32>
        %c0_10 = arith.constant 0 : index
        %c0_11 = arith.constant 0 : index
        %36 = vector.load %arg9[%c0_10, %c0_11] : memref<256x512xf32, #tpu.memory_space<vmem>>, vector<256x512xf32>
        tpu.vector_store %arg9[%c0_10, %c0_11], %35 {strides = array<i32>} : memref<256x512xf32, #tpu.memory_space<vmem>>, vector<256x512xf32>,
      } else {
      }
    } else {
    }
    return
  }
  func.func @transform_0(%arg0: i32, %arg1: i32, %arg2: i32, %arg3: memref<2x2xi32, #tpu.memory_space<smem>>, %arg4: memref<1x2xi32, #tpu.memory_space<smem>>) -> (i32, i32) {
    %c0_i32 = arith.constant 0 : i32
    %c0_i32_0 = arith.constant 0 : i32
    return %arg0, %c0_i32 : i32, i32
  }
  func.func @transform_1(%arg0: i32, %arg1: i32, %arg2: i32, %arg3: memref<2x2xi32, #tpu.memory_space<smem>>, %arg4: memref<1x2xi32, #tpu.memory_space<smem>>) -> (i32, i32) {
    %c0_i32 = arith.constant 0 : i32
    %c0_i32_0 = arith.constant 0 : i32
    return %c0_i32, %arg1 : i32, i32
  }
  func.func @transform_2(%arg0: i32, %arg1: i32, %arg2: i32, %arg3: memref<2x2xi32, #tpu.memory_space<smem>>, %arg4: memref<1x2xi32, #tpu.memory_space<smem>>) -> (i32, i32) {
    %c0_i32 = arith.constant 0 : i32
    return %arg0, %arg2 : i32, i32
  }
  func.func @transform_3(%arg0: i32, %arg1: i32, %arg2: i32, %arg3: memref<2x2xi32, #tpu.memory_space<smem>>, %arg4: memref<1x2xi32, #tpu.memory_space<smem>>) -> (i32, i32) {
    %c0_i32 = arith.constant 0 : i32
    return %arg2, %arg1 : i32, i32
  }
  func.func @transform_4(%arg0: i32, %arg1: i32, %arg2: i32, %arg3: memref<2x2xi32, #tpu.memory_space<smem>>, %arg4: memref<1x2xi32, #tpu.memory_space<smem>>) -> (i32, i32) {
    %c0_i32 = arith.constant 0 : i32
    return %arg0, %arg1 : i32, i32
  }
}

</mosaic_0001>

<bundles_post_ra>
// kernel: tpu_custom_call.1
= control target key start
LH: loop header
LB: loop body
LE: loop exit
PB: predicated region body
PF: predicated region fallthrough
CT: control target
= control target key end

     0   :  { %s2973_s27 = smov [#allocation4]   ;;  %s2974_s28 = smov [#allocation5]   ;;  %s4213_s0 = inlined_call_operand.vmem [shape: s32[2,2], index: 0, kind: input, shape index: {}]   ;;  %s4214_s2 = inlined_call_operand.vmem [shape: s32[512,1], index: 2, kind: input, shape index: {}]   ;;  %s4215_s3 = inlined_call_operand.vmem [shape: s32[1,512], index: 3, kind: input, shape index: {}]   ;;  %s4216_s4 = inlined_call_operand.vmem [shape: f32[512,32], index: 4, kind: input, shape index: {}]   ;;  %s4217_s5 = inlined_call_operand.vmem [shape: f32[32,512], index: 5, kind: input, shape index: {}]   ;;  %s4218_s6 = inlined_call_operand.hbm [shape: f32[512,512], index: 6, kind: output, shape index: {}]   ;;  %s4219_s1 = inlined_call_operand.vmem [shape: s32[1,2], index: 1, kind: input, shape index: {}]  }
   0x1   :  { %4221 = sst [smem:[#allocation10_spill]] %s4214_s2  ;;  %s12_s23 = sshll.u32 %s4213_s0, 4  ;;  %s13_s23 = int_to_ptr.vmem [resolvable:$true] %s12_s23 }
   0x2   :  { %4222 = sst [smem:[#allocation11_spill]] %s4216_s4  ;;  %s17_s26 = sshll.u32 %s4219_s1, 4  ;;  %s18_s26 = int_to_ptr.vmem [resolvable:$true] %s17_s26 }
   0x3   :  { %15 = dma.vmem_to_smem %s13_s23, 32, %s2973_s27, [#allocation3] }
   0x4   :  { %20 = dma.vmem_to_smem %s18_s26, 16, %s2974_s28, [#allocation3] }
   0x5   :  { %2943 = dma.done.wait [#allocation3], 48 }
   0x6   :  { %2944 = vsyncadd [#allocation3], 4294967248 }
   0x7   :  { %23 = sfence }
   0x8   :  { %24 = vsyncpa [#allocation7], 0 }
   0x9   :  { %26 = vsyncpa [#allocation7 + $0x1], 0  ;;  %s3021_s29 = smov 0   ;;  %s3023_s30 = smov 0  }
   0xa   :  { %s3025_s0 = smov 0   ;;  %s3027_s7 = smov 0  }
   0xb   :  { %s3029_s1 = smov 0   ;;  %s3031_s8 = smov 0  }
   0xc LB: > { %s2651_s9 = sadd.s32 4294967295, %s2971_s8   ;;  %s2652_s10 = sadd.s32 4294967294, %s2971_s8   ;;  %s2971_s8 = sphi %s3031_s8, %s32_s8   ;;  %s2967_s1 = sphi %s3029_s1, %s4234_s1   ;;  %s2963_s7 = sphi %s3027_s7, %s4233_s7   ;;  %s2959_s0 = sphi %s3025_s0, %s4232_s0   ;;  %s2955_s30 = sphi %s3023_s30, %s4231_s30   ;;  %s2951_s29 = sphi %s3021_s29, %s4230_s29  }
   0xd   : > { %s51_s11 = sadd.s32 1, %s2967_s1  ;;  %s168_s12 = sadd.s32 1, %s2959_s0 }
   0xe   : > { %p53_p0 = scmp.ge.s32.totalorder %s51_s11, 2  ;;  %p178_p1 = scmp.ne.s32.totalorder %s2959_s0, %s2955_s30 }
   0xf   : > { %p179_p2 = scmp.eq.s32.totalorder %s2651_s9, 1  ;;  %p184_p3 = scmp.ne.s32.totalorder %s2955_s30, %s2951_s29 }
  0x10   : > { %s4236_s11 = smov (%p53_p0, %s51_s11), 0  ;;  %p185_p5 = scmp.eq.s32.totalorder %s2652_s10, 1 }
  0x11   : > { %p3061_p4 = por %p179_p2, %p178_p1  ;;  %s163_s14 = ssub.s32 %s2967_s1, %s4236_s11 }
  0x12   : > { %p2657_p6 = scmp.ge.s32.totalorder %s2971_s8, 1  ;;  %p166_p7 = scmp.eq.s32.totalorder %s163_s14, 0 }
  0x13   : > { %p3068_p8 = por %p185_p5, %p184_p3  ;;  %p247_p9 = scmp.lt.s32.totalorder %s2971_s8, 3 }
  0x14   : > { %s3074_s16 = scalar_select %p166_p7, %s2959_s0, %s168_s12  }
  0x15   : > { %p248_p10 = pnand %p2657_p6, %p247_p9 }
  0x16   : > { %s4220_s17 = sand.u32 (!%p248_p10), 1, %s2955_s30   ;;  %s2659_s18 = sshll.u32 (!%p248_p10), %s2963_s7, 5 }
  0x17   : > { %251 = sbr.rel (%p248_p10) target bundleno = 1104 (0x450), region = 36  ;;  %s2658_s19 = sshll.u32 (!%p248_p10), %s4220_s17, 10 }
  0x18   : > { %p296_p11 = scmp.lt.s32.totalorder (!%p248_p10), %s2659_s18, 63  ;;  %s2663_s20 = sshll.u32 (!%p248_p10), %s2963_s7, 7 }
  0x19   : > { %s3081_s21 = sld [smem:[#allocation4 + %s2663_s20]] (!%p248_p10)  ;;  %s331_s22 = sadd.s32 (!%p248_p10), 1, %s2663_s20 }
  0x1a   : > { %s3083_s24 = sld [smem:[#allocation4 + %s331_s22]] (!%p248_p10)  ;;  %s3109_s20 = scalar_lea.vmem (!%p248_p10), [#allocation6], %s2658_s19 }
  0x1b   : > { %s4225_s2 = sld [smem:[#allocation10_spill]] (!%p248_p10) }
  0x1c   : > { %s4238_s18 = smov (!%p296_p11, %s2659_s18), 63  ;;  %s4226_s4 = sld [smem:[#allocation11_spill]] }
  0x1d   : > { %s2660_s23 = sshll.u32 %s4238_s18, 3  ;;  %s3095_s12 = sld [smem:[#allocation5]] }
  0x1e   : > { %s3097_s14 = sld [smem:[#allocation5 + $0x1]] }
  0x21   : > { %s3088_s27 = scalar_lea.vmem %s4225_s2, %s2660_s23 }
  0x22   : > { %s3093_s10 = scalar_lea.vmem %s4226_s4, %s2660_s23 }
  0x23   : > { %p338_p12 = scmp.le.s32.totalorder %s3095_s12, %s3083_s24 }
  0x24   : > { %p337_p13 = scmp.le.s32.totalorder %s3081_s21, %s3097_s14 }
  0x26   : > { %p3103_p0 = pnand %p338_p12, %p337_p13 }
  0x28   : > { %p340_p1 = pneg %p3103_p0  ;;  %345 = sbr.rel (%p3103_p0) target bundleno = 174 (0xae), region = 40 }
  0x2d   : > { %v2975_v0 = vmov 0.0  }
  0x2e   : > { %346 = vst [vmem:[#allocation2 + $0x2b0] sm:$0xff] %v2975_v0 }
  0x2f   : > { %347 = vst [vmem:[#allocation2 + $0x3b0] sm:$0xff] %v2975_v0 }
  0x30   : > { %348 = vst [vmem:[#allocation2 + $0xd8] sm:$0xff] %v2975_v0 }
  0x31   : > { %349 = vst [vmem:[#allocation2 + $0x18] sm:$0xff] %v2975_v0 }
  0x32   : > { %350 = vst [vmem:[#allocation2 + $0x50] sm:$0xff] %v2975_v0 }
  0x33   : > { %351 = vst [vmem:[#allocation2 + $0x368] sm:$0xff] %v2975_v0 }
  0x34   : > { %352 = vst [vmem:[#allocation2 + $0x330] sm:$0xff] %v2975_v0 }
  0x35   : > { %353 = vst [vmem:[#allocation2 + $0x48] sm:$0xff] %v2975_v0 }
  0x36   : > { %354 = vst [vmem:[#allocation2 + $0x380] sm:$0xff] %v2975_v0 }
  0x37   : > { %355 = vst [vmem:[#allocation2 + $0x110] sm:$0xff] %v2975_v0 }
  0x38   : > { %356 = vst [vmem:[#allocation2 + $0x118] sm:$0xff] %v2975_v0 }
  0x39   : > { %357 = vst [vmem:[#allocation2 + $0x98] sm:$0xff] %v2975_v0 }
  0x3a   : > { %358 = vst [vmem:[#allocation2 + $0x320] sm:$0xff] %v2975_v0 }
  0x3b   : > { %359 = vst [vmem:[#allocation2 + $0x150] sm:$0xff] %v2975_v0 }
  0x3c   : > { %360 = vst [vmem:[#allocation2 + $0x108] sm:$0xff] %v2975_v0 }
  0x3d   : > { %361 = vst [vmem:[#allocation2 + $0x60] sm:$0xff] %v2975_v0 }
  0x3e   : > { %362 = vst [vmem:[#allocation2 + $0x2e0] sm:$0xff] %v2975_v0 }
  0x3f   : > { %363 = vst [vmem:[#allocation2 + $0x388] sm:$0xff] %v2975_v0 }
  0x40   : > { %364 = vst [vmem:[#allocation2 + $0x338] sm:$0xff] %v2975_v0 }
  0x41   : > { %365 = vst [vmem:[#allocation2 + $0x340] sm:$0xff] %v2975_v0 }
  0x42   : > { %366 = vst [vmem:[#allocation2 + $0x80] sm:$0xff] %v2975_v0 }
  0x43   : > { %367 = vst [vmem:[#allocation2 + $0x1a8] sm:$0xff] %v2975_v0 }
  0x44   : > { %368 = vst [vmem:[#allocation2 + $0x1b8] sm:$0xff] %v2975_v0 }
  0x45   : > { %369 = vst [vmem:[#allocation2 + $0x168] sm:$0xff] %v2975_v0 }
  0x46   : > { %370 = vst [vmem:[#allocation2 + $0x3e8] sm:$0xff] %v2975_v0 }
  0x47   : > { %371 = vst [vmem:[#allocation2 + $0x2f8] sm:$0xff] %v2975_v0 }
  0x48   : > { %372 = vst [vmem:[#allocation2 + $0x290] sm:$0xff] %v2975_v0 }
  0x49   : > { %373 = vst [vmem:[#allocation2 + $0x28] sm:$0xff] %v2975_v0 }
  0x4a   : > { %374 = vst [vmem:[#allocation2 + $0x138] sm:$0xff] %v2975_v0 }
  0x4b   : > { %375 = vst [vmem:[#allocation2 + $0xc0] sm:$0xff] %v2975_v0 }
  0x4c   : > { %376 = vst [vmem:[#allocation2 + $0x1c0] sm:$0xff] %v2975_v0 }
  0x4d   : > { %377 = vst [vmem:[#allocation2 + $0x280] sm:$0xff] %v2975_v0 }
  0x4e   : > { %378 = vst [vmem:[#allocation2 + $0x100] sm:$0xff] %v2975_v0 }
  0x4f   : > { %379 = vst [vmem:[#allocation2 + $0x3c0] sm:$0xff] %v2975_v0 }
  0x50   : > { %380 = vst [vmem:[#allocation2 + $0x158] sm:$0xff] %v2975_v0 }
  0x51   : > { %381 = vst [vmem:[#allocation2 + $0x3e0] sm:$0xff] %v2975_v0 }
  0x52   : > { %382 = vst [vmem:[#allocation2 + $0x218] sm:$0xff] %v2975_v0 }
  0x53   : > { %383 = vst [vmem:[#allocation2 + $0x3f8] sm:$0xff] %v2975_v0 }
  0x54   : > { %384 = vst [vmem:[#allocation2 + $0x8] sm:$0xff] %v2975_v0 }
  0x55   : > { %385 = vst [vmem:[#allocation2 + $0x128] sm:$0xff] %v2975_v0 }
  0x56   : > { %386 = vst [vmem:[#allocation2 + $0x2a0] sm:$0xff] %v2975_v0 }
  0x57   : > { %387 = vst [vmem:[#allocation2 + $0x3f0] sm:$0xff] %v2975_v0 }
  0x58   : > { %388 = vst [vmem:[#allocation2 + $0xa0] sm:$0xff] %v2975_v0 }
  0x59   : > { %389 = vst [vmem:[#allocation2 + $0x2c0] sm:$0xff] %v2975_v0 }
  0x5a   : > { %390 = vst [vmem:[#allocation2 + $0xb0] sm:$0xff] %v2975_v0 }
  0x5b   : > { %391 = vst [vmem:[#allocation2 + $0x1e0] sm:$0xff] %v2975_v0 }
  0x5c   : > { %392 = vst [vmem:[#allocation2 + $0x1f0] sm:$0xff] %v2975_v0 }
  0x5d   : > { %393 = vst [vmem:[#allocation2 + $0x10] sm:$0xff] %v2975_v0 }
  0x5e   : > { %394 = vst [vmem:[#allocation2 + $0x230] sm:$0xff] %v2975_v0 }
  0x5f   : > { %395 = vst [vmem:[#allocation2 + $0x240] sm:$0xff] %v2975_v0 }
  0x60   : > { %396 = vst [vmem:[#allocation2 + $0x90] sm:$0xff] %v2975_v0 }
  0x61   : > { %397 = vst [vmem:[#allocation2 + $0x3a0] sm:$0xff] %v2975_v0 }
  0x62   : > { %398 = vst [vmem:[#allocation2 + $0x208] sm:$0xff] %v2975_v0 }
  0x63   : > { %399 = vst [vmem:[#allocation2 + $0xd0] sm:$0xff] %v2975_v0 }
  0x64   : > { %400 = vst [vmem:[#allocation2 + $0x88] sm:$0xff] %v2975_v0 }
  0x65   : > { %401 = vst [vmem:[#allocation2 + $0x2f0] sm:$0xff] %v2975_v0 }
  0x66   : > { %402 = vst [vmem:[#allocation2 + $0x358] sm:$0xff] %v2975_v0 }
  0x67   : > { %403 = vst [vmem:[#allocation2 + $0x268] sm:$0xff] %v2975_v0 }
  0x68   : > { %404 = vst [vmem:[#allocation2 + $0x350] sm:$0xff] %v2975_v0 }
  0x69   : > { %405 = vst [vmem:[#allocation2 + $0x188] sm:$0xff] %v2975_v0 }
  0x6a   : > { %406 = vst [vmem:[#allocation2 + $0x1d8] sm:$0xff] %v2975_v0 }
  0x6b   : > { %407 = vst [vmem:[#allocation2 + $0x30] sm:$0xff] %v2975_v0 }
  0x6c   : > { %408 = vst [vmem:[#allocation2 + $0x140] sm:$0xff] %v2975_v0 }
  0x6d   : > { %409 = vst [vmem:[#allocation2 + $0x2a8] sm:$0xff] %v2975_v0 }
  0x6e   : > { %410 = vst [vmem:[#allocation2 + $0x130] sm:$0xff] %v2975_v0 }
  0x6f   : > { %411 = vst [vmem:[#allocation2 + $0x200] sm:$0xff] %v2975_v0 }
  0x70   : > { %412 = vst [vmem:[#allocation2 + $0x318] sm:$0xff] %v2975_v0 }
  0x71   : > { %413 = vst [vmem:[#allocation2 + $0x220] sm:$0xff] %v2975_v0 }
  0x72   : > { %414 = vst [vmem:[#allocation2 + $0x70] sm:$0xff] %v2975_v0 }
  0x73   : > { %415 = vst [vmem:[#allocation2 + $0x300] sm:$0xff] %v2975_v0 }
  0x74   : > { %416 = vst [vmem:[#allocation2 + $0xe0] sm:$0xff] %v2975_v0 }
  0x75   : > { %417 = vst [vmem:[#allocation2 + $0x178] sm:$0xff] %v2975_v0 }
  0x76   : > { %418 = vst [vmem:[#allocation2 + $0x328] sm:$0xff] %v2975_v0 }
  0x77   : > { %419 = vst [vmem:[#allocation2 + $0x260] sm:$0xff] %v2975_v0 }
  0x78   : > { %420 = vst [vmem:[#allocation2 + $0x3b8] sm:$0xff] %v2975_v0 }
  0x79   : > { %421 = vst [vmem:[#allocation2 + $0x2b8] sm:$0xff] %v2975_v0 }
  0x7a   : > { %422 = vst [vmem:[#allocation2 + $0x248] sm:$0xff] %v2975_v0 }
  0x7b   : > { %423 = vst [vmem:[#allocation2 + $0x40] sm:$0xff] %v2975_v0 }
  0x7c   : > { %424 = vst [vmem:[#allocation2 + $0x20] sm:$0xff] %v2975_v0 }
  0x7d   : > { %425 = vst [vmem:[#allocation2 + $0xe8] sm:$0xff] %v2975_v0 }
  0x7e   : > { %426 = vst [vmem:[#allocation2 + $0x288] sm:$0xff] %v2975_v0 }
  0x7f   : > { %427 = vst [vmem:[#allocation2 + $0x3a8] sm:$0xff] %v2975_v0 }
  0x80   : > { %428 = vst [vmem:[#allocation2 + $0x3c8] sm:$0xff] %v2975_v0 }
  0x81   : > { %429 = vst [vmem:[#allocation2 + $0x160] sm:$0xff] %v2975_v0 }
  0x82   : > { %430 = vst [vmem:[#allocation2 + $0x2c8] sm:$0xff] %v2975_v0 }
  0x83   : > { %431 = vst [vmem:[#allocation2 + $0x210] sm:$0xff] %v2975_v0 }
  0x84   : > { %432 = vst [vmem:[#allocation2 + $0x3d8] sm:$0xff] %v2975_v0 }
  0x85   : > { %433 = vst [vmem:[#allocation2 + $0x1e8] sm:$0xff] %v2975_v0 }
  0x86   : > { %434 = vst [vmem:[#allocation2 + $0x1b0] sm:$0xff] %v2975_v0 }
  0x87   : > { %435 = vst [vmem:[#allocation2 + $0x1c8] sm:$0xff] %v2975_v0 }
  0x88   : > { %436 = vst [vmem:[#allocation2 + $0x2d0] sm:$0xff] %v2975_v0 }
  0x89   : > { %437 = vst [vmem:[#allocation2 + $0x1d0] sm:$0xff] %v2975_v0 }
  0x8a   : > { %438 = vst [vmem:[#allocation2 + $0x58] sm:$0xff] %v2975_v0 }
  0x8b   : > { %439 = vst [vmem:[#allocation2 + $0x120] sm:$0xff] %v2975_v0 }
  0x8c   : > { %440 = vst [vmem:[#allocation2 + $0x198] sm:$0xff] %v2975_v0 }
  0x8d   : > { %441 = vst [vmem:[#allocation2 + $0x2e8] sm:$0xff] %v2975_v0 }
  0x8e   : > { %442 = vst [vmem:[#allocation2 + $0x1f8] sm:$0xff] %v2975_v0 }
  0x8f   : > { %443 = vst [vmem:[#allocation2 + $0x238] sm:$0xff] %v2975_v0 }
  0x90   : > { %444 = vst [vmem:[#allocation2 + $0x398] sm:$0xff] %v2975_v0 }
  0x91   : > { %445 = vst [vmem:[#allocation2 + $0x390] sm:$0xff] %v2975_v0 }
  0x92   : > { %446 = vst [vmem:[#allocation2 + $0x1a0] sm:$0xff] %v2975_v0 }
  0x93   : > { %447 = vst [vmem:[#allocation2 + $0xa8] sm:$0xff] %v2975_v0 }
  0x94   : > { %448 = vst [vmem:[#allocation2 + $0x258] sm:$0xff] %v2975_v0 }
  0x95   : > { %449 = vst [vmem:[#allocation2 + $0x2d8] sm:$0xff] %v2975_v0 }
  0x96   : > { %450 = vst [vmem:[#allocation2 + $0xf0] sm:$0xff] %v2975_v0 }
  0x97   : > { %451 = vst [vmem:[#allocation2 + $0x180] sm:$0xff] %v2975_v0 }
  0x98   : > { %452 = vst [vmem:[#allocation2 + $0x170] sm:$0xff] %v2975_v0 }
  0x99   : > { %453 = vst [vmem:[#allocation2 + $0x3d0] sm:$0xff] %v2975_v0 }
  0x9a   : > { %454 = vst [vmem:[#allocation2 + $0x250] sm:$0xff] %v2975_v0 }
  0x9b   : > { %455 = vst [vmem:[#allocation2 + $0x378] sm:$0xff] %v2975_v0 }
  0x9c   : > { %456 = vst [vmem:[#allocation2 + $0xb8] sm:$0xff] %v2975_v0 }
  0x9d   : > { %457 = vst [vmem:[#allocation2 + $0x38] sm:$0xff] %v2975_v0 }
  0x9e   : > { %458 = vst [vmem:[#allocation2 + $0x78] sm:$0xff] %v2975_v0 }
  0x9f   : > { %459 = vst [vmem:[#allocation2 + $0x308] sm:$0xff] %v2975_v0 }
  0xa0   : > { %460 = vst [vmem:[#allocation2 + $0x370] sm:$0xff] %v2975_v0 }
  0xa1   : > { %461 = vst [vmem:[#allocation2 + $0xc8] sm:$0xff] %v2975_v0 }
  0xa2   : > { %462 = vst [vmem:[#allocation2 + $0x278] sm:$0xff] %v2975_v0 }
  0xa3   : > { %463 = vst [vmem:[#allocation2 + $0x360] sm:$0xff] %v2975_v0 }
  0xa4   : > { %464 = vst [vmem:[#allocation2 + $0x228] sm:$0xff] %v2975_v0 }
  0xa5   : > { %465 = vst [vmem:[#allocation2 + $0x348] sm:$0xff] %v2975_v0 }
  0xa6   : > { %466 = vst [vmem:[#allocation2 + $0x148] sm:$0xff] %v2975_v0 }
  0xa7   : > { %467 = vst [vmem:[#allocation2 + $0xf8] sm:$0xff] %v2975_v0 }
  0xa8   : > { %468 = vst [vmem:[#allocation2 + $0x68] sm:$0xff] %v2975_v0 }
  0xa9   : > { %469 = vst [vmem:[#allocation2] sm:$0xff] %v2975_v0 }
  0xaa   : > { %470 = vst [vmem:[#allocation2 + $0x298] sm:$0xff] %v2975_v0 }
  0xab   : > { %471 = vst [vmem:[#allocation2 + $0x270] sm:$0xff] %v2975_v0 }
  0xac   : > { %472 = vst [vmem:[#allocation2 + $0x310] sm:$0xff] %v2975_v0 }
  0xad   : > { %473 = vst [vmem:[#allocation2 + $0x190] sm:$0xff] %v2975_v0 }
  0xae PF: > { %475 = sbr.rel (%p3103_p0) target bundleno = 571 (0x23b), region = 44 }
  0xb3   : > { %v650_v1 = vld [vmem:[%s4217_s5 + $0x70] sm:$0xff]  ;;  %v651_v2 = vld [vmem:[%s4217_s5 + $0x78] sm:$0xff]  ;;  %v648_v7 = vld [vmem:[%s4217_s5 + $0x60] sm:$0xff]  ;;  %vm652_vm0 = vcmask 261120  }
  0xb4   : > { %v646_v3 = vld [vmem:[%s4217_s5 + $0x50] sm:$0xff]  ;;  %987 = vmatpush.msra.mxu2 %v650_v1  ;;  %1100 = vmatpush.msra.mxu3 %v651_v2  ;;  %v647_v4 = vld [vmem:[%s4217_s5 + $0x58] sm:$0xff]  ;;  %v649_v8 = vld [vmem:[%s4217_s5 + $0x68] sm:$0xff] }
  0xb5   : > { %v642_v5 = vld [vmem:[%s4217_s5 + $0x30] sm:$0xff]  ;;  %v643_v6 = vld [vmem:[%s4217_s5 + $0x38] sm:$0xff]  ;;  %v644_v9 = vld [vmem:[%s4217_s5 + $0x40] sm:$0xff]  ;;  %761 = vmatpush.msra.mxu0 %v648_v7  ;;  %874 = vmatpush.msra.mxu1 %v649_v8 }
  0xb6   : > { %988 = vmatpush.msra.mxu2 %v646_v3  ;;  %1101 = vmatpush.msra.mxu3 %v647_v4  ;;  %v638_v10 = vld [vmem:[%s4217_s5 + $0x10] sm:$0xff]  ;;  %v639_v11 = vld [vmem:[%s4217_s5 + $0x18] sm:$0xff]  ;;  %v645_v12 = vld [vmem:[%s4217_s5 + $0x48] sm:$0xff] }
  0xb7   : > { %v604_v13 = vld [vmem:[%s3093_s10] sm:$0xff]  ;;  %762 = vmatpush.msra.mxu0 %v644_v9  ;;  %875 = vmatpush.msra.mxu1 %v645_v12  ;;  %v641_v15 = vld [vmem:[%s4217_s5 + $0x28] sm:$0xff]  ;;  %v606_v19 = vld [vmem:[%s3093_s10 + $0x10] sm:$0xff] }
  0xb8   : > { %989 = vmatpush.msra.mxu2 %v642_v5  ;;  %1102 = vmatpush.msra.mxu3 %v643_v6  ;;  %v640_v14 = vld [vmem:[%s4217_s5 + $0x20] sm:$0xff]  ;;  %v637_v17 = vld [vmem:[%s4217_s5 + $0x8] sm:$0xff]  ;;  %v607_v20 = vld [vmem:[%s3093_s10 + $0x18] sm:$0xff] }
  0xb9   : > { %v636_v16 = vld [vmem:[%s4217_s5] sm:$0xff]  ;;  %763 = vmatpush.msra.mxu0 %v640_v14  ;;  %876 = vmatpush.msra.mxu1 %v641_v15  ;;  %v605_v18 = vld [vmem:[%s3093_s10 + $0x8] sm:$0xff]  ;;  %v610_v23 = vld [vmem:[%s3093_s10 + $0x30] sm:$0xff] }
  0xba   : > { %990 = vmatpush.msra.mxu2 %v638_v10  ;;  %1103 = vmatpush.msra.mxu3 %v639_v11  ;;  %v608_v21 = vld [vmem:[%s3093_s10 + $0x20] sm:$0xff]  ;;  %v609_v22 = vld [vmem:[%s3093_s10 + $0x28] sm:$0xff]  ;;  %v611_v24 = vld [vmem:[%s3093_s10 + $0x38] sm:$0xff] }
  0xbb   : > { %2730 = vmatmul.msk.f32.vlgmr.msra.gmra.mxu2 %vm652_vm0, %v604_v13  ;;  %2762 = vmatmul.msk.f32.vlgmr.msra.gmra.mxu3 %vm652_vm0, %v604_v13  ;;  %v612_v25 = vld [vmem:[%s3093_s10 + $0x40] sm:$0xff]  ;;  %v613_v26 = vld [vmem:[%s3093_s10 + $0x48] sm:$0xff]  ;;  %v614_v27 = vld [vmem:[%s3093_s10 + $0x50] sm:$0xff] }
  0xbc   : > { %764 = vmatpush.msra.mxu0 %v636_v16  ;;  %877 = vmatpush.msra.mxu1 %v637_v17  ;;  %v615_v28 = vld [vmem:[%s3093_s10 + $0x58] sm:$0xff]  ;;  %v616_v29 = vld [vmem:[%s3093_s10 + $0x60] sm:$0xff]  ;;  %v617_v30 = vld [vmem:[%s3093_s10 + $0x68] sm:$0xff] }
  0xbd   : > { %2666 = vmatmul.msk.f32.vlgmr.msra.gmra.mxu0 %vm652_vm0, %v604_v13  ;;  %2698 = vmatmul.msk.f32.vlgmr.msra.gmra.mxu1 %vm652_vm0, %v604_v13  ;;  %v618_v31 = vld [vmem:[%s3093_s10 + $0x70] sm:$0xff]  ;;  %v619_v32 = vld [vmem:[%s3093_s10 + $0x78] sm:$0xff]  ;;  %v620_v33 = vld [vmem:[%s3093_s10 + $0x80] sm:$0xff] }
  0xbe   : > { %v476_v34 = vld [vmem:[#allocation2 + $0x2b0] sm:$0xff]  ;;  %v478_v38 = vld [vmem:[#allocation2 + $0xd8] sm:$0xff]  ;;  %v621_v46 = vld [vmem:[%s3093_s10 + $0x88] sm:$0xff] }
  0xbf   : > { %v477_v35 = vld [vmem:[#allocation2 + $0x3b0] sm:$0xff]  ;;  %v479_v39 = vld [vmem:[#allocation2 + $0x18] sm:$0xff]  ;;  %v481_v48 = vld [vmem:[#allocation2 + $0x368] sm:$0xff] }
  0xc0   : > { %v480_v47 = vld [vmem:[#allocation2 + $0x50] sm:$0xff]  ;;  %v483_v52 = vld [vmem:[#allocation2 + $0x48] sm:$0xff]  ;;  %v484_v60 = vld [vmem:[#allocation2 + $0x380] sm:$0xff] }
  0xc1   : > { %v482_v51 = vld [vmem:[#allocation2 + $0x330] sm:$0xff]  ;;  %v486_v0 = vld [vmem:[#allocation2 + $0x118] sm:$0xff]  ;;  %v488_v9 = vld [vmem:[#allocation2 + $0x320] sm:$0xff] }
  0xc2   : > { %v622_v59 = vld [vmem:[%s3093_s10 + $0x90] sm:$0xff]  ;;  %v487_v1 = vld [vmem:[#allocation2 + $0x98] sm:$0xff]  ;;  %v490_v13 = vld [vmem:[#allocation2 + $0x108] sm:$0xff] }
  0xc3   : > { %2731 = vmatmul.msk.f32.gmra.mxu2 %vm652_vm0, %v605_v18  ;;  %2763 = vmatmul.msk.f32.gmra.mxu3 %vm652_vm0, %v605_v18  ;;  %v485_v61 = vld [vmem:[#allocation2 + $0x110] sm:$0xff]  ;;  %v623_v8 = vld [vmem:[%s3093_s10 + $0x98] sm:$0xff]  ;;  %v491_v14 = vld [vmem:[#allocation2 + $0x60] sm:$0xff] }
  0xc4   : > { %v489_v10 = vld [vmem:[#allocation2 + $0x150] sm:$0xff] }
  0xc5   : > { %2667 = vmatmul.msk.f32.gmra.mxu0 %vm652_vm0, %v605_v18  ;;  %2699 = vmatmul.msk.f32.gmra.mxu1 %vm652_vm0, %v605_v18 }
  0xcb   : > { %2732 = vmatmul.msk.f32.gmra.mxu2 %vm652_vm0, %v606_v19  ;;  %2764 = vmatmul.msk.f32.gmra.mxu3 %vm652_vm0, %v606_v19 }
  0xcd   : > { %2668 = vmatmul.msk.f32.gmra.mxu0 %vm652_vm0, %v606_v19  ;;  %2700 = vmatmul.msk.f32.gmra.mxu1 %vm652_vm0, %v606_v19 }
  0xd3   : > { %2733 = vmatmul.msk.f32.gmra.mxu2 %vm652_vm0, %v607_v20  ;;  %2765 = vmatmul.msk.f32.gmra.mxu3 %vm652_vm0, %v607_v20 }
  0xd5   : > { %2669 = vmatmul.msk.f32.gmra.mxu0 %vm652_vm0, %v607_v20  ;;  %2701 = vmatmul.msk.f32.gmra.mxu1 %vm652_vm0, %v607_v20 }
  0xdb   : > { %2734 = vmatmul.msk.f32.gmra.mxu2 %vm652_vm0, %v608_v21  ;;  %2766 = vmatmul.msk.f32.gmra.mxu3 %vm652_vm0, %v608_v21 }
  0xdd   : > { %2670 = vmatmul.msk.f32.gmra.mxu0 %vm652_vm0, %v608_v21  ;;  %2702 = vmatmul.msk.f32.gmra.mxu1 %vm652_vm0, %v608_v21  ;;  %v624_v21 = vld [vmem:[%s3093_s10 + $0xa0] sm:$0xff] }
  0xe3   : > { %2735 = vmatmul.msk.f32.gmra.mxu2 %vm652_vm0, %v609_v22  ;;  %2767 = vmatmul.msk.f32.gmra.mxu3 %vm652_vm0, %v609_v22 }
  0xe5   : > { %2671 = vmatmul.msk.f32.gmra.mxu0 %vm652_vm0, %v609_v22  ;;  %2703 = vmatmul.msk.f32.gmra.mxu1 %vm652_vm0, %v609_v22  ;;  %v492_v22 = vld [vmem:[#allocation2 + $0x2e0] sm:$0xff] }
  0xeb   : > { %2736 = vmatmul.msk.f32.gmra.mxu2 %vm652_vm0, %v610_v23  ;;  %2768 = vmatmul.msk.f32.gmra.mxu3 %vm652_vm0, %v610_v23 }
  0xed   : > { %2672 = vmatmul.msk.f32.gmra.mxu0 %vm652_vm0, %v610_v23  ;;  %2704 = vmatmul.msk.f32.gmra.mxu1 %vm652_vm0, %v610_v23  ;;  %v493_v23 = vld [vmem:[#allocation2 + $0x388] sm:$0xff] }
  0xf3   : > { %2737 = vmatmul.msk.f32.gmra.mxu2 %vm652_vm0, %v611_v24  ;;  %2769 = vmatmul.msk.f32.gmra.mxu3 %vm652_vm0, %v611_v24 }
  0xf5   : > { %2673 = vmatmul.msk.f32.gmra.mxu0 %vm652_vm0, %v611_v24  ;;  %2705 = vmatmul.msk.f32.gmra.mxu1 %vm652_vm0, %v611_v24 }
  0xfb   : > { %2738 = vmatmul.msk.f32.gmra.mxu2 %vm652_vm0, %v612_v25  ;;  %2770 = vmatmul.msk.f32.gmra.mxu3 %vm652_vm0, %v612_v25 }
  0xfd   : > { %2674 = vmatmul.msk.f32.gmra.mxu0 %vm652_vm0, %v612_v25  ;;  %2706 = vmatmul.msk.f32.gmra.mxu1 %vm652_vm0, %v612_v25 }
 0x103   : > { %2739 = vmatmul.msk.f32.gmra.mxu2 %vm652_vm0, %v613_v26  ;;  %2771 = vmatmul.msk.f32.gmra.mxu3 %vm652_vm0, %v613_v26 }
 0x105   : > { %2675 = vmatmul.msk.f32.gmra.mxu0 %vm652_vm0, %v613_v26  ;;  %2707 = vmatmul.msk.f32.gmra.mxu1 %vm652_vm0, %v613_v26  ;;  %v494_v26 = vld [vmem:[#allocation2 + $0x338] sm:$0xff] }
 0x10b   : > { %2740 = vmatmul.msk.f32.gmra.mxu2 %vm652_vm0, %v614_v27  ;;  %2772 = vmatmul.msk.f32.gmra.mxu3 %vm652_vm0, %v614_v27 }
 0x10d   : > { %2676 = vmatmul.msk.f32.gmra.mxu0 %vm652_vm0, %v614_v27  ;;  %2708 = vmatmul.msk.f32.gmra.mxu1 %vm652_vm0, %v614_v27  ;;  %v495_v27 = vld [vmem:[#allocation2 + $0x340] sm:$0xff] }
 0x113   : > { %2741 = vmatmul.msk.f32.gmra.mxu2 %vm652_vm0, %v615_v28  ;;  %2773 = vmatmul.msk.f32.gmra.mxu3 %vm652_vm0, %v615_v28 }
 0x115   : > { %2677 = vmatmul.msk.f32.gmra.mxu0 %vm652_vm0, %v615_v28  ;;  %2709 = vmatmul.msk.f32.gmra.mxu1 %vm652_vm0, %v615_v28 }
 0x11b   : > { %2742 = vmatmul.msk.f32.gmra.mxu2 %vm652_vm0, %v616_v29  ;;  %2774 = vmatmul.msk.f32.gmra.mxu3 %vm652_vm0, %v616_v29 }
 0x11d   : > { %2678 = vmatmul.msk.f32.gmra.mxu0 %vm652_vm0, %v616_v29  ;;  %2710 = vmatmul.msk.f32.gmra.mxu1 %vm652_vm0, %v616_v29 }
 0x123   : > { %2743 = vmatmul.msk.f32.gmra.mxu2 %vm652_vm0, %v617_v30  ;;  %2775 = vmatmul.msk.f32.gmra.mxu3 %vm652_vm0, %v617_v30 }
 0x125   : > { %2679 = vmatmul.msk.f32.gmra.mxu0 %vm652_vm0, %v617_v30  ;;  %2711 = vmatmul.msk.f32.gmra.mxu1 %vm652_vm0, %v617_v30 }
 0x12b   : > { %2744 = vmatmul.msk.f32.gmra.mxu2 %vm652_vm0, %v618_v31  ;;  %2776 = vmatmul.msk.f32.gmra.mxu3 %vm652_vm0, %v618_v31 }
 0x12d   : > { %2680 = vmatmul.msk.f32.gmra.mxu0 %vm652_vm0, %v618_v31  ;;  %2712 = vmatmul.msk.f32.gmra.mxu1 %vm652_vm0, %v618_v31 }
 0x133   : > { %2745 = vmatmul.msk.f32.gmra.mxu2 %vm652_vm0, %v619_v32  ;;  %2777 = vmatmul.msk.f32.gmra.mxu3 %vm652_vm0, %v619_v32 }
 0x135   : > { %2681 = vmatmul.msk.f32.gmra.mxu0 %vm652_vm0, %v619_v32  ;;  %2713 = vmatmul.msk.f32.gmra.mxu1 %vm652_vm0, %v619_v32 }
 0x13a   : > { %v766_v36 = vpop.f32.mrf.mxu0  ;;  %v879_v37 = vpop.f32.mrf.mxu1 }
 0x13b   : > { %2746 = vmatmul.msk.f32.gmra.mxu2 %vm652_vm0, %v620_v33  ;;  %2778 = vmatmul.msk.f32.gmra.mxu3 %vm652_vm0, %v620_v33  ;;  %v1201_v40 = vadd.f32 %v766_v36, %v476_v34  ;;  %v1202_v41 = vadd.f32 %v879_v37, %v477_v35  ;;  %v625_v34 = vld [vmem:[%s3093_s10 + $0xa8] sm:$0xff]  ;;  %v496_v35 = vld [vmem:[#allocation2 + $0x80] sm:$0xff] }
 0x13c   : > { %v497_v36 = vld [vmem:[#allocation2 + $0x1a8] sm:$0xff] }
 0x13d   : > { %1329 = vst [vmem:[#allocation2 + $0x2b0] sm:$0xff] %v1201_v40  ;;  %2682 = vmatmul.msk.f32.gmra.mxu0 %vm652_vm0, %v620_v33  ;;  %2714 = vmatmul.msk.f32.gmra.mxu1 %vm652_vm0, %v620_v33  ;;  %v499_v40 = vld [vmem:[#allocation2 + $0x168] sm:$0xff] }
 0x13e   : > { %v992_v42 = vpop.f32.mrf.mxu2  ;;  %v1105_v43 = vpop.f32.mrf.mxu3  ;;  %1330 = vst [vmem:[#allocation2 + $0x3b0] sm:$0xff] %v1202_v41 }
 0x13f   : > { %v1203_v44 = vadd.f32 %v992_v42, %v478_v38  ;;  %v1204_v45 = vadd.f32 %v1105_v43, %v479_v39  ;;  %v498_v39 = vld [vmem:[#allocation2 + $0x1b8] sm:$0xff] }
 0x141   : > { %1331 = vst [vmem:[#allocation2 + $0xd8] sm:$0xff] %v1203_v44 }
 0x142   : > { %1332 = vst [vmem:[#allocation2 + $0x18] sm:$0xff] %v1204_v45  ;;  %v769_v49 = vpop.f32.mrf.mxu0  ;;  %v882_v50 = vpop.f32.mrf.mxu1 }
 0x143   : > { %2747 = vmatmul.msk.f32.gmra.mxu2 %vm652_vm0, %v621_v46  ;;  %2779 = vmatmul.msk.f32.gmra.mxu3 %vm652_vm0, %v621_v46  ;;  %v1205_v53 = vadd.f32 %v769_v49, %v480_v47  ;;  %v1206_v54 = vadd.f32 %v882_v50, %v481_v48  ;;  %v626_v47 = vld [vmem:[%s3093_s10 + $0xb0] sm:$0xff]  ;;  %v500_v48 = vld [vmem:[#allocation2 + $0x3e8] sm:$0xff]  ;;  %v501_v49 = vld [vmem:[#allocation2 + $0x2f8] sm:$0xff] }
 0x145   : > { %1333 = vst [vmem:[#allocation2 + $0x50] sm:$0xff] %v1205_v53  ;;  %2683 = vmatmul.msk.f32.gmra.mxu0 %vm652_vm0, %v621_v46  ;;  %2715 = vmatmul.msk.f32.gmra.mxu1 %vm652_vm0, %v621_v46  ;;  %v503_v53 = vld [vmem:[#allocation2 + $0x28] sm:$0xff] }
 0x146   : > { %v995_v55 = vpop.f32.mrf.mxu2  ;;  %v1108_v56 = vpop.f32.mrf.mxu3  ;;  %1334 = vst [vmem:[#allocation2 + $0x368] sm:$0xff] %v1206_v54 }
 0x147   : > { %v1207_v57 = vadd.f32 %v995_v55, %v482_v51  ;;  %v1208_v58 = vadd.f32 %v1108_v56, %v483_v52  ;;  %v502_v52 = vld [vmem:[#allocation2 + $0x290] sm:$0xff] }
 0x149   : > { %1335 = vst [vmem:[#allocation2 + $0x330] sm:$0xff] %v1207_v57 }
 0x14a   : > { %1336 = vst [vmem:[#allocation2 + $0x48] sm:$0xff] %v1208_v58  ;;  %v772_v62 = vpop.f32.mrf.mxu0  ;;  %v885_v63 = vpop.f32.mrf.mxu1 }
 0x14b   : > { %2748 = vmatmul.msk.f32.gmra.mxu2 %vm652_vm0, %v622_v59  ;;  %2780 = vmatmul.msk.f32.gmra.mxu3 %vm652_vm0, %v622_v59  ;;  %v1209_v2 = vadd.f32 %v772_v62, %v484_v60  ;;  %v1210_v3 = vadd.f32 %v885_v63, %v485_v61  ;;  %v627_v60 = vld [vmem:[%s3093_s10 + $0xb8] sm:$0xff]  ;;  %v505_v62 = vld [vmem:[#allocation2 + $0xc0] sm:$0xff] }
 0x14c   : > { %v504_v61 = vld [vmem:[#allocation2 + $0x138] sm:$0xff] }
 0x14d   : > { %1337 = vst [vmem:[#allocation2 + $0x380] sm:$0xff] %v1209_v2  ;;  %2684 = vmatmul.msk.f32.gmra.mxu0 %vm652_vm0, %v622_v59  ;;  %2716 = vmatmul.msk.f32.gmra.mxu1 %vm652_vm0, %v622_v59  ;;  %v507_v2 = vld [vmem:[#allocation2 + $0x280] sm:$0xff] }
 0x14e   : > { %v998_v4 = vpop.f32.mrf.mxu2  ;;  %v1111_v5 = vpop.f32.mrf.mxu3  ;;  %1338 = vst [vmem:[#allocation2 + $0x110] sm:$0xff] %v1210_v3 }
 0x14f   : > { %v1211_v6 = vadd.f32 %v998_v4, %v486_v0  ;;  %v1212_v7 = vadd.f32 %v1111_v5, %v487_v1  ;;  %v506_v1 = vld [vmem:[#allocation2 + $0x1c0] sm:$0xff] }
 0x151   : > { %1339 = vst [vmem:[#allocation2 + $0x118] sm:$0xff] %v1211_v6 }
 0x152   : > { %1340 = vst [vmem:[#allocation2 + $0x98] sm:$0xff] %v1212_v7  ;;  %v775_v11 = vpop.f32.mrf.mxu0  ;;  %v888_v12 = vpop.f32.mrf.mxu1 }
 0x153   : > { %2749 = vmatmul.msk.f32.gmra.mxu2 %vm652_vm0, %v623_v8  ;;  %2781 = vmatmul.msk.f32.gmra.mxu3 %vm652_vm0, %v623_v8  ;;  %v1213_v15 = vadd.f32 %v775_v11, %v488_v9  ;;  %v1214_v16 = vadd.f32 %v888_v12, %v489_v10  ;;  %v628_v9 = vld [vmem:[%s3093_s10 + $0xc0] sm:$0xff] }
 0x154   : > { %v508_v10 = vld [vmem:[#allocation2 + $0x100] sm:$0xff] }
 0x155   : > { %1341 = vst [vmem:[#allocation2 + $0x320] sm:$0xff] %v1213_v15  ;;  %2685 = vmatmul.msk.f32.gmra.mxu0 %vm652_vm0, %v623_v8  ;;  %2717 = vmatmul.msk.f32.gmra.mxu1 %vm652_vm0, %v623_v8  ;;  %v509_v11 = vld [vmem:[#allocation2 + $0x3c0] sm:$0xff] }
 0x156   : > { %v1001_v17 = vpop.f32.mrf.mxu2  ;;  %v1114_v18 = vpop.f32.mrf.mxu3  ;;  %1342 = vst [vmem:[#allocation2 + $0x150] sm:$0xff] %v1214_v16  ;;  %v511_v15 = vld [vmem:[#allocation2 + $0x3e0] sm:$0xff] }
 0x157   : > { %v1215_v19 = vadd.f32 %v1001_v17, %v490_v13  ;;  %v1216_v20 = vadd.f32 %v1114_v18, %v491_v14  ;;  %v510_v14 = vld [vmem:[#allocation2 + $0x158] sm:$0xff] }
 0x159   : > { %1343 = vst [vmem:[#allocation2 + $0x108] sm:$0xff] %v1215_v19 }
 0x15a   : > { %1344 = vst [vmem:[#allocation2 + $0x60] sm:$0xff] %v1216_v20  ;;  %v778_v24 = vpop.f32.mrf.mxu0  ;;  %v891_v25 = vpop.f32.mrf.mxu1 }
 0x15b   : > { %2750 = vmatmul.msk.f32.gmra.mxu2 %vm652_vm0, %v624_v21  ;;  %2782 = vmatmul.msk.f32.gmra.mxu3 %vm652_vm0, %v624_v21  ;;  %v1217_v28 = vadd.f32 %v778_v24, %v492_v22  ;;  %v1218_v29 = vadd.f32 %v891_v25, %v493_v23  ;;  %v629_v22 = vld [vmem:[%s3093_s10 + $0xc8] sm:$0xff]  ;;  %v512_v23 = vld [vmem:[#allocation2 + $0x218] sm:$0xff] }
 0x15c   : > { %v513_v24 = vld [vmem:[#allocation2 + $0x3f8] sm:$0xff] }
 0x15d   : > { %1345 = vst [vmem:[#allocation2 + $0x2e0] sm:$0xff] %v1217_v28  ;;  %2686 = vmatmul.msk.f32.gmra.mxu0 %vm652_vm0, %v624_v21  ;;  %2718 = vmatmul.msk.f32.gmra.mxu1 %vm652_vm0, %v624_v21  ;;  %v515_v28 = vld [vmem:[#allocation2 + $0x128] sm:$0xff] }
 0x15e   : > { %v1004_v30 = vpop.f32.mrf.mxu2  ;;  %v1117_v31 = vpop.f32.mrf.mxu3  ;;  %1346 = vst [vmem:[#allocation2 + $0x388] sm:$0xff] %v1218_v29 }
 0x15f   : > { %v1219_v32 = vadd.f32 %v1004_v30, %v494_v26  ;;  %v1220_v33 = vadd.f32 %v1117_v31, %v495_v27  ;;  %v514_v27 = vld [vmem:[#allocation2 + $0x8] sm:$0xff] }
 0x161   : > { %1347 = vst [vmem:[#allocation2 + $0x338] sm:$0xff] %v1219_v32 }
 0x162   : > { %1348 = vst [vmem:[#allocation2 + $0x340] sm:$0xff] %v1220_v33  ;;  %v781_v37 = vpop.f32.mrf.mxu0  ;;  %v894_v38 = vpop.f32.mrf.mxu1 }
 0x163   : > { %2751 = vmatmul.msk.f32.gmra.mxu2 %vm652_vm0, %v625_v34  ;;  %2783 = vmatmul.msk.f32.gmra.mxu3 %vm652_vm0, %v625_v34  ;;  %v1221_v41 = vadd.f32 %v781_v37, %v496_v35  ;;  %v1222_v42 = vadd.f32 %v894_v38, %v497_v36  ;;  %v630_v35 = vld [vmem:[%s3093_s10 + $0xd0] sm:$0xff]  ;;  %v516_v36 = vld [vmem:[#allocation2 + $0x2a0] sm:$0xff] }
 0x164   : > { %v517_v37 = vld [vmem:[#allocation2 + $0x3f0] sm:$0xff] }
 0x165   : > { %1349 = vst [vmem:[#allocation2 + $0x80] sm:$0xff] %v1221_v41  ;;  %2687 = vmatmul.msk.f32.gmra.mxu0 %vm652_vm0, %v625_v34  ;;  %2719 = vmatmul.msk.f32.gmra.mxu1 %vm652_vm0, %v625_v34  ;;  %v519_v41 = vld [vmem:[#allocation2 + $0x2c0] sm:$0xff] }
 0x166   : > { %v1007_v43 = vpop.f32.mrf.mxu2  ;;  %v1120_v44 = vpop.f32.mrf.mxu3  ;;  %1350 = vst [vmem:[#allocation2 + $0x1a8] sm:$0xff] %v1222_v42 }
 0x167   : > { %v1223_v45 = vadd.f32 %v1007_v43, %v498_v39  ;;  %v1224_v46 = vadd.f32 %v1120_v44, %v499_v40  ;;  %v518_v40 = vld [vmem:[#allocation2 + $0xa0] sm:$0xff] }
 0x169   : > { %1351 = vst [vmem:[#allocation2 + $0x1b8] sm:$0xff] %v1223_v45 }
 0x16a   : > { %1352 = vst [vmem:[#allocation2 + $0x168] sm:$0xff] %v1224_v46  ;;  %v784_v50 = vpop.f32.mrf.mxu0  ;;  %v897_v51 = vpop.f32.mrf.mxu1 }
 0x16b   : > { %2752 = vmatmul.msk.f32.gmra.mxu2 %vm652_vm0, %v626_v47  ;;  %2784 = vmatmul.msk.f32.gmra.mxu3 %vm652_vm0, %v626_v47  ;;  %v1225_v54 = vadd.f32 %v784_v50, %v500_v48  ;;  %v1226_v55 = vadd.f32 %v897_v51, %v501_v49  ;;  %v631_v48 = vld [vmem:[%s3093_s10 + $0xd8] sm:$0xff]  ;;  %v520_v49 = vld [vmem:[#allocation2 + $0xb0] sm:$0xff]  ;;  %v521_v50 = vld [vmem:[#allocation2 + $0x1e0] sm:$0xff] }
 0x16d   : > { %1353 = vst [vmem:[#allocation2 + $0x3e8] sm:$0xff] %v1225_v54  ;;  %2688 = vmatmul.msk.f32.gmra.mxu0 %vm652_vm0, %v626_v47  ;;  %2720 = vmatmul.msk.f32.gmra.mxu1 %vm652_vm0, %v626_v47  ;;  %v523_v54 = vld [vmem:[#allocation2 + $0x10] sm:$0xff] }
 0x16e   : > { %v1010_v56 = vpop.f32.mrf.mxu2  ;;  %v1123_v57 = vpop.f32.mrf.mxu3  ;;  %1354 = vst [vmem:[#allocation2 + $0x2f8] sm:$0xff] %v1226_v55 }
 0x16f   : > { %v1227_v58 = vadd.f32 %v1010_v56, %v502_v52  ;;  %v1228_v59 = vadd.f32 %v1123_v57, %v503_v53  ;;  %v522_v53 = vld [vmem:[#allocation2 + $0x1f0] sm:$0xff] }
 0x171   : > { %1355 = vst [vmem:[#allocation2 + $0x290] sm:$0xff] %v1227_v58 }
 0x172   : > { %1356 = vst [vmem:[#allocation2 + $0x28] sm:$0xff] %v1228_v59  ;;  %v787_v63 = vpop.f32.mrf.mxu0  ;;  %v900_v0 = vpop.f32.mrf.mxu1 }
 0x173   : > { %2753 = vmatmul.msk.f32.gmra.mxu2 %vm652_vm0, %v627_v60  ;;  %2785 = vmatmul.msk.f32.gmra.mxu3 %vm652_vm0, %v627_v60  ;;  %v1229_v3 = vadd.f32 %v787_v63, %v504_v61  ;;  %v1230_v4 = vadd.f32 %v900_v0, %v505_v62  ;;  %v632_v61 = vld [vmem:[%s3093_s10 + $0xe0] sm:$0xff]  ;;  %v524_v62 = vld [vmem:[#allocation2 + $0x230] sm:$0xff] }
 0x174   : > { %v525_v63 = vld [vmem:[#allocation2 + $0x240] sm:$0xff] }
 0x175   : > { %1357 = vst [vmem:[#allocation2 + $0x138] sm:$0xff] %v1229_v3  ;;  %2689 = vmatmul.msk.f32.gmra.mxu0 %vm652_vm0, %v627_v60  ;;  %2721 = vmatmul.msk.f32.gmra.mxu1 %vm652_vm0, %v627_v60  ;;  %v527_v3 = vld [vmem:[#allocation2 + $0x3a0] sm:$0xff] }
 0x176   : > { %v1013_v5 = vpop.f32.mrf.mxu2  ;;  %v1126_v6 = vpop.f32.mrf.mxu3  ;;  %1358 = vst [vmem:[#allocation2 + $0xc0] sm:$0xff] %v1230_v4 }
 0x177   : > { %v1231_v7 = vadd.f32 %v1013_v5, %v506_v1  ;;  %v1232_v8 = vadd.f32 %v1126_v6, %v507_v2  ;;  %v526_v2 = vld [vmem:[#allocation2 + $0x90] sm:$0xff] }
 0x179   : > { %1359 = vst [vmem:[#allocation2 + $0x1c0] sm:$0xff] %v1231_v7 }
 0x17a   : > { %1360 = vst [vmem:[#allocation2 + $0x280] sm:$0xff] %v1232_v8  ;;  %v790_v12 = vpop.f32.mrf.mxu0  ;;  %v903_v13 = vpop.f32.mrf.mxu1 }
 0x17b   : > { %2754 = vmatmul.msk.f32.gmra.mxu2 %vm652_vm0, %v628_v9  ;;  %2786 = vmatmul.msk.f32.gmra.mxu3 %vm652_vm0, %v628_v9  ;;  %v1233_v16 = vadd.f32 %v790_v12, %v508_v10  ;;  %v1234_v17 = vadd.f32 %v903_v13, %v509_v11  ;;  %v633_v10 = vld [vmem:[%s3093_s10 + $0xe8] sm:$0xff]  ;;  %v529_v12 = vld [vmem:[#allocation2 + $0xd0] sm:$0xff] }
 0x17c   : > { %v528_v11 = vld [vmem:[#allocation2 + $0x208] sm:$0xff] }
 0x17d   : > { %1361 = vst [vmem:[#allocation2 + $0x100] sm:$0xff] %v1233_v16  ;;  %2690 = vmatmul.msk.f32.gmra.mxu0 %vm652_vm0, %v628_v9  ;;  %2722 = vmatmul.msk.f32.gmra.mxu1 %vm652_vm0, %v628_v9  ;;  %v531_v16 = vld [vmem:[#allocation2 + $0x2f0] sm:$0xff] }
 0x17e   : > { %v1016_v18 = vpop.f32.mrf.mxu2  ;;  %v1129_v19 = vpop.f32.mrf.mxu3  ;;  %1362 = vst [vmem:[#allocation2 + $0x3c0] sm:$0xff] %v1234_v17 }
 0x17f   : > { %v1235_v20 = vadd.f32 %v1016_v18, %v510_v14  ;;  %v1236_v21 = vadd.f32 %v1129_v19, %v511_v15  ;;  %v530_v15 = vld [vmem:[#allocation2 + $0x88] sm:$0xff] }
 0x181   : > { %1363 = vst [vmem:[#allocation2 + $0x158] sm:$0xff] %v1235_v20 }
 0x182   : > { %1364 = vst [vmem:[#allocation2 + $0x3e0] sm:$0xff] %v1236_v21  ;;  %v793_v25 = vpop.f32.mrf.mxu0  ;;  %v906_v26 = vpop.f32.mrf.mxu1 }
 0x183   : > { %2755 = vmatmul.msk.f32.gmra.mxu2 %vm652_vm0, %v629_v22  ;;  %2787 = vmatmul.msk.f32.gmra.mxu3 %vm652_vm0, %v629_v22  ;;  %v1237_v29 = vadd.f32 %v793_v25, %v512_v23  ;;  %v1238_v30 = vadd.f32 %v906_v26, %v513_v24  ;;  %v634_v23 = vld [vmem:[%s3093_s10 + $0xf0] sm:$0xff]  ;;  %v532_v24 = vld [vmem:[#allocation2 + $0x358] sm:$0xff]  ;;  %v533_v25 = vld [vmem:[#allocation2 + $0x268] sm:$0xff] }
 0x185   : > { %1365 = vst [vmem:[#allocation2 + $0x218] sm:$0xff] %v1237_v29  ;;  %2691 = vmatmul.msk.f32.gmra.mxu0 %vm652_vm0, %v629_v22  ;;  %2723 = vmatmul.msk.f32.gmra.mxu1 %vm652_vm0, %v629_v22  ;;  %v535_v29 = vld [vmem:[#allocation2 + $0x188] sm:$0xff] }
 0x186   : > { %v1019_v31 = vpop.f32.mrf.mxu2  ;;  %v1132_v32 = vpop.f32.mrf.mxu3  ;;  %1366 = vst [vmem:[#allocation2 + $0x3f8] sm:$0xff] %v1238_v30 }
 0x187   : > { %v1239_v33 = vadd.f32 %v1019_v31, %v514_v27  ;;  %v1240_v34 = vadd.f32 %v1132_v32, %v515_v28  ;;  %v534_v28 = vld [vmem:[#allocation2 + $0x350] sm:$0xff] }
 0x189   : > { %1367 = vst [vmem:[#allocation2 + $0x8] sm:$0xff] %v1239_v33 }
 0x18a   : > { %1368 = vst [vmem:[#allocation2 + $0x128] sm:$0xff] %v1240_v34  ;;  %v796_v38 = vpop.f32.mrf.mxu0  ;;  %v909_v39 = vpop.f32.mrf.mxu1 }
 0x18b   : > { %2756 = vmatmul.msk.f32.gmra.mxu2 %vm652_vm0, %v630_v35  ;;  %2788 = vmatmul.msk.f32.gmra.mxu3 %vm652_vm0, %v630_v35  ;;  %v1241_v42 = vadd.f32 %v796_v38, %v516_v36  ;;  %v1242_v43 = vadd.f32 %v909_v39, %v517_v37  ;;  %v635_v36 = vld [vmem:[%s3093_s10 + $0xf8] sm:$0xff]  ;;  %v537_v38 = vld [vmem:[#allocation2 + $0x30] sm:$0xff] }
 0x18c   : > { %v536_v37 = vld [vmem:[#allocation2 + $0x1d8] sm:$0xff] }
 0x18d   : > { %1369 = vst [vmem:[#allocation2 + $0x2a0] sm:$0xff] %v1241_v42  ;;  %2692 = vmatmul.msk.f32.gmra.mxu0 %vm652_vm0, %v630_v35  ;;  %2724 = vmatmul.msk.f32.gmra.mxu1 %vm652_vm0, %v630_v35  ;;  %v539_v42 = vld [vmem:[#allocation2 + $0x2a8] sm:$0xff] }
 0x18e   : > { %v1022_v44 = vpop.f32.mrf.mxu2  ;;  %v1135_v45 = vpop.f32.mrf.mxu3  ;;  %1370 = vst [vmem:[#allocation2 + $0x3f0] sm:$0xff] %v1242_v43 }
 0x18f   : > { %v1243_v46 = vadd.f32 %v1022_v44, %v518_v40  ;;  %v1244_v47 = vadd.f32 %v1135_v45, %v519_v41  ;;  %v538_v41 = vld [vmem:[#allocation2 + $0x140] sm:$0xff] }
 0x191   : > { %1371 = vst [vmem:[#allocation2 + $0xa0] sm:$0xff] %v1243_v46 }
 0x192   : > { %1372 = vst [vmem:[#allocation2 + $0x2c0] sm:$0xff] %v1244_v47  ;;  %v799_v51 = vpop.f32.mrf.mxu0  ;;  %v912_v52 = vpop.f32.mrf.mxu1 }
 0x193   : > { %2757 = vmatmul.msk.f32.gmra.mxu2 %vm652_vm0, %v631_v48  ;;  %2789 = vmatmul.msk.f32.gmra.mxu3 %vm652_vm0, %v631_v48  ;;  %v1245_v55 = vadd.f32 %v799_v51, %v520_v49  ;;  %v1246_v56 = vadd.f32 %v912_v52, %v521_v50  ;;  %v540_v49 = vld [vmem:[#allocation2 + $0x130] sm:$0xff]  ;;  %v541_v50 = vld [vmem:[#allocation2 + $0x200] sm:$0xff] }
 0x195   : > { %1373 = vst [vmem:[#allocation2 + $0xb0] sm:$0xff] %v1245_v55  ;;  %2693 = vmatmul.msk.f32.gmra.mxu0 %vm652_vm0, %v631_v48  ;;  %2725 = vmatmul.msk.f32.gmra.mxu1 %vm652_vm0, %v631_v48 }
 0x196   : > { %v1025_v57 = vpop.f32.mrf.mxu2  ;;  %v1138_v58 = vpop.f32.mrf.mxu3  ;;  %1374 = vst [vmem:[#allocation2 + $0x1e0] sm:$0xff] %v1246_v56 }
 0x197   : > { %v1247_v59 = vadd.f32 %v1025_v57, %v522_v53  ;;  %v1248_v60 = vadd.f32 %v1138_v58, %v523_v54  ;;  %v542_v53 = vld [vmem:[#allocation2 + $0x318] sm:$0xff]  ;;  %v543_v54 = vld [vmem:[#allocation2 + $0x220] sm:$0xff] }
 0x199   : > { %1375 = vst [vmem:[#allocation2 + $0x1f0] sm:$0xff] %v1247_v59 }
 0x19a   : > { %1376 = vst [vmem:[#allocation2 + $0x10] sm:$0xff] %v1248_v60  ;;  %v802_v0 = vpop.f32.mrf.mxu0  ;;  %v915_v1 = vpop.f32.mrf.mxu1 }
 0x19b   : > { %2758 = vmatmul.msk.f32.gmra.mxu2 %vm652_vm0, %v632_v61  ;;  %2790 = vmatmul.msk.f32.gmra.mxu3 %vm652_vm0, %v632_v61  ;;  %v1249_v4 = vadd.f32 %v802_v0, %v524_v62  ;;  %v1250_v5 = vadd.f32 %v915_v1, %v525_v63  ;;  %v545_v62 = vld [vmem:[#allocation2 + $0x300] sm:$0xff] }
 0x19c   : > { %v546_v1 = vld [vmem:[#allocation2 + $0xe0] sm:$0xff] }
 0x19d   : > { %1377 = vst [vmem:[#allocation2 + $0x230] sm:$0xff] %v1249_v4  ;;  %2694 = vmatmul.msk.f32.gmra.mxu0 %vm652_vm0, %v632_v61  ;;  %2726 = vmatmul.msk.f32.gmra.mxu1 %vm652_vm0, %v632_v61  ;;  %v544_v61 = vld [vmem:[#allocation2 + $0x70] sm:$0xff] }
 0x19e   : > { %v1028_v6 = vpop.f32.mrf.mxu2  ;;  %v1141_v7 = vpop.f32.mrf.mxu3  ;;  %1378 = vst [vmem:[#allocation2 + $0x240] sm:$0xff] %v1250_v5 }
 0x19f   : > { %v1251_v8 = vadd.f32 %v1028_v6, %v526_v2  ;;  %v1252_v9 = vadd.f32 %v1141_v7, %v527_v3  ;;  %v547_v2 = vld [vmem:[#allocation2 + $0x178] sm:$0xff] }
 0x1a1   : > { %1379 = vst [vmem:[#allocation2 + $0x90] sm:$0xff] %v1251_v8 }
 0x1a2   : > { %1380 = vst [vmem:[#allocation2 + $0x3a0] sm:$0xff] %v1252_v9  ;;  %v805_v13 = vpop.f32.mrf.mxu0  ;;  %v918_v14 = vpop.f32.mrf.mxu1  ;;  %v548_v9 = vld [vmem:[#allocation2 + $0x328] sm:$0xff] }
 0x1a3   : > { %2759 = vmatmul.msk.f32.gmra.mxu2 %vm652_vm0, %v633_v10  ;;  %2791 = vmatmul.msk.f32.gmra.mxu3 %vm652_vm0, %v633_v10  ;;  %v1253_v17 = vadd.f32 %v805_v13, %v528_v11  ;;  %v1254_v18 = vadd.f32 %v918_v14, %v529_v12  ;;  %v550_v13 = vld [vmem:[#allocation2 + $0x3b8] sm:$0xff] }
 0x1a4   : > { %v551_v14 = vld [vmem:[#allocation2 + $0x2b8] sm:$0xff] }
 0x1a5   : > { %1381 = vst [vmem:[#allocation2 + $0x208] sm:$0xff] %v1253_v17  ;;  %2695 = vmatmul.msk.f32.gmra.mxu0 %vm652_vm0, %v633_v10  ;;  %2727 = vmatmul.msk.f32.gmra.mxu1 %vm652_vm0, %v633_v10  ;;  %v549_v10 = vld [vmem:[#allocation2 + $0x260] sm:$0xff] }
 0x1a6   : > { %v1031_v19 = vpop.f32.mrf.mxu2  ;;  %v1144_v20 = vpop.f32.mrf.mxu3  ;;  %1382 = vst [vmem:[#allocation2 + $0xd0] sm:$0xff] %v1254_v18 }
 0x1a7   : > { %v1255_v21 = vadd.f32 %v1031_v19, %v530_v15  ;;  %v1256_v22 = vadd.f32 %v1144_v20, %v531_v16 }
 0x1a9   : > { %1383 = vst [vmem:[#allocation2 + $0x88] sm:$0xff] %v1255_v21  ;;  %v552_v21 = vld [vmem:[#allocation2 + $0x248] sm:$0xff] }
 0x1aa   : > { %1384 = vst [vmem:[#allocation2 + $0x2f0] sm:$0xff] %v1256_v22  ;;  %v808_v26 = vpop.f32.mrf.mxu0  ;;  %v921_v27 = vpop.f32.mrf.mxu1  ;;  %v553_v22 = vld [vmem:[#allocation2 + $0x40] sm:$0xff] }
 0x1ab   : > { %2760 = vmatmul.msk.f32.gmra.mxu2 %vm652_vm0, %v634_v23  ;;  %2792 = vmatmul.msk.f32.gmra.mxu3 %vm652_vm0, %v634_v23  ;;  %v1257_v30 = vadd.f32 %v808_v26, %v532_v24  ;;  %v1258_v31 = vadd.f32 %v921_v27, %v533_v25  ;;  %v554_v25 = vld [vmem:[#allocation2 + $0x20] sm:$0xff]  ;;  %v555_v26 = vld [vmem:[#allocation2 + $0xe8] sm:$0xff] }
 0x1ad   : > { %1385 = vst [vmem:[#allocation2 + $0x358] sm:$0xff] %v1257_v30  ;;  %2696 = vmatmul.msk.f32.gmra.mxu0 %vm652_vm0, %v634_v23  ;;  %2728 = vmatmul.msk.f32.gmra.mxu1 %vm652_vm0, %v634_v23 }
 0x1ae   : > { %v1034_v32 = vpop.f32.mrf.mxu2  ;;  %v1147_v33 = vpop.f32.mrf.mxu3  ;;  %1386 = vst [vmem:[#allocation2 + $0x268] sm:$0xff] %v1258_v31 }
 0x1af   : > { %v1259_v34 = vadd.f32 %v1034_v32, %v534_v28  ;;  %v1260_v35 = vadd.f32 %v1147_v33, %v535_v29  ;;  %v556_v33 = vld [vmem:[#allocation2 + $0x288] sm:$0xff] }
 0x1b1   : > { %1387 = vst [vmem:[#allocation2 + $0x350] sm:$0xff] %v1259_v34  ;;  %v557_v34 = vld [vmem:[#allocation2 + $0x3a8] sm:$0xff] }
 0x1b2   : > { %1388 = vst [vmem:[#allocation2 + $0x188] sm:$0xff] %v1260_v35  ;;  %v811_v39 = vpop.f32.mrf.mxu0  ;;  %v924_v40 = vpop.f32.mrf.mxu1 }
 0x1b3   : > { %2761 = vmatmul.msk.f32.gmra.mxu2 %vm652_vm0, %v635_v36  ;;  %2793 = vmatmul.msk.f32.gmra.mxu3 %vm652_vm0, %v635_v36  ;;  %v1261_v43 = vadd.f32 %v811_v39, %v536_v37  ;;  %v1262_v44 = vadd.f32 %v924_v40, %v537_v38  ;;  %v558_v37 = vld [vmem:[#allocation2 + $0x3c8] sm:$0xff]  ;;  %v559_v38 = vld [vmem:[#allocation2 + $0x160] sm:$0xff] }
 0x1b5   : > { %1389 = vst [vmem:[#allocation2 + $0x1d8] sm:$0xff] %v1261_v43  ;;  %2697 = vmatmul.msk.f32.gmra.mxu0 %vm652_vm0, %v635_v36  ;;  %2729 = vmatmul.msk.f32.gmra.mxu1 %vm652_vm0, %v635_v36 }
 0x1b6   : > { %v1037_v45 = vpop.f32.mrf.mxu2  ;;  %v1150_v46 = vpop.f32.mrf.mxu3  ;;  %1390 = vst [vmem:[#allocation2 + $0x30] sm:$0xff] %v1262_v44 }
 0x1b7   : > { %v1263_v47 = vadd.f32 %v1037_v45, %v538_v41  ;;  %v1264_v48 = vadd.f32 %v1150_v46, %v539_v42  ;;  %v560_v45 = vld [vmem:[#allocation2 + $0x2c8] sm:$0xff]  ;;  %v561_v46 = vld [vmem:[#allocation2 + $0x210] sm:$0xff] }
 0x1b9   : > { %1391 = vst [vmem:[#allocation2 + $0x140] sm:$0xff] %v1263_v47 }
 0x1ba   : > { %1392 = vst [vmem:[#allocation2 + $0x2a8] sm:$0xff] %v1264_v48  ;;  %v814_v51 = vpop.f32.mrf.mxu0  ;;  %v927_v52 = vpop.f32.mrf.mxu1 }
 0x1bb   : > { %v1265_v55 = vadd.f32 %v814_v51, %v540_v49  ;;  %v1266_v56 = vadd.f32 %v927_v52, %v541_v50  ;;  %v562_v49 = vld [vmem:[#allocation2 + $0x3d8] sm:$0xff]  ;;  %v563_v50 = vld [vmem:[#allocation2 + $0x1e8] sm:$0xff] }
 0x1bd   : > { %1393 = vst [vmem:[#allocation2 + $0x130] sm:$0xff] %v1265_v55 }
 0x1be   : > { %v1040_v57 = vpop.f32.mrf.mxu2  ;;  %v1153_v58 = vpop.f32.mrf.mxu3  ;;  %1394 = vst [vmem:[#allocation2 + $0x200] sm:$0xff] %v1266_v56 }
 0x1bf   : > { %v1267_v59 = vadd.f32 %v1040_v57, %v542_v53  ;;  %v1268_v60 = vadd.f32 %v1153_v58, %v543_v54  ;;  %v564_v57 = vld [vmem:[#allocation2 + $0x1b0] sm:$0xff]  ;;  %v565_v58 = vld [vmem:[#allocation2 + $0x1c8] sm:$0xff] }
 0x1c1   : > { %1395 = vst [vmem:[#allocation2 + $0x318] sm:$0xff] %v1267_v59 }
 0x1c2   : > { %1396 = vst [vmem:[#allocation2 + $0x220] sm:$0xff] %v1268_v60  ;;  %v817_v63 = vpop.f32.mrf.mxu0  ;;  %v930_v0 = vpop.f32.mrf.mxu1 }
 0x1c3   : > { %v1269_v3 = vadd.f32 %v817_v63, %v544_v61  ;;  %v1270_v4 = vadd.f32 %v930_v0, %v545_v62  ;;  %v566_v61 = vld [vmem:[#allocation2 + $0x2d0] sm:$0xff] }
 0x1c4   : > { %v567_v62 = vld [vmem:[#allocation2 + $0x1d0] sm:$0xff] }
 0x1c5   : > { %1397 = vst [vmem:[#allocation2 + $0x70] sm:$0xff] %v1269_v3 }
 0x1c6   : > { %v1043_v5 = vpop.f32.mrf.mxu2  ;;  %v1156_v6 = vpop.f32.mrf.mxu3  ;;  %1398 = vst [vmem:[#allocation2 + $0x300] sm:$0xff] %v1270_v4 }
 0x1c7   : > { %v1271_v7 = vadd.f32 %v1043_v5, %v546_v1  ;;  %v1272_v8 = vadd.f32 %v1156_v6, %v547_v2  ;;  %v568_v5 = vld [vmem:[#allocation2 + $0x58] sm:$0xff]  ;;  %v569_v6 = vld [vmem:[#allocation2 + $0x120] sm:$0xff] }
 0x1c9   : > { %1399 = vst [vmem:[#allocation2 + $0xe0] sm:$0xff] %v1271_v7 }
 0x1ca   : > { %1400 = vst [vmem:[#allocation2 + $0x178] sm:$0xff] %v1272_v8  ;;  %v820_v11 = vpop.f32.mrf.mxu0  ;;  %v933_v12 = vpop.f32.mrf.mxu1 }
 0x1cb   : > { %v1273_v15 = vadd.f32 %v820_v11, %v548_v9  ;;  %v1274_v16 = vadd.f32 %v933_v12, %v549_v10  ;;  %v570_v9 = vld [vmem:[#allocation2 + $0x198] sm:$0xff]  ;;  %v571_v10 = vld [vmem:[#allocation2 + $0x2e8] sm:$0xff] }
 0x1cd   : > { %1401 = vst [vmem:[#allocation2 + $0x328] sm:$0xff] %v1273_v15 }
 0x1ce   : > { %v1046_v17 = vpop.f32.mrf.mxu2  ;;  %v1159_v18 = vpop.f32.mrf.mxu3  ;;  %1402 = vst [vmem:[#allocation2 + $0x260] sm:$0xff] %v1274_v16 }
 0x1cf   : > { %v1275_v19 = vadd.f32 %v1046_v17, %v550_v13  ;;  %v1276_v20 = vadd.f32 %v1159_v18, %v551_v14  ;;  %v572_v17 = vld [vmem:[#allocation2 + $0x1f8] sm:$0xff] }
 0x1d0   : > { %v573_v18 = vld [vmem:[#allocation2 + $0x238] sm:$0xff] }
 0x1d1   : > { %1403 = vst [vmem:[#allocation2 + $0x3b8] sm:$0xff] %v1275_v19 }
 0x1d2   : > { %1404 = vst [vmem:[#allocation2 + $0x2b8] sm:$0xff] %v1276_v20  ;;  %v823_v23 = vpop.f32.mrf.mxu0  ;;  %v936_v24 = vpop.f32.mrf.mxu1 }
 0x1d3   : > { %v1277_v27 = vadd.f32 %v823_v23, %v552_v21  ;;  %v1278_v28 = vadd.f32 %v936_v24, %v553_v22  ;;  %v574_v21 = vld [vmem:[#allocation2 + $0x398] sm:$0xff]  ;;  %v575_v22 = vld [vmem:[#allocation2 + $0x390] sm:$0xff] }
 0x1d5   : > { %1405 = vst [vmem:[#allocation2 + $0x248] sm:$0xff] %v1277_v27 }
 0x1d6   : > { %v1049_v29 = vpop.f32.mrf.mxu2  ;;  %v1162_v30 = vpop.f32.mrf.mxu3  ;;  %1406 = vst [vmem:[#allocation2 + $0x40] sm:$0xff] %v1278_v28 }
 0x1d7   : > { %v1279_v31 = vadd.f32 %v1049_v29, %v554_v25  ;;  %v1280_v32 = vadd.f32 %v1162_v30, %v555_v26  ;;  %v576_v29 = vld [vmem:[#allocation2 + $0x1a0] sm:$0xff]  ;;  %v577_v30 = vld [vmem:[#allocation2 + $0xa8] sm:$0xff] }
 0x1d9   : > { %1407 = vst [vmem:[#allocation2 + $0x20] sm:$0xff] %v1279_v31 }
 0x1da   : > { %1408 = vst [vmem:[#allocation2 + $0xe8] sm:$0xff] %v1280_v32  ;;  %v826_v35 = vpop.f32.mrf.mxu0  ;;  %v939_v36 = vpop.f32.mrf.mxu1 }
 0x1db   : > { %v1281_v39 = vadd.f32 %v826_v35, %v556_v33  ;;  %v1282_v40 = vadd.f32 %v939_v36, %v557_v34  ;;  %v578_v33 = vld [vmem:[#allocation2 + $0x258] sm:$0xff] }
 0x1dc   : > { %v579_v34 = vld [vmem:[#allocation2 + $0x2d8] sm:$0xff] }
 0x1dd   : > { %1409 = vst [vmem:[#allocation2 + $0x288] sm:$0xff] %v1281_v39 }
 0x1de   : > { %v1052_v41 = vpop.f32.mrf.mxu2  ;;  %v1165_v42 = vpop.f32.mrf.mxu3  ;;  %1410 = vst [vmem:[#allocation2 + $0x3a8] sm:$0xff] %v1282_v40 }
 0x1df   : > { %v1283_v43 = vadd.f32 %v1052_v41, %v558_v37  ;;  %v1284_v44 = vadd.f32 %v1165_v42, %v559_v38  ;;  %v580_v41 = vld [vmem:[#allocation2 + $0xf0] sm:$0xff]  ;;  %v581_v42 = vld [vmem:[#allocation2 + $0x180] sm:$0xff] }
 0x1e1   : > { %1411 = vst [vmem:[#allocation2 + $0x3c8] sm:$0xff] %v1283_v43 }
 0x1e2   : > { %1412 = vst [vmem:[#allocation2 + $0x160] sm:$0xff] %v1284_v44  ;;  %v829_v47 = vpop.f32.mrf.mxu0  ;;  %v942_v48 = vpop.f32.mrf.mxu1 }
 0x1e3   : > { %v1285_v51 = vadd.f32 %v829_v47, %v560_v45  ;;  %v1286_v52 = vadd.f32 %v942_v48, %v561_v46  ;;  %v582_v45 = vld [vmem:[#allocation2 + $0x170] sm:$0xff] }
 0x1e4   : > { %v583_v46 = vld [vmem:[#allocation2 + $0x3d0] sm:$0xff] }
 0x1e5   : > { %1413 = vst [vmem:[#allocation2 + $0x2c8] sm:$0xff] %v1285_v51 }
 0x1e6   : > { %v1055_v53 = vpop.f32.mrf.mxu2  ;;  %v1168_v54 = vpop.f32.mrf.mxu3  ;;  %1414 = vst [vmem:[#allocation2 + $0x210] sm:$0xff] %v1286_v52 }
 0x1e7   : > { %v1287_v55 = vadd.f32 %v1055_v53, %v562_v49  ;;  %v1288_v56 = vadd.f32 %v1168_v54, %v563_v50  ;;  %v584_v53 = vld [vmem:[#allocation2 + $0x250] sm:$0xff]  ;;  %v585_v54 = vld [vmem:[#allocation2 + $0x378] sm:$0xff] }
 0x1e9   : > { %1415 = vst [vmem:[#allocation2 + $0x3d8] sm:$0xff] %v1287_v55 }
 0x1ea   : > { %1416 = vst [vmem:[#allocation2 + $0x1e8] sm:$0xff] %v1288_v56  ;;  %v832_v59 = vpop.f32.mrf.mxu0  ;;  %v945_v60 = vpop.f32.mrf.mxu1 }
 0x1eb   : > { %v1289_v63 = vadd.f32 %v832_v59, %v564_v57  ;;  %v1290_v0 = vadd.f32 %v945_v60, %v565_v58  ;;  %v586_v57 = vld [vmem:[#allocation2 + $0xb8] sm:$0xff] }
 0x1ec   : > { %v587_v58 = vld [vmem:[#allocation2 + $0x38] sm:$0xff] }
 0x1ed   : > { %1417 = vst [vmem:[#allocation2 + $0x1b0] sm:$0xff] %v1289_v63 }
 0x1ee   : > { %v1058_v1 = vpop.f32.mrf.mxu2  ;;  %v1171_v2 = vpop.f32.mrf.mxu3  ;;  %1418 = vst [vmem:[#allocation2 + $0x1c8] sm:$0xff] %v1290_v0 }
 0x1ef   : > { %v1291_v3 = vadd.f32 %v1058_v1, %v566_v61  ;;  %v1292_v4 = vadd.f32 %v1171_v2, %v567_v62  ;;  %v588_v1 = vld [vmem:[#allocation2 + $0x78] sm:$0xff]  ;;  %v589_v2 = vld [vmem:[#allocation2 + $0x308] sm:$0xff] }
 0x1f1   : > { %1419 = vst [vmem:[#allocation2 + $0x2d0] sm:$0xff] %v1291_v3 }
 0x1f2   : > { %1420 = vst [vmem:[#allocation2 + $0x1d0] sm:$0xff] %v1292_v4  ;;  %v835_v7 = vpop.f32.mrf.mxu0  ;;  %v948_v8 = vpop.f32.mrf.mxu1 }
 0x1f3   : > { %v1293_v11 = vadd.f32 %v835_v7, %v568_v5  ;;  %v1294_v12 = vadd.f32 %v948_v8, %v569_v6  ;;  %v590_v5 = vld [vmem:[#allocation2 + $0x370] sm:$0xff]  ;;  %v591_v6 = vld [vmem:[#allocation2 + $0xc8] sm:$0xff] }
 0x1f5   : > { %1421 = vst [vmem:[#allocation2 + $0x58] sm:$0xff] %v1293_v11 }
 0x1f6   : > { %v1061_v13 = vpop.f32.mrf.mxu2  ;;  %v1174_v14 = vpop.f32.mrf.mxu3  ;;  %1422 = vst [vmem:[#allocation2 + $0x120] sm:$0xff] %v1294_v12 }
 0x1f7   : > { %v1295_v15 = vadd.f32 %v1061_v13, %v570_v9  ;;  %v1296_v16 = vadd.f32 %v1174_v14, %v571_v10  ;;  %v592_v13 = vld [vmem:[#allocation2 + $0x278] sm:$0xff]  ;;  %v593_v14 = vld [vmem:[#allocation2 + $0x360] sm:$0xff] }
 0x1f9   : > { %1423 = vst [vmem:[#allocation2 + $0x198] sm:$0xff] %v1295_v15 }
 0x1fa   : > { %1424 = vst [vmem:[#allocation2 + $0x2e8] sm:$0xff] %v1296_v16  ;;  %v838_v19 = vpop.f32.mrf.mxu0  ;;  %v951_v20 = vpop.f32.mrf.mxu1 }
 0x1fb   : > { %v1297_v23 = vadd.f32 %v838_v19, %v572_v17  ;;  %v1298_v24 = vadd.f32 %v951_v20, %v573_v18  ;;  %v594_v17 = vld [vmem:[#allocation2 + $0x228] sm:$0xff] }
 0x1fc   : > { %v595_v18 = vld [vmem:[#allocation2 + $0x348] sm:$0xff] }
 0x1fd   : > { %1425 = vst [vmem:[#allocation2 + $0x1f8] sm:$0xff] %v1297_v23 }
 0x1fe   : > { %v1064_v25 = vpop.f32.mrf.mxu2  ;;  %v1177_v26 = vpop.f32.mrf.mxu3  ;;  %1426 = vst [vmem:[#allocation2 + $0x238] sm:$0xff] %v1298_v24 }
 0x1ff   : > { %v1299_v27 = vadd.f32 %v1064_v25, %v574_v21  ;;  %v1300_v28 = vadd.f32 %v1177_v26, %v575_v22  ;;  %v596_v25 = vld [vmem:[#allocation2 + $0x148] sm:$0xff]  ;;  %v597_v26 = vld [vmem:[#allocation2 + $0xf8] sm:$0xff] }
 0x201   : > { %1427 = vst [vmem:[#allocation2 + $0x398] sm:$0xff] %v1299_v27 }
 0x202   : > { %1428 = vst [vmem:[#allocation2 + $0x390] sm:$0xff] %v1300_v28  ;;  %v841_v31 = vpop.f32.mrf.mxu0  ;;  %v954_v32 = vpop.f32.mrf.mxu1 }
 0x203   : > { %v1301_v35 = vadd.f32 %v841_v31, %v576_v29  ;;  %v1302_v36 = vadd.f32 %v954_v32, %v577_v30  ;;  %v598_v29 = vld [vmem:[#allocation2 + $0x68] sm:$0xff]  ;;  %v599_v30 = vld [vmem:[#allocation2] sm:$0xff] }
 0x205   : > { %1429 = vst [vmem:[#allocation2 + $0x1a0] sm:$0xff] %v1301_v35 }
 0x206   : > { %v1067_v37 = vpop.f32.mrf.mxu2  ;;  %v1180_v38 = vpop.f32.mrf.mxu3  ;;  %1430 = vst [vmem:[#allocation2 + $0xa8] sm:$0xff] %v1302_v36 }
 0x207   : > { %v1303_v39 = vadd.f32 %v1067_v37, %v578_v33  ;;  %v1304_v40 = vadd.f32 %v1180_v38, %v579_v34  ;;  %v600_v37 = vld [vmem:[#allocation2 + $0x298] sm:$0xff]  ;;  %v601_v38 = vld [vmem:[#allocation2 + $0x270] sm:$0xff] }
 0x209   : > { %1431 = vst [vmem:[#allocation2 + $0x258] sm:$0xff] %v1303_v39 }
 0x20a   : > { %1432 = vst [vmem:[#allocation2 + $0x2d8] sm:$0xff] %v1304_v40  ;;  %v844_v43 = vpop.f32.mrf.mxu0  ;;  %v957_v44 = vpop.f32.mrf.mxu1 }
 0x20b   : > { %v1305_v47 = vadd.f32 %v844_v43, %v580_v41  ;;  %v1306_v48 = vadd.f32 %v957_v44, %v581_v42  ;;  %v602_v41 = vld [vmem:[#allocation2 + $0x310] sm:$0xff] }
 0x20c   : > { %v603_v42 = vld [vmem:[#allocation2 + $0x190] sm:$0xff] }
 0x20d   : > { %1433 = vst [vmem:[#allocation2 + $0xf0] sm:$0xff] %v1305_v47 }
 0x20e   : > { %v1070_v49 = vpop.f32.mrf.mxu2  ;;  %v1183_v50 = vpop.f32.mrf.mxu3  ;;  %1434 = vst [vmem:[#allocation2 + $0x180] sm:$0xff] %v1306_v48 }
 0x20f   : > { %v1307_v51 = vadd.f32 %v1070_v49, %v582_v45  ;;  %v1308_v52 = vadd.f32 %v1183_v50, %v583_v46 }
 0x211   : > { %1435 = vst [vmem:[#allocation2 + $0x170] sm:$0xff] %v1307_v51 }
 0x212   : > { %1436 = vst [vmem:[#allocation2 + $0x3d0] sm:$0xff] %v1308_v52  ;;  %v847_v55 = vpop.f32.mrf.mxu0  ;;  %v960_v56 = vpop.f32.mrf.mxu1 }
 0x213   : > { %v1309_v59 = vadd.f32 %v847_v55, %v584_v53  ;;  %v1310_v60 = vadd.f32 %v960_v56, %v585_v54 }
 0x215   : > { %1437 = vst [vmem:[#allocation2 + $0x250] sm:$0xff] %v1309_v59 }
 0x216   : > { %v1073_v61 = vpop.f32.mrf.mxu2  ;;  %v1186_v62 = vpop.f32.mrf.mxu3  ;;  %1438 = vst [vmem:[#allocation2 + $0x378] sm:$0xff] %v1310_v60 }
 0x217   : > { %v1311_v63 = vadd.f32 %v1073_v61, %v586_v57  ;;  %v1312_v0 = vadd.f32 %v1186_v62, %v587_v58 }
 0x219   : > { %1439 = vst [vmem:[#allocation2 + $0xb8] sm:$0xff] %v1311_v63 }
 0x21a   : > { %1440 = vst [vmem:[#allocation2 + $0x38] sm:$0xff] %v1312_v0  ;;  %v850_v3 = vpop.f32.mrf.mxu0  ;;  %v963_v4 = vpop.f32.mrf.mxu1 }
 0x21b   : > { %v1313_v7 = vadd.f32 %v850_v3, %v588_v1  ;;  %v1314_v8 = vadd.f32 %v963_v4, %v589_v2 }
 0x21d   : > { %1441 = vst [vmem:[#allocation2 + $0x78] sm:$0xff] %v1313_v7 }
 0x21e   : > { %v1076_v9 = vpop.f32.mrf.mxu2  ;;  %v1189_v10 = vpop.f32.mrf.mxu3  ;;  %1442 = vst [vmem:[#allocation2 + $0x308] sm:$0xff] %v1314_v8 }
 0x21f   : > { %v1315_v11 = vadd.f32 %v1076_v9, %v590_v5  ;;  %v1316_v12 = vadd.f32 %v1189_v10, %v591_v6 }
 0x221   : > { %1443 = vst [vmem:[#allocation2 + $0x370] sm:$0xff] %v1315_v11 }
 0x222   : > { %1444 = vst [vmem:[#allocation2 + $0xc8] sm:$0xff] %v1316_v12  ;;  %v853_v15 = vpop.f32.mrf.mxu0  ;;  %v966_v16 = vpop.f32.mrf.mxu1 }
 0x223   : > { %v1317_v19 = vadd.f32 %v853_v15, %v592_v13  ;;  %v1318_v20 = vadd.f32 %v966_v16, %v593_v14 }
 0x225   : > { %1445 = vst [vmem:[#allocation2 + $0x278] sm:$0xff] %v1317_v19 }
 0x226   : > { %v1079_v21 = vpop.f32.mrf.mxu2  ;;  %v1192_v22 = vpop.f32.mrf.mxu3  ;;  %1446 = vst [vmem:[#allocation2 + $0x360] sm:$0xff] %v1318_v20 }
 0x227   : > { %v1319_v23 = vadd.f32 %v1079_v21, %v594_v17  ;;  %v1320_v24 = vadd.f32 %v1192_v22, %v595_v18 }
 0x229   : > { %1447 = vst [vmem:[#allocation2 + $0x228] sm:$0xff] %v1319_v23 }
 0x22a   : > { %1448 = vst [vmem:[#allocation2 + $0x348] sm:$0xff] %v1320_v24  ;;  %v856_v27 = vpop.f32.mrf.mxu0  ;;  %v969_v28 = vpop.f32.mrf.mxu1 }
 0x22b   : > { %v1321_v31 = vadd.f32 %v856_v27, %v596_v25  ;;  %v1322_v32 = vadd.f32 %v969_v28, %v597_v26 }
 0x22d   : > { %1449 = vst [vmem:[#allocation2 + $0x148] sm:$0xff] %v1321_v31 }
 0x22e   : > { %v1082_v33 = vpop.f32.mrf.mxu2  ;;  %v1195_v34 = vpop.f32.mrf.mxu3  ;;  %1450 = vst [vmem:[#allocation2 + $0xf8] sm:$0xff] %v1322_v32 }
 0x22f   : > { %v1323_v35 = vadd.f32 %v1082_v33, %v598_v29  ;;  %v1324_v36 = vadd.f32 %v1195_v34, %v599_v30 }
 0x231   : > { %1451 = vst [vmem:[#allocation2 + $0x68] sm:$0xff] %v1323_v35 }
 0x232   : > { %1452 = vst [vmem:[#allocation2] sm:$0xff] %v1324_v36  ;;  %v859_v39 = vpop.f32.mrf.mxu0  ;;  %v972_v40 = vpop.f32.mrf.mxu1 }
 0x233   : > { %v1325_v43 = vadd.f32 %v859_v39, %v600_v37  ;;  %v1326_v44 = vadd.f32 %v972_v40, %v601_v38 }
 0x235   : > { %1453 = vst [vmem:[#allocation2 + $0x298] sm:$0xff] %v1325_v43 }
 0x236   : > { %v1085_v45 = vpop.f32.mrf.mxu2  ;;  %v1198_v46 = vpop.f32.mrf.mxu3  ;;  %1454 = vst [vmem:[#allocation2 + $0x270] sm:$0xff] %v1326_v44 }
 0x237   : > { %v1327_v47 = vadd.f32 %v1085_v45, %v602_v41  ;;  %v1328_v48 = vadd.f32 %v1198_v46, %v603_v42 }
 0x239   : > { %1455 = vst [vmem:[#allocation2 + $0x310] sm:$0xff] %v1327_v47 }
 0x23a   : > { %1456 = vst [vmem:[#allocation2 + $0x190] sm:$0xff] %v1328_v48 }
 0x23b PF: > { %p1461_p2 = scmp.eq.s32.totalorder %s3095_s12, %s3097_s14  ;;  %p1462_p3 = scmp.eq.s32.totalorder %s3081_s21, %s3095_s12 }
 0x23c   : > { %p1460_p5 = scmp.eq.s32.totalorder %s3081_s21, %s3083_s24 }
 0x23d   : > { %p1463_p6 = pnand %p1462_p3, %p1461_p2 }
 0x23f   : > { %p1464_p7 = pneg %p1463_p6 }
 0x241   : > { %p3457_p9 = pnand %p1464_p7, %p1460_p5 }
 0x243   : > { %p1466_p10 = pneg %p3457_p9 }
 0x245   : > { %p1467_p11 = pnand %p1466_p10, %p340_p1 }
 0x247   : > { %1470 = sbr.rel (%p1467_p11) target bundleno = 717 (0x2cd), region = 52 }
 0x24c   : > { %v1471_v49 = vld [vmem:[#allocation2 + $0x2b0] sm:$0xff]  ;;  %v1473_v51 = vld [vmem:[#allocation2 + $0xd8] sm:$0xff]  ;;  %v1476_v54 = vld [vmem:[#allocation2 + $0x368] sm:$0xff] }
 0x24d   : > { %v1472_v50 = vld [vmem:[#allocation2 + $0x3b0] sm:$0xff]  ;;  %1599 = vst [vmem:[%s3109_s20] sm:$0xff] %v1471_v49  ;;  %v1474_v52 = vld [vmem:[#allocation2 + $0x18] sm:$0xff]  ;;  %v1478_v56 = vld [vmem:[#allocation2 + $0x48] sm:$0xff] }
 0x24e   : > { %1600 = vst [vmem:[%s3109_s20 + $0x8] sm:$0xff] %v1472_v50  ;;  %v1475_v53 = vld [vmem:[#allocation2 + $0x50] sm:$0xff]  ;;  %v1479_v57 = vld [vmem:[#allocation2 + $0x380] sm:$0xff]  ;;  %v1481_v59 = vld [vmem:[#allocation2 + $0x118] sm:$0xff] }
 0x24f   : > { %1601 = vst [vmem:[%s3109_s20 + $0x10] sm:$0xff] %v1473_v51  ;;  %v1477_v55 = vld [vmem:[#allocation2 + $0x330] sm:$0xff]  ;;  %v1482_v60 = vld [vmem:[#allocation2 + $0x98] sm:$0xff]  ;;  %v1483_v61 = vld [vmem:[#allocation2 + $0x320] sm:$0xff] }
 0x250   : > { %1602 = vst [vmem:[%s3109_s20 + $0x18] sm:$0xff] %v1474_v52  ;;  %v1480_v58 = vld [vmem:[#allocation2 + $0x110] sm:$0xff]  ;;  %v1485_v63 = vld [vmem:[#allocation2 + $0x108] sm:$0xff]  ;;  %v1486_v0 = vld [vmem:[#allocation2 + $0x60] sm:$0xff] }
 0x251   : > { %1603 = vst [vmem:[%s3109_s20 + $0x20] sm:$0xff] %v1475_v53  ;;  %v1484_v62 = vld [vmem:[#allocation2 + $0x150] sm:$0xff]  ;;  %v1487_v1 = vld [vmem:[#allocation2 + $0x2e0] sm:$0xff]  ;;  %v1488_v2 = vld [vmem:[#allocation2 + $0x388] sm:$0xff] }
 0x252   : > { %1604 = vst [vmem:[%s3109_s20 + $0x28] sm:$0xff] %v1476_v54  ;;  %v1489_v3 = vld [vmem:[#allocation2 + $0x338] sm:$0xff]  ;;  %v1490_v4 = vld [vmem:[#allocation2 + $0x340] sm:$0xff]  ;;  %v1492_v6 = vld [vmem:[#allocation2 + $0x1a8] sm:$0xff] }
 0x253   : > { %1605 = vst [vmem:[%s3109_s20 + $0x30] sm:$0xff] %v1477_v55  ;;  %v1491_v5 = vld [vmem:[#allocation2 + $0x80] sm:$0xff]  ;;  %v1493_v7 = vld [vmem:[#allocation2 + $0x1b8] sm:$0xff]  ;;  %v1494_v8 = vld [vmem:[#allocation2 + $0x168] sm:$0xff] }
 0x254   : > { %1606 = vst [vmem:[%s3109_s20 + $0x38] sm:$0xff] %v1478_v56  ;;  %v1495_v9 = vld [vmem:[#allocation2 + $0x3e8] sm:$0xff]  ;;  %v1496_v10 = vld [vmem:[#allocation2 + $0x2f8] sm:$0xff]  ;;  %v1497_v11 = vld [vmem:[#allocation2 + $0x290] sm:$0xff] }
 0x255   : > { %1607 = vst [vmem:[%s3109_s20 + $0x40] sm:$0xff] %v1479_v57  ;;  %v1498_v12 = vld [vmem:[#allocation2 + $0x28] sm:$0xff]  ;;  %v1499_v13 = vld [vmem:[#allocation2 + $0x138] sm:$0xff]  ;;  %v1500_v14 = vld [vmem:[#allocation2 + $0xc0] sm:$0xff] }
 0x256   : > { %1608 = vst [vmem:[%s3109_s20 + $0x48] sm:$0xff] %v1480_v58  ;;  %v1501_v15 = vld [vmem:[#allocation2 + $0x1c0] sm:$0xff]  ;;  %v1505_v19 = vld [vmem:[#allocation2 + $0x158] sm:$0xff]  ;;  %v1509_v23 = vld [vmem:[#allocation2 + $0x8] sm:$0xff] }
 0x257   : > { %1609 = vst [vmem:[%s3109_s20 + $0x50] sm:$0xff] %v1481_v59  ;;  %v1502_v16 = vld [vmem:[#allocation2 + $0x280] sm:$0xff]  ;;  %v1507_v21 = vld [vmem:[#allocation2 + $0x218] sm:$0xff]  ;;  %v1510_v24 = vld [vmem:[#allocation2 + $0x128] sm:$0xff] }
 0x258   : > { %1610 = vst [vmem:[%s3109_s20 + $0x58] sm:$0xff] %v1482_v60  ;;  %v1503_v17 = vld [vmem:[#allocation2 + $0x100] sm:$0xff]  ;;  %v1508_v22 = vld [vmem:[#allocation2 + $0x3f8] sm:$0xff]  ;;  %v1512_v26 = vld [vmem:[#allocation2 + $0x3f0] sm:$0xff] }
 0x259   : > { %1611 = vst [vmem:[%s3109_s20 + $0x60] sm:$0xff] %v1483_v61  ;;  %v1504_v18 = vld [vmem:[#allocation2 + $0x3c0] sm:$0xff]  ;;  %v1515_v29 = vld [vmem:[#allocation2 + $0xb0] sm:$0xff]  ;;  %v1523_v37 = vld [vmem:[#allocation2 + $0x208] sm:$0xff] }
 0x25a   : > { %1612 = vst [vmem:[%s3109_s20 + $0x68] sm:$0xff] %v1484_v62  ;;  %v1506_v20 = vld [vmem:[#allocation2 + $0x3e0] sm:$0xff]  ;;  %v1517_v31 = vld [vmem:[#allocation2 + $0x1f0] sm:$0xff]  ;;  %v1525_v39 = vld [vmem:[#allocation2 + $0x88] sm:$0xff] }
 0x25b   : > { %1613 = vst [vmem:[%s3109_s20 + $0x70] sm:$0xff] %v1485_v63  ;;  %v1511_v25 = vld [vmem:[#allocation2 + $0x2a0] sm:$0xff]  ;;  %v1518_v32 = vld [vmem:[#allocation2 + $0x10] sm:$0xff]  ;;  %v1527_v41 = vld [vmem:[#allocation2 + $0x358] sm:$0xff] }
 0x25c   : > { %1614 = vst [vmem:[%s3109_s20 + $0x78] sm:$0xff] %v1486_v0  ;;  %v1513_v27 = vld [vmem:[#allocation2 + $0xa0] sm:$0xff]  ;;  %v1519_v33 = vld [vmem:[#allocation2 + $0x230] sm:$0xff]  ;;  %v1528_v42 = vld [vmem:[#allocation2 + $0x268] sm:$0xff] }
 0x25d   : > { %1615 = vst [vmem:[%s3109_s20 + $0x80] sm:$0xff] %v1487_v1  ;;  %v1514_v28 = vld [vmem:[#allocation2 + $0x2c0] sm:$0xff]  ;;  %v1521_v35 = vld [vmem:[#allocation2 + $0x90] sm:$0xff]  ;;  %v1530_v44 = vld [vmem:[#allocation2 + $0x188] sm:$0xff] }
 0x25e   : > { %1616 = vst [vmem:[%s3109_s20 + $0x88] sm:$0xff] %v1488_v2  ;;  %v1516_v30 = vld [vmem:[#allocation2 + $0x1e0] sm:$0xff]  ;;  %v1524_v38 = vld [vmem:[#allocation2 + $0xd0] sm:$0xff]  ;;  %v1531_v45 = vld [vmem:[#allocation2 + $0x1d8] sm:$0xff] }
 0x25f   : > { %1617 = vst [vmem:[%s3109_s20 + $0x90] sm:$0xff] %v1489_v3  ;;  %v1520_v34 = vld [vmem:[#allocation2 + $0x240] sm:$0xff]  ;;  %v1526_v40 = vld [vmem:[#allocation2 + $0x2f0] sm:$0xff]  ;;  %v1534_v48 = vld [vmem:[#allocation2 + $0x2a8] sm:$0xff] }
 0x260   : > { %1618 = vst [vmem:[%s3109_s20 + $0x98] sm:$0xff] %v1490_v4  ;;  %v1522_v36 = vld [vmem:[#allocation2 + $0x3a0] sm:$0xff]  ;;  %v1529_v43 = vld [vmem:[#allocation2 + $0x350] sm:$0xff]  ;;  %v1537_v51 = vld [vmem:[#allocation2 + $0x318] sm:$0xff] }
 0x261   : > { %1619 = vst [vmem:[%s3109_s20 + $0xa0] sm:$0xff] %v1491_v5  ;;  %v1532_v46 = vld [vmem:[#allocation2 + $0x30] sm:$0xff]  ;;  %v1533_v47 = vld [vmem:[#allocation2 + $0x140] sm:$0xff]  ;;  %v1542_v56 = vld [vmem:[#allocation2 + $0x178] sm:$0xff] }
 0x262   : > { %1620 = vst [vmem:[%s3109_s20 + $0xa8] sm:$0xff] %v1492_v6  ;;  %v1535_v49 = vld [vmem:[#allocation2 + $0x130] sm:$0xff]  ;;  %v1536_v50 = vld [vmem:[#allocation2 + $0x200] sm:$0xff]  ;;  %v1543_v57 = vld [vmem:[#allocation2 + $0x328] sm:$0xff] }
 0x263   : > { %1621 = vst [vmem:[%s3109_s20 + $0xb0] sm:$0xff] %v1493_v7  ;;  %v1538_v52 = vld [vmem:[#allocation2 + $0x220] sm:$0xff]  ;;  %v1539_v53 = vld [vmem:[#allocation2 + $0x70] sm:$0xff]  ;;  %v1545_v59 = vld [vmem:[#allocation2 + $0x3b8] sm:$0xff] }
 0x264   : > { %1622 = vst [vmem:[%s3109_s20 + $0xb8] sm:$0xff] %v1494_v8  ;;  %v1540_v54 = vld [vmem:[#allocation2 + $0x300] sm:$0xff]  ;;  %v1546_v60 = vld [vmem:[#allocation2 + $0x2b8] sm:$0xff]  ;;  %v1547_v61 = vld [vmem:[#allocation2 + $0x248] sm:$0xff] }
 0x265   : > { %1623 = vst [vmem:[%s3109_s20 + $0xc0] sm:$0xff] %v1495_v9  ;;  %v1541_v55 = vld [vmem:[#allocation2 + $0xe0] sm:$0xff]  ;;  %v1550_v0 = vld [vmem:[#allocation2 + $0xe8] sm:$0xff]  ;;  %v1556_v6 = vld [vmem:[#allocation2 + $0x210] sm:$0xff] }
 0x266   : > { %1624 = vst [vmem:[%s3109_s20 + $0xc8] sm:$0xff] %v1496_v10  ;;  %v1544_v58 = vld [vmem:[#allocation2 + $0x260] sm:$0xff]  ;;  %v1551_v1 = vld [vmem:[#allocation2 + $0x288] sm:$0xff]  ;;  %v1557_v7 = vld [vmem:[#allocation2 + $0x3d8] sm:$0xff] }
 0x267   : > { %1625 = vst [vmem:[%s3109_s20 + $0xd0] sm:$0xff] %v1497_v11  ;;  %v1548_v62 = vld [vmem:[#allocation2 + $0x40] sm:$0xff]  ;;  %v1552_v2 = vld [vmem:[#allocation2 + $0x3a8] sm:$0xff]  ;;  %v1559_v9 = vld [vmem:[#allocation2 + $0x1b0] sm:$0xff] }
 0x268   : > { %1626 = vst [vmem:[%s3109_s20 + $0xd8] sm:$0xff] %v1498_v12  ;;  %v1549_v63 = vld [vmem:[#allocation2 + $0x20] sm:$0xff]  ;;  %v1553_v3 = vld [vmem:[#allocation2 + $0x3c8] sm:$0xff]  ;;  %v1561_v11 = vld [vmem:[#allocation2 + $0x2d0] sm:$0xff] }
 0x269   : > { %1627 = vst [vmem:[%s3109_s20 + $0xe0] sm:$0xff] %v1499_v13  ;;  %v1554_v4 = vld [vmem:[#allocation2 + $0x160] sm:$0xff]  ;;  %v1555_v5 = vld [vmem:[#allocation2 + $0x2c8] sm:$0xff]  ;;  %v1562_v12 = vld [vmem:[#allocation2 + $0x1d0] sm:$0xff] }
 0x26a   : > { %1628 = vst [vmem:[%s3109_s20 + $0xe8] sm:$0xff] %v1500_v14  ;;  %v1558_v8 = vld [vmem:[#allocation2 + $0x1e8] sm:$0xff]  ;;  %v1563_v13 = vld [vmem:[#allocation2 + $0x58] sm:$0xff]  ;;  %v1564_v14 = vld [vmem:[#allocation2 + $0x120] sm:$0xff] }
 0x26b   : > { %1629 = vst [vmem:[%s3109_s20 + $0xf0] sm:$0xff] %v1501_v15  ;;  %v1560_v10 = vld [vmem:[#allocation2 + $0x1c8] sm:$0xff]  ;;  %v1565_v15 = vld [vmem:[#allocation2 + $0x198] sm:$0xff] }
 0x26c   : > { %1630 = vst [vmem:[%s3109_s20 + $0xf8] sm:$0xff] %v1502_v16  ;;  %v1566_v16 = vld [vmem:[#allocation2 + $0x2e8] sm:$0xff] }
 0x26d   : > { %1631 = vst [vmem:[%s3109_s20 + $0x100] sm:$0xff] %v1503_v17  ;;  %v1567_v17 = vld [vmem:[#allocation2 + $0x1f8] sm:$0xff] }
 0x26e   : > { %1632 = vst [vmem:[%s3109_s20 + $0x108] sm:$0xff] %v1504_v18  ;;  %v1568_v18 = vld [vmem:[#allocation2 + $0x238] sm:$0xff] }
 0x26f   : > { %1633 = vst [vmem:[%s3109_s20 + $0x110] sm:$0xff] %v1505_v19  ;;  %v1569_v19 = vld [vmem:[#allocation2 + $0x398] sm:$0xff] }
 0x270   : > { %1634 = vst [vmem:[%s3109_s20 + $0x118] sm:$0xff] %v1506_v20  ;;  %v1570_v20 = vld [vmem:[#allocation2 + $0x390] sm:$0xff] }
 0x271   : > { %1635 = vst [vmem:[%s3109_s20 + $0x120] sm:$0xff] %v1507_v21  ;;  %v1571_v21 = vld [vmem:[#allocation2 + $0x1a0] sm:$0xff] }
 0x272   : > { %1636 = vst [vmem:[%s3109_s20 + $0x128] sm:$0xff] %v1508_v22  ;;  %v1572_v22 = vld [vmem:[#allocation2 + $0xa8] sm:$0xff] }
 0x273   : > { %1637 = vst [vmem:[%s3109_s20 + $0x130] sm:$0xff] %v1509_v23  ;;  %v1573_v23 = vld [vmem:[#allocation2 + $0x258] sm:$0xff] }
 0x274   : > { %1638 = vst [vmem:[%s3109_s20 + $0x138] sm:$0xff] %v1510_v24  ;;  %v1574_v24 = vld [vmem:[#allocation2 + $0x2d8] sm:$0xff] }
 0x275   : > { %1639 = vst [vmem:[%s3109_s20 + $0x140] sm:$0xff] %v1511_v25  ;;  %v1575_v25 = vld [vmem:[#allocation2 + $0xf0] sm:$0xff] }
 0x276   : > { %1640 = vst [vmem:[%s3109_s20 + $0x148] sm:$0xff] %v1512_v26  ;;  %v1576_v26 = vld [vmem:[#allocation2 + $0x180] sm:$0xff] }
 0x277   : > { %1641 = vst [vmem:[%s3109_s20 + $0x150] sm:$0xff] %v1513_v27  ;;  %v1577_v27 = vld [vmem:[#allocation2 + $0x170] sm:$0xff] }
 0x278   : > { %1642 = vst [vmem:[%s3109_s20 + $0x158] sm:$0xff] %v1514_v28  ;;  %v1578_v28 = vld [vmem:[#allocation2 + $0x3d0] sm:$0xff] }
 0x279   : > { %1643 = vst [vmem:[%s3109_s20 + $0x160] sm:$0xff] %v1515_v29  ;;  %v1579_v29 = vld [vmem:[#allocation2 + $0x250] sm:$0xff] }
 0x27a   : > { %1644 = vst [vmem:[%s3109_s20 + $0x168] sm:$0xff] %v1516_v30  ;;  %v1580_v30 = vld [vmem:[#allocation2 + $0x378] sm:$0xff] }
 0x27b   : > { %1645 = vst [vmem:[%s3109_s20 + $0x170] sm:$0xff] %v1517_v31  ;;  %v1581_v31 = vld [vmem:[#allocation2 + $0xb8] sm:$0xff] }
 0x27c   : > { %1646 = vst [vmem:[%s3109_s20 + $0x178] sm:$0xff] %v1518_v32  ;;  %v1582_v32 = vld [vmem:[#allocation2 + $0x38] sm:$0xff] }
 0x27d   : > { %1647 = vst [vmem:[%s3109_s20 + $0x180] sm:$0xff] %v1519_v33  ;;  %v1583_v33 = vld [vmem:[#allocation2 + $0x78] sm:$0xff] }
 0x27e   : > { %1648 = vst [vmem:[%s3109_s20 + $0x188] sm:$0xff] %v1520_v34  ;;  %v1584_v34 = vld [vmem:[#allocation2 + $0x308] sm:$0xff] }
 0x27f   : > { %1649 = vst [vmem:[%s3109_s20 + $0x190] sm:$0xff] %v1521_v35  ;;  %v1585_v35 = vld [vmem:[#allocation2 + $0x370] sm:$0xff] }
 0x280   : > { %1650 = vst [vmem:[%s3109_s20 + $0x198] sm:$0xff] %v1522_v36  ;;  %v1586_v36 = vld [vmem:[#allocation2 + $0xc8] sm:$0xff] }
 0x281   : > { %1651 = vst [vmem:[%s3109_s20 + $0x1a0] sm:$0xff] %v1523_v37  ;;  %v1587_v37 = vld [vmem:[#allocation2 + $0x278] sm:$0xff] }
 0x282   : > { %1652 = vst [vmem:[%s3109_s20 + $0x1a8] sm:$0xff] %v1524_v38  ;;  %v1588_v38 = vld [vmem:[#allocation2 + $0x360] sm:$0xff] }
 0x283   : > { %1653 = vst [vmem:[%s3109_s20 + $0x1b0] sm:$0xff] %v1525_v39  ;;  %v1589_v39 = vld [vmem:[#allocation2 + $0x228] sm:$0xff] }
 0x284   : > { %1654 = vst [vmem:[%s3109_s20 + $0x1b8] sm:$0xff] %v1526_v40  ;;  %v1590_v40 = vld [vmem:[#allocation2 + $0x348] sm:$0xff] }
 0x285   : > { %1655 = vst [vmem:[%s3109_s20 + $0x1c0] sm:$0xff] %v1527_v41  ;;  %v1591_v41 = vld [vmem:[#allocation2 + $0x148] sm:$0xff] }
 0x286   : > { %1656 = vst [vmem:[%s3109_s20 + $0x1c8] sm:$0xff] %v1528_v42  ;;  %v1592_v42 = vld [vmem:[#allocation2 + $0xf8] sm:$0xff] }
 0x287   : > { %1657 = vst [vmem:[%s3109_s20 + $0x1d0] sm:$0xff] %v1529_v43  ;;  %v1593_v43 = vld [vmem:[#allocation2 + $0x68] sm:$0xff] }
 0x288   : > { %1658 = vst [vmem:[%s3109_s20 + $0x1d8] sm:$0xff] %v1530_v44  ;;  %v1594_v44 = vld [vmem:[#allocation2] sm:$0xff] }
 0x289   : > { %1659 = vst [vmem:[%s3109_s20 + $0x1e0] sm:$0xff] %v1531_v45  ;;  %v1595_v45 = vld [vmem:[#allocation2 + $0x298] sm:$0xff] }
 0x28a   : > { %1660 = vst [vmem:[%s3109_s20 + $0x1e8] sm:$0xff] %v1532_v46  ;;  %v1596_v46 = vld [vmem:[#allocation2 + $0x270] sm:$0xff] }
 0x28b   : > { %1661 = vst [vmem:[%s3109_s20 + $0x1f0] sm:$0xff] %v1533_v47  ;;  %v1597_v47 = vld [vmem:[#allocation2 + $0x310] sm:$0xff] }
 0x28c   : > { %1662 = vst [vmem:[%s3109_s20 + $0x1f8] sm:$0xff] %v1534_v48  ;;  %v1598_v48 = vld [vmem:[#allocation2 + $0x190] sm:$0xff] }
 0x28d   : > { %1663 = vst [vmem:[%s3109_s20 + $0x200] sm:$0xff] %v1535_v49 }
 0x28e   : > { %1664 = vst [vmem:[%s3109_s20 + $0x208] sm:$0xff] %v1536_v50 }
 0x28f   : > { %1665 = vst [vmem:[%s3109_s20 + $0x210] sm:$0xff] %v1537_v51 }
 0x290   : > { %1666 = vst [vmem:[%s3109_s20 + $0x218] sm:$0xff] %v1538_v52 }
 0x291   : > { %1667 = vst [vmem:[%s3109_s20 + $0x220] sm:$0xff] %v1539_v53 }
 0x292   : > { %1668 = vst [vmem:[%s3109_s20 + $0x228] sm:$0xff] %v1540_v54 }
 0x293   : > { %1669 = vst [vmem:[%s3109_s20 + $0x230] sm:$0xff] %v1541_v55 }
 0x294   : > { %1670 = vst [vmem:[%s3109_s20 + $0x238] sm:$0xff] %v1542_v56 }
 0x295   : > { %1671 = vst [vmem:[%s3109_s20 + $0x240] sm:$0xff] %v1543_v57 }
 0x296   : > { %1672 = vst [vmem:[%s3109_s20 + $0x248] sm:$0xff] %v1544_v58 }
 0x297   : > { %1673 = vst [vmem:[%s3109_s20 + $0x250] sm:$0xff] %v1545_v59 }
 0x298   : > { %1674 = vst [vmem:[%s3109_s20 + $0x258] sm:$0xff] %v1546_v60 }
 0x299   : > { %1675 = vst [vmem:[%s3109_s20 + $0x260] sm:$0xff] %v1547_v61 }
 0x29a   : > { %1676 = vst [vmem:[%s3109_s20 + $0x268] sm:$0xff] %v1548_v62 }
 0x29b   : > { %1677 = vst [vmem:[%s3109_s20 + $0x270] sm:$0xff] %v1549_v63 }
 0x29c   : > { %1678 = vst [vmem:[%s3109_s20 + $0x278] sm:$0xff] %v1550_v0 }
 0x29d   : > { %1679 = vst [vmem:[%s3109_s20 + $0x280] sm:$0xff] %v1551_v1 }
 0x29e   : > { %1680 = vst [vmem:[%s3109_s20 + $0x288] sm:$0xff] %v1552_v2 }
 0x29f   : > { %1681 = vst [vmem:[%s3109_s20 + $0x290] sm:$0xff] %v1553_v3 }
 0x2a0   : > { %1682 = vst [vmem:[%s3109_s20 + $0x298] sm:$0xff] %v1554_v4 }
 0x2a1   : > { %1683 = vst [vmem:[%s3109_s20 + $0x2a0] sm:$0xff] %v1555_v5 }
 0x2a2   : > { %1684 = vst [vmem:[%s3109_s20 + $0x2a8] sm:$0xff] %v1556_v6 }
 0x2a3   : > { %1685 = vst [vmem:[%s3109_s20 + $0x2b0] sm:$0xff] %v1557_v7 }
 0x2a4   : > { %1686 = vst [vmem:[%s3109_s20 + $0x2b8] sm:$0xff] %v1558_v8 }
 0x2a5   : > { %1687 = vst [vmem:[%s3109_s20 + $0x2c0] sm:$0xff] %v1559_v9 }
 0x2a6   : > { %1688 = vst [vmem:[%s3109_s20 + $0x2c8] sm:$0xff] %v1560_v10 }
 0x2a7   : > { %1689 = vst [vmem:[%s3109_s20 + $0x2d0] sm:$0xff] %v1561_v11 }
 0x2a8   : > { %1690 = vst [vmem:[%s3109_s20 + $0x2d8] sm:$0xff] %v1562_v12 }
 0x2a9   : > { %1691 = vst [vmem:[%s3109_s20 + $0x2e0] sm:$0xff] %v1563_v13 }
 0x2aa   : > { %1692 = vst [vmem:[%s3109_s20 + $0x2e8] sm:$0xff] %v1564_v14 }
 0x2ab   : > { %1693 = vst [vmem:[%s3109_s20 + $0x2f0] sm:$0xff] %v1565_v15 }
 0x2ac   : > { %1694 = vst [vmem:[%s3109_s20 + $0x2f8] sm:$0xff] %v1566_v16 }
 0x2ad   : > { %1695 = vst [vmem:[%s3109_s20 + $0x300] sm:$0xff] %v1567_v17 }
 0x2ae   : > { %1696 = vst [vmem:[%s3109_s20 + $0x308] sm:$0xff] %v1568_v18 }
 0x2af   : > { %1697 = vst [vmem:[%s3109_s20 + $0x310] sm:$0xff] %v1569_v19 }
 0x2b0   : > { %1698 = vst [vmem:[%s3109_s20 + $0x318] sm:$0xff] %v1570_v20 }
 0x2b1   : > { %1699 = vst [vmem:[%s3109_s20 + $0x320] sm:$0xff] %v1571_v21 }
 0x2b2   : > { %1700 = vst [vmem:[%s3109_s20 + $0x328] sm:$0xff] %v1572_v22 }
 0x2b3   : > { %1701 = vst [vmem:[%s3109_s20 + $0x330] sm:$0xff] %v1573_v23 }
 0x2b4   : > { %1702 = vst [vmem:[%s3109_s20 + $0x338] sm:$0xff] %v1574_v24 }
 0x2b5   : > { %1703 = vst [vmem:[%s3109_s20 + $0x340] sm:$0xff] %v1575_v25 }
 0x2b6   : > { %1704 = vst [vmem:[%s3109_s20 + $0x348] sm:$0xff] %v1576_v26 }
 0x2b7   : > { %1705 = vst [vmem:[%s3109_s20 + $0x350] sm:$0xff] %v1577_v27 }
 0x2b8   : > { %1706 = vst [vmem:[%s3109_s20 + $0x358] sm:$0xff] %v1578_v28 }
 0x2b9   : > { %1707 = vst [vmem:[%s3109_s20 + $0x360] sm:$0xff] %v1579_v29 }
 0x2ba   : > { %1708 = vst [vmem:[%s3109_s20 + $0x368] sm:$0xff] %v1580_v30 }
 0x2bb   : > { %1709 = vst [vmem:[%s3109_s20 + $0x370] sm:$0xff] %v1581_v31 }
 0x2bc   : > { %1710 = vst [vmem:[%s3109_s20 + $0x378] sm:$0xff] %v1582_v32 }
 0x2bd   : > { %1711 = vst [vmem:[%s3109_s20 + $0x380] sm:$0xff] %v1583_v33 }
 0x2be   : > { %1712 = vst [vmem:[%s3109_s20 + $0x388] sm:$0xff] %v1584_v34 }
 0x2bf   : > { %1713 = vst [vmem:[%s3109_s20 + $0x390] sm:$0xff] %v1585_v35 }
 0x2c0   : > { %1714 = vst [vmem:[%s3109_s20 + $0x398] sm:$0xff] %v1586_v36 }
 0x2c1   : > { %1715 = vst [vmem:[%s3109_s20 + $0x3a0] sm:$0xff] %v1587_v37 }
 0x2c2   : > { %1716 = vst [vmem:[%s3109_s20 + $0x3a8] sm:$0xff] %v1588_v38 }
 0x2c3   : > { %1717 = vst [vmem:[%s3109_s20 + $0x3b0] sm:$0xff] %v1589_v39 }
 0x2c4   : > { %1718 = vst [vmem:[%s3109_s20 + $0x3b8] sm:$0xff] %v1590_v40 }
 0x2c5   : > { %1719 = vst [vmem:[%s3109_s20 + $0x3c0] sm:$0xff] %v1591_v41 }
 0x2c6   : > { %1720 = vst [vmem:[%s3109_s20 + $0x3c8] sm:$0xff] %v1592_v42 }
 0x2c7   : > { %1721 = vst [vmem:[%s3109_s20 + $0x3d0] sm:$0xff] %v1593_v43 }
 0x2c8   : > { %1722 = vst [vmem:[%s3109_s20 + $0x3d8] sm:$0xff] %v1594_v44 }
 0x2c9   : > { %1723 = vst [vmem:[%s3109_s20 + $0x3e0] sm:$0xff] %v1595_v45 }
 0x2ca   : > { %1724 = vst [vmem:[%s3109_s20 + $0x3e8] sm:$0xff] %v1596_v46 }
 0x2cb   : > { %1725 = vst [vmem:[%s3109_s20 + $0x3f0] sm:$0xff] %v1597_v47 }
 0x2cc   : > { %1726 = vst [vmem:[%s3109_s20 + $0x3f8] sm:$0xff] %v1598_v48 }
 0x2cd PF: > { %p1728_p12 = pnand %p3457_p9, %p340_p1 }
 0x2cf   : > { %1731 = sbr.rel (%p1728_p12) target bundleno = 959 (0x3bf), region = 56 }
 0x2d4   : > { %v1736_v49 = vld [vmem:[%s3088_s27 + $0x20] sm:$0xff]  ;;  %v1734_v50 = vld [vmem:[%s3088_s27 + $0x10] sm:$0xff]  ;;  %v2976_v52 = vmov 0   ;;  %v1737_v53 = vld [vmem:[%s3088_s27 + $0x28] sm:$0xff] }
 0x2d5   : > { %v1732_v51 = vld [vmem:[%s3088_s27] sm:$0xff]  ;;  %2866 = vset.pattern.permute.xlu2 %v2976_v52  ;;  %2865 = vset.pattern.permute.xlu1 %v2976_v52  ;;  %v1735_v54 = vld [vmem:[%s3088_s27 + $0x18] sm:$0xff]  ;;  %v1733_v55 = vld [vmem:[%s3088_s27 + $0x8] sm:$0xff] }
 0x2d6   : > { %2864 = vset.pattern.permute.xlu0 %v2976_v52  ;;  %1778 = vperm.xlu2 %2866, %v1736_v49   ;;  %v1740_v56 = vld [vmem:[%s3088_s27 + $0x40] sm:$0xff]  ;;  %v1739_v57 = vld [vmem:[%s3088_s27 + $0x38] sm:$0xff]  ;;  %v1738_v58 = vld [vmem:[%s3088_s27 + $0x30] sm:$0xff] }
 0x2d7   : > { %1772 = vperm.xlu1 %2865, %v1734_v50   ;;  %1766 = vperm.xlu0 %2864, %v1732_v51   ;;  %v1743_v59 = vld [vmem:[%s3088_s27 + $0x58] sm:$0xff]  ;;  %v1742_v60 = vld [vmem:[%s3088_s27 + $0x50] sm:$0xff]  ;;  %v1741_v61 = vld [vmem:[%s3088_s27 + $0x48] sm:$0xff] }
 0x2d8   : > { %v1746_v62 = vld [vmem:[%s3088_s27 + $0x70] sm:$0xff]  ;;  %v1745_v63 = vld [vmem:[%s3088_s27 + $0x68] sm:$0xff]  ;;  %v1744_v0 = vld [vmem:[%s3088_s27 + $0x60] sm:$0xff] }
 0x2d9   : > { %v1749_v1 = vld [vmem:[%s3088_s27 + $0x88] sm:$0xff]  ;;  %v1748_v2 = vld [vmem:[%s3088_s27 + $0x80] sm:$0xff]  ;;  %v1747_v3 = vld [vmem:[%s3088_s27 + $0x78] sm:$0xff] }
 0x2da   : > { %v1752_v4 = vld [vmem:[%s3088_s27 + $0xa0] sm:$0xff]  ;;  %v1751_v5 = vld [vmem:[%s3088_s27 + $0x98] sm:$0xff]  ;;  %v1750_v6 = vld [vmem:[%s3088_s27 + $0x90] sm:$0xff] }
 0x2db   : > { %v1755_v7 = vld [vmem:[%s3088_s27 + $0xb8] sm:$0xff]  ;;  %v1754_v8 = vld [vmem:[%s3088_s27 + $0xb0] sm:$0xff]  ;;  %v1753_v9 = vld [vmem:[%s3088_s27 + $0xa8] sm:$0xff] }
 0x2dc   : > { %v1758_v10 = vld [vmem:[%s3088_s27 + $0xd0] sm:$0xff]  ;;  %v1757_v11 = vld [vmem:[%s3088_s27 + $0xc8] sm:$0xff]  ;;  %v1756_v12 = vld [vmem:[%s3088_s27 + $0xc0] sm:$0xff] }
 0x2dd   : > { %v1761_v13 = vld [vmem:[%s3088_s27 + $0xe8] sm:$0xff]  ;;  %v1760_v14 = vld [vmem:[%s3088_s27 + $0xe0] sm:$0xff]  ;;  %v1759_v15 = vld [vmem:[%s3088_s27 + $0xd8] sm:$0xff] }
 0x2de   : > { %1781 = vperm.xlu2 %2866, %v1737_v53   ;;  %v1763_v16 = vld [vmem:[%s3088_s27 + $0xf8] sm:$0xff]  ;;  %v1762_v17 = vld [vmem:[%s3088_s27 + $0xf0] sm:$0xff]  ;;  %v1764_v18 = vld [vmem:[%s4215_s3] sm:$0xf] }
 0x2df   : > { %1775 = vperm.xlu1 %2865, %v1735_v54   ;;  %1769 = vperm.xlu0 %2864, %v1733_v55   ;;  %v2009_v19 = vld [vmem:[#allocation2 + $0x2e0] sm:$0xff]  ;;  %v3634_v20 = vperm.slane %v1764_v18, 0  ;;  %v3636_v21 = vperm.slane %v1764_v18, 1  ;;  %v3638_v22 = vperm.slane %v1764_v18, 2  ;;  %v3640_v23 = vperm.slane %v1764_v18, 3  ;;  %v2010_v24 = vld [vmem:[#allocation2 + $0x388] sm:$0xff] }
 0x2e0   : > { %v2011_v25 = vld [vmem:[#allocation2 + $0x338] sm:$0xff]  ;;  %v2012_v26 = vld [vmem:[#allocation2 + $0x340] sm:$0xff]  ;;  %v2014_v33 = vld [vmem:[#allocation2 + $0x1a8] sm:$0xff] }
 0x2e1   : > { %v2013_v32 = vld [vmem:[#allocation2 + $0x80] sm:$0xff]  ;;  %v2015_v34 = vld [vmem:[#allocation2 + $0x1b8] sm:$0xff]  ;;  %v2016_v35 = vld [vmem:[#allocation2 + $0x168] sm:$0xff] }
 0x2e2   : > { %v2025_v41 = vld [vmem:[#allocation2 + $0x100] sm:$0xff]  ;;  %v2027_v43 = vld [vmem:[#allocation2 + $0x158] sm:$0xff]  ;;  %v2037_v50 = vld [vmem:[#allocation2 + $0xb0] sm:$0xff] }
 0x2e3   : > { %v2026_v42 = vld [vmem:[#allocation2 + $0x3c0] sm:$0xff]  ;;  %v2039_v52 = vld [vmem:[#allocation2 + $0x1f0] sm:$0xff]  ;;  %v2052_v18 = vld [vmem:[#allocation2 + $0x188] sm:$0xff] }
 0x2e4   : > { %v2028_v44 = vld [vmem:[#allocation2 + $0x3e0] sm:$0xff]  ;;  %v2040_v53 = vld [vmem:[#allocation2 + $0x10] sm:$0xff] }
 0x2e5   : > { %v2038_v51 = vld [vmem:[#allocation2 + $0x1e0] sm:$0xff] }
 0x2e6   : > { %1790 = vperm.xlu2 %2866, %v1740_v56   ;;  %v2001_v55 = vld [vmem:[#allocation2 + $0x380] sm:$0xff] }
 0x2e7   : > { %1787 = vperm.xlu1 %2865, %v1739_v57   ;;  %1784 = vperm.xlu0 %2864, %v1738_v58  }
 0x2ee   : > { %1799 = vperm.xlu2 %2866, %v1743_v59  }
 0x2ef   : > { %1796 = vperm.xlu1 %2865, %v1742_v60   ;;  %1793 = vperm.xlu0 %2864, %v1741_v61   ;;  %v2002_v60 = vld [vmem:[#allocation2 + $0x110] sm:$0xff] }
 0x2f6   : > { %1808 = vperm.xlu2 %2866, %v1746_v62  }
 0x2f7   : > { %1805 = vperm.xlu1 %2865, %v1745_v63   ;;  %1802 = vperm.xlu0 %2864, %v1744_v0   ;;  %v2003_v63 = vld [vmem:[#allocation2 + $0x118] sm:$0xff] }
 0x2f8   : > { %v2004_v0 = vld [vmem:[#allocation2 + $0x98] sm:$0xff] }
 0x2fe   : > { %1817 = vperm.xlu2 %2866, %v1749_v1  }
 0x2ff   : > { %1814 = vperm.xlu1 %2865, %v1748_v2   ;;  %1811 = vperm.xlu0 %2864, %v1747_v3   ;;  %v1993_v3 = vld [vmem:[#allocation2 + $0x2b0] sm:$0xff] }
 0x306   : > { %1826 = vperm.xlu2 %2866, %v1752_v4  }
 0x307   : > { %1823 = vperm.xlu1 %2865, %v1751_v5   ;;  %1820 = vperm.xlu0 %2864, %v1750_v6   ;;  %v1994_v5 = vld [vmem:[#allocation2 + $0x3b0] sm:$0xff] }
 0x30e   : > { %1835 = vperm.xlu2 %2866, %v1755_v7   ;;  %v1995_v7 = vld [vmem:[#allocation2 + $0xd8] sm:$0xff] }
 0x30f   : > { %1832 = vperm.xlu1 %2865, %v1754_v8   ;;  %1829 = vperm.xlu0 %2864, %v1753_v9   ;;  %v1996_v8 = vld [vmem:[#allocation2 + $0x18] sm:$0xff] }
 0x316   : > { %1844 = vperm.xlu2 %2866, %v1758_v10  }
 0x317   : > { %1841 = vperm.xlu1 %2865, %v1757_v11   ;;  %1838 = vperm.xlu0 %2864, %v1756_v12   ;;  %v2049_v12 = vld [vmem:[#allocation2 + $0x358] sm:$0xff] }
 0x31e   : > { %1853 = vperm.xlu2 %2866, %v1761_v13  }
 0x31f   : > { %1850 = vperm.xlu1 %2865, %v1760_v14   ;;  %1847 = vperm.xlu0 %2864, %v1759_v15   ;;  %v2050_v14 = vld [vmem:[#allocation2 + $0x268] sm:$0xff] }
 0x327   : > { %1859 = vperm.xlu1 %2865, %v1763_v16   ;;  %1856 = vperm.xlu0 %2864, %v1762_v17   ;;  %v2051_v17 = vld [vmem:[#allocation2 + $0x350] sm:$0xff] }
 0x330   : > { %v1779_v27 = vpop.permute.xlu2 %1778 }
 0x331   : > { %vm1881_vm1 = vcmp.eq.s32.totalorder %v1779_v27, %v3634_v20  ;;  %vm1882_vm2 = vcmp.eq.s32.totalorder %v1779_v27, %v3636_v21  ;;  %vm1883_vm3 = vcmp.eq.s32.totalorder %v1779_v27, %v3638_v22  ;;  %vm1884_vm4 = vcmp.eq.s32.totalorder %v1779_v27, %v3640_v23  ;;  %v2006_v27 = vld [vmem:[#allocation2 + $0x150] sm:$0xff] }
 0x332   : > { %v2137_v28 = vsel %vm1881_vm1, %v2009_v19, 0.0  ;;  %v2138_v29 = vsel %vm1882_vm2, %v2010_v24, 0.0  ;;  %v2139_v30 = vsel %vm1883_vm3, %v2011_v25, 0.0  ;;  %v2140_v31 = vsel %vm1884_vm4, %v2012_v26, 0.0  ;;  %v2005_v25 = vld [vmem:[#allocation2 + $0x320] sm:$0xff] }
 0x333   : > { %2265 = vst [vmem:[%s3109_s20 + $0x80] sm:$0xff] %v2137_v28 }
 0x334   : > { %2266 = vst [vmem:[%s3109_s20 + $0x88] sm:$0xff] %v2138_v29 }
 0x335   : > { %2267 = vst [vmem:[%s3109_s20 + $0x90] sm:$0xff] %v2139_v30  ;;  %v2007_v30 = vld [vmem:[#allocation2 + $0x108] sm:$0xff] }
 0x336   : > { %2268 = vst [vmem:[%s3109_s20 + $0x98] sm:$0xff] %v2140_v31  ;;  %v2008_v31 = vld [vmem:[#allocation2 + $0x60] sm:$0xff] }
 0x338   : > { %v1782_v36 = vpop.permute.xlu2 %1781 }
 0x339   : > { %vm1885_vm5 = vcmp.eq.s32.totalorder %v1782_v36, %v3634_v20  ;;  %vm1886_vm6 = vcmp.eq.s32.totalorder %v1782_v36, %v3636_v21  ;;  %vm1887_vm7 = vcmp.eq.s32.totalorder %v1782_v36, %v3638_v22  ;;  %vm1888_vm8 = vcmp.eq.s32.totalorder %v1782_v36, %v3640_v23  ;;  %v1998_v36 = vld [vmem:[#allocation2 + $0x368] sm:$0xff] }
 0x33a   : > { %v2141_v37 = vsel %vm1885_vm5, %v2013_v32, 0.0  ;;  %v2142_v38 = vsel %vm1886_vm6, %v2014_v33, 0.0  ;;  %v2143_v39 = vsel %vm1887_vm7, %v2015_v34, 0.0  ;;  %v2144_v40 = vsel %vm1888_vm8, %v2016_v35, 0.0  ;;  %v1997_v34 = vld [vmem:[#allocation2 + $0x50] sm:$0xff] }
 0x33b   : > { %2269 = vst [vmem:[%s3109_s20 + $0xa0] sm:$0xff] %v2141_v37 }
 0x33c   : > { %2270 = vst [vmem:[%s3109_s20 + $0xa8] sm:$0xff] %v2142_v38 }
 0x33d   : > { %2271 = vst [vmem:[%s3109_s20 + $0xb0] sm:$0xff] %v2143_v39  ;;  %v1999_v39 = vld [vmem:[#allocation2 + $0x330] sm:$0xff] }
 0x33e   : > { %2272 = vst [vmem:[%s3109_s20 + $0xb8] sm:$0xff] %v2144_v40  ;;  %v2000_v40 = vld [vmem:[#allocation2 + $0x48] sm:$0xff] }
 0x340   : > { %v1791_v45 = vpop.permute.xlu2 %1790 }
 0x341   : > { %vm1897_vm9 = vcmp.eq.s32.totalorder %v1791_v45, %v3634_v20  ;;  %vm1898_vm10 = vcmp.eq.s32.totalorder %v1791_v45, %v3636_v21  ;;  %vm1899_vm11 = vcmp.eq.s32.totalorder %v1791_v45, %v3638_v22  ;;  %vm1900_vm12 = vcmp.eq.s32.totalorder %v1791_v45, %v3640_v23  ;;  %v2062_v45 = vld [vmem:[#allocation2 + $0x300] sm:$0xff] }
 0x342   : > { %v2153_v46 = vsel %vm1897_vm9, %v2025_v41, 0.0  ;;  %v2154_v47 = vsel %vm1898_vm10, %v2026_v42, 0.0  ;;  %v2155_v48 = vsel %vm1899_vm11, %v2027_v43, 0.0  ;;  %v2156_v49 = vsel %vm1900_vm12, %v2028_v44, 0.0  ;;  %v2061_v43 = vld [vmem:[#allocation2 + $0x70] sm:$0xff] }
 0x343   : > { %2281 = vst [vmem:[%s3109_s20 + $0x100] sm:$0xff] %v2153_v46 }
 0x344   : > { %2282 = vst [vmem:[%s3109_s20 + $0x108] sm:$0xff] %v2154_v47 }
 0x345   : > { %2283 = vst [vmem:[%s3109_s20 + $0x110] sm:$0xff] %v2155_v48  ;;  %v2063_v48 = vld [vmem:[#allocation2 + $0xe0] sm:$0xff] }
 0x346   : > { %2284 = vst [vmem:[%s3109_s20 + $0x118] sm:$0xff] %v2156_v49  ;;  %v2064_v49 = vld [vmem:[#allocation2 + $0x178] sm:$0xff] }
 0x348   : > { %v1800_v54 = vpop.permute.xlu2 %1799 }
 0x349   : > { %vm1909_vm13 = vcmp.eq.s32.totalorder %v1800_v54, %v3634_v20  ;;  %vm1910_vm14 = vcmp.eq.s32.totalorder %v1800_v54, %v3636_v21  ;;  %vm1911_vm15 = vcmp.eq.s32.totalorder %v1800_v54, %v3638_v22  ;;  %vm1912_vm0 = vcmp.eq.s32.totalorder %v1800_v54, %v3640_v23  ;;  %v1773_v56 = vpop.permute.xlu1 %1772  ;;  %v1767_v61 = vpop.permute.xlu0 %1766  ;;  %v2022_v54 = vld [vmem:[#allocation2 + $0xc0] sm:$0xff] }
 0x34a   : > { %v2165_v57 = vsel %vm1909_vm13, %v2037_v50, 0.0  ;;  %v2166_v58 = vsel %vm1910_vm14, %v2038_v51, 0.0  ;;  %v2167_v59 = vsel %vm1911_vm15, %v2039_v52, 0.0  ;;  %v2168_v62 = vsel %vm1912_vm0, %v2040_v53, 0.0  ;;  %v2021_v52 = vld [vmem:[#allocation2 + $0x138] sm:$0xff] }
 0x34b   : > { %2293 = vst [vmem:[%s3109_s20 + $0x160] sm:$0xff] %v2165_v57  ;;  %vm1873_vm1 = vcmp.eq.s32.totalorder %v1773_v56, %v3634_v20  ;;  %vm1874_vm2 = vcmp.eq.s32.totalorder %v1773_v56, %v3636_v21  ;;  %vm1875_vm3 = vcmp.eq.s32.totalorder %v1773_v56, %v3638_v22  ;;  %vm1876_vm4 = vcmp.eq.s32.totalorder %v1773_v56, %v3640_v23  ;;  %v2023_v57 = vld [vmem:[#allocation2 + $0x1c0] sm:$0xff] }
 0x34c   : > { %2294 = vst [vmem:[%s3109_s20 + $0x168] sm:$0xff] %v2166_v58  ;;  %v2129_v1 = vsel %vm1873_vm1, %v2001_v55, 0.0  ;;  %v2130_v2 = vsel %vm1874_vm2, %v2002_v60, 0.0  ;;  %vm1865_vm5 = vcmp.eq.s32.totalorder %v1767_v61, %v3634_v20  ;;  %v2131_v4 = vsel %vm1875_vm3, %v2003_v63, 0.0  ;;  %v2024_v58 = vld [vmem:[#allocation2 + $0x280] sm:$0xff]  ;;  %v2018_v63 = vld [vmem:[#allocation2 + $0x2f8] sm:$0xff] }
 0x34d   : > { %2295 = vst [vmem:[%s3109_s20 + $0x170] sm:$0xff] %v2167_v59  ;;  %vm1866_vm6 = vcmp.eq.s32.totalorder %v1767_v61, %v3636_v21  ;;  %v2132_v6 = vsel %vm1876_vm4, %v2004_v0, 0.0  ;;  %vm1867_vm7 = vcmp.eq.s32.totalorder %v1767_v61, %v3638_v22  ;;  %vm1868_vm8 = vcmp.eq.s32.totalorder %v1767_v61, %v3640_v23  ;;  %v2017_v61 = vld [vmem:[#allocation2 + $0x3e8] sm:$0xff] }
 0x34e   : > { %2296 = vst [vmem:[%s3109_s20 + $0x178] sm:$0xff] %v2168_v62  ;;  %v2121_v9 = vsel %vm1865_vm5, %v1993_v3, 0.0  ;;  %v2122_v11 = vsel %vm1866_vm6, %v1994_v5, 0.0  ;;  %v2123_v13 = vsel %vm1867_vm7, %v1995_v7, 0.0  ;;  %v2124_v16 = vsel %vm1868_vm8, %v1996_v8, 0.0  ;;  %v2020_v3 = vld [vmem:[#allocation2 + $0x28] sm:$0xff] }
 0x34f   : > { %2257 = vst [vmem:[%s3109_s20 + $0x40] sm:$0xff] %v2129_v1  ;;  %v2073_v7 = vld [vmem:[#allocation2 + $0x288] sm:$0xff] }
 0x350   : > { %2258 = vst [vmem:[%s3109_s20 + $0x48] sm:$0xff] %v2130_v2  ;;  %v1809_v10 = vpop.permute.xlu2 %1808  ;;  %v2019_v2 = vld [vmem:[#allocation2 + $0x290] sm:$0xff] }
 0x351   : > { %2259 = vst [vmem:[%s3109_s20 + $0x50] sm:$0xff] %v2131_v4  ;;  %vm1921_vm9 = vcmp.eq.s32.totalorder %v1809_v10, %v3634_v20  ;;  %vm1922_vm10 = vcmp.eq.s32.totalorder %v1809_v10, %v3636_v21  ;;  %v1776_v15 = vpop.permute.xlu1 %1775  ;;  %vm1923_vm11 = vcmp.eq.s32.totalorder %v1809_v10, %v3638_v22  ;;  %vm1924_vm12 = vcmp.eq.s32.totalorder %v1809_v10, %v3640_v23  ;;  %v1770_v28 = vpop.permute.xlu0 %1769 }
 0x352   : > { %2260 = vst [vmem:[%s3109_s20 + $0x58] sm:$0xff] %v2132_v6  ;;  %v2177_v19 = vsel %vm1921_vm9, %v2049_v12, 0.0  ;;  %v2178_v24 = vsel %vm1922_vm10, %v2050_v14, 0.0  ;;  %vm1877_vm13 = vcmp.eq.s32.totalorder %v1776_v15, %v3634_v20  ;;  %v2179_v26 = vsel %vm1923_vm11, %v2051_v17, 0.0  ;;  %v2076_v12 = vld [vmem:[#allocation2 + $0x160] sm:$0xff] }
 0x353   : > { %2249 = vst [vmem:[%s3109_s20] sm:$0xff] %v2121_v9  ;;  %vm1878_vm14 = vcmp.eq.s32.totalorder %v1776_v15, %v3636_v21  ;;  %v2180_v29 = vsel %vm1924_vm12, %v2052_v18, 0.0  ;;  %vm1879_vm15 = vcmp.eq.s32.totalorder %v1776_v15, %v3638_v22  ;;  %vm1880_vm0 = vcmp.eq.s32.totalorder %v1776_v15, %v3640_v23  ;;  %v2074_v9 = vld [vmem:[#allocation2 + $0x3a8] sm:$0xff]  ;;  %v2034_v18 = vld [vmem:[#allocation2 + $0x3f0] sm:$0xff] }
 0x354   : > { %2250 = vst [vmem:[%s3109_s20 + $0x8] sm:$0xff] %v2122_v11  ;;  %v2133_v32 = vsel %vm1877_vm13, %v2005_v25, 0.0  ;;  %v2134_v33 = vsel %vm1878_vm14, %v2006_v27, 0.0  ;;  %vm1869_vm1 = vcmp.eq.s32.totalorder %v1770_v28, %v3634_v20  ;;  %v2135_v35 = vsel %vm1879_vm15, %v2007_v30, 0.0  ;;  %v2075_v11 = vld [vmem:[#allocation2 + $0x3c8] sm:$0xff]  ;;  %v2036_v25 = vld [vmem:[#allocation2 + $0x2c0] sm:$0xff] }
 0x355   : > { %2251 = vst [vmem:[%s3109_s20 + $0x10] sm:$0xff] %v2123_v13  ;;  %vm1870_vm2 = vcmp.eq.s32.totalorder %v1770_v28, %v3636_v21  ;;  %v2136_v38 = vsel %vm1880_vm0, %v2008_v31, 0.0  ;;  %vm1871_vm3 = vcmp.eq.s32.totalorder %v1770_v28, %v3638_v22  ;;  %vm1872_vm4 = vcmp.eq.s32.totalorder %v1770_v28, %v3640_v23  ;;  %v2029_v28 = vld [vmem:[#allocation2 + $0x218] sm:$0xff] }
 0x356   : > { %2252 = vst [vmem:[%s3109_s20 + $0x18] sm:$0xff] %v2124_v16  ;;  %v2125_v41 = vsel %vm1869_vm1, %v1997_v34, 0.0  ;;  %v2126_v42 = vsel %vm1870_vm2, %v1998_v36, 0.0  ;;  %v2127_v44 = vsel %vm1871_vm3, %v1999_v39, 0.0  ;;  %v2128_v47 = vsel %vm1872_vm4, %v2000_v40, 0.0  ;;  %v2033_v16 = vld [vmem:[#allocation2 + $0x2a0] sm:$0xff] }
 0x357   : > { %2305 = vst [vmem:[%s3109_s20 + $0x1c0] sm:$0xff] %v2177_v19  ;;  %v2030_v30 = vld [vmem:[#allocation2 + $0x3f8] sm:$0xff]  ;;  %v2031_v34 = vld [vmem:[#allocation2 + $0x8] sm:$0xff]  ;;  %v2086_v40 = vld [vmem:[#allocation2 + $0x120] sm:$0xff] }
 0x358   : > { %2306 = vst [vmem:[%s3109_s20 + $0x1c8] sm:$0xff] %v2178_v24  ;;  %v1818_v37 = vpop.permute.xlu2 %1817  ;;  %v2035_v24 = vld [vmem:[#allocation2 + $0xa0] sm:$0xff] }
 0x359   : > { %2307 = vst [vmem:[%s3109_s20 + $0x1d0] sm:$0xff] %v2179_v26  ;;  %vm1933_vm5 = vcmp.eq.s32.totalorder %v1818_v37, %v3634_v20  ;;  %vm1934_vm6 = vcmp.eq.s32.totalorder %v1818_v37, %v3636_v21  ;;  %v1788_v46 = vpop.permute.xlu1 %1787  ;;  %vm1935_vm7 = vcmp.eq.s32.totalorder %v1818_v37, %v3638_v22  ;;  %vm1936_vm8 = vcmp.eq.s32.totalorder %v1818_v37, %v3640_v23  ;;  %v1785_v55 = vpop.permute.xlu0 %1784 }
 0x35a   : > { %2308 = vst [vmem:[%s3109_s20 + $0x1d8] sm:$0xff] %v2180_v29  ;;  %v2189_v50 = vsel %vm1933_vm5, %v2061_v43, 0.0  ;;  %v2190_v51 = vsel %vm1934_vm6, %v2062_v45, 0.0  ;;  %vm1893_vm9 = vcmp.eq.s32.totalorder %v1788_v46, %v3634_v20  ;;  %v2191_v53 = vsel %vm1935_vm7, %v2063_v48, 0.0  ;;  %v2087_v43 = vld [vmem:[#allocation2 + $0x198] sm:$0xff] }
 0x35b   : > { %2261 = vst [vmem:[%s3109_s20 + $0x60] sm:$0xff] %v2133_v32  ;;  %vm1894_vm10 = vcmp.eq.s32.totalorder %v1788_v46, %v3636_v21  ;;  %v2192_v56 = vsel %vm1936_vm8, %v2064_v49, 0.0  ;;  %vm1895_vm11 = vcmp.eq.s32.totalorder %v1788_v46, %v3638_v22  ;;  %vm1896_vm12 = vcmp.eq.s32.totalorder %v1788_v46, %v3640_v23  ;;  %v2046_v49 = vld [vmem:[#allocation2 + $0xd0] sm:$0xff] }
 0x35c   : > { %2262 = vst [vmem:[%s3109_s20 + $0x68] sm:$0xff] %v2134_v33  ;;  %v2149_v59 = vsel %vm1893_vm9, %v2021_v52, 0.0  ;;  %v2150_v60 = vsel %vm1894_vm10, %v2022_v54, 0.0  ;;  %vm1889_vm13 = vcmp.eq.s32.totalorder %v1785_v55, %v3634_v20  ;;  %v2151_v62 = vsel %vm1895_vm11, %v2023_v57, 0.0  ;;  %v2048_v52 = vld [vmem:[#allocation2 + $0x2f0] sm:$0xff] }
 0x35d   : > { %2263 = vst [vmem:[%s3109_s20 + $0x70] sm:$0xff] %v2135_v35  ;;  %vm1890_vm14 = vcmp.eq.s32.totalorder %v1785_v55, %v3636_v21  ;;  %v2152_v1 = vsel %vm1896_vm12, %v2024_v58, 0.0  ;;  %vm1891_vm15 = vcmp.eq.s32.totalorder %v1785_v55, %v3638_v22  ;;  %vm1892_vm0 = vcmp.eq.s32.totalorder %v1785_v55, %v3640_v23  ;;  %v2032_v35 = vld [vmem:[#allocation2 + $0x128] sm:$0xff]  ;;  %v2042_v58 = vld [vmem:[#allocation2 + $0x240] sm:$0xff] }
 0x35e   : > { %2264 = vst [vmem:[%s3109_s20 + $0x78] sm:$0xff] %v2136_v38  ;;  %v2145_v4 = vsel %vm1889_vm13, %v2017_v61, 0.0  ;;  %v2146_v6 = vsel %vm1890_vm14, %v2018_v63, 0.0  ;;  %v2147_v8 = vsel %vm1891_vm15, %v2019_v2, 0.0  ;;  %v2148_v10 = vsel %vm1892_vm0, %v2020_v3, 0.0  ;;  %v2085_v38 = vld [vmem:[#allocation2 + $0x58] sm:$0xff] }
 0x35f   : > { %2253 = vst [vmem:[%s3109_s20 + $0x20] sm:$0xff] %v2125_v41  ;;  %v2043_v61 = vld [vmem:[#allocation2 + $0x90] sm:$0xff] }
 0x360   : > { %2254 = vst [vmem:[%s3109_s20 + $0x28] sm:$0xff] %v2126_v42  ;;  %v1827_v0 = vpop.permute.xlu2 %1826  ;;  %v2097_v2 = vld [vmem:[#allocation2 + $0xf0] sm:$0xff] }
 0x361   : > { %2255 = vst [vmem:[%s3109_s20 + $0x30] sm:$0xff] %v2127_v44  ;;  %v1797_v5 = vpop.permute.xlu1 %1796  ;;  %vm1945_vm1 = vcmp.eq.s32.totalorder %v1827_v0, %v3634_v20  ;;  %vm1946_vm2 = vcmp.eq.s32.totalorder %v1827_v0, %v3636_v21  ;;  %vm1947_vm3 = vcmp.eq.s32.totalorder %v1827_v0, %v3638_v22  ;;  %vm1948_vm4 = vcmp.eq.s32.totalorder %v1827_v0, %v3640_v23  ;;  %v1794_v14 = vpop.permute.xlu0 %1793  ;;  %v2088_v44 = vld [vmem:[#allocation2 + $0x2e8] sm:$0xff] }
 0x362   : > { %2256 = vst [vmem:[%s3109_s20 + $0x38] sm:$0xff] %v2128_v47  ;;  %v2201_v13 = vsel %vm1945_vm1, %v2073_v7, 0.0  ;;  %v2202_v15 = vsel %vm1946_vm2, %v2074_v9, 0.0  ;;  %vm1905_vm5 = vcmp.eq.s32.totalorder %v1797_v5, %v3634_v20  ;;  %v2203_v17 = vsel %vm1947_vm3, %v2075_v11, 0.0  ;;  %v2045_v47 = vld [vmem:[#allocation2 + $0x208] sm:$0xff]  ;;  %v2100_v7 = vld [vmem:[#allocation2 + $0x3d0] sm:$0xff] }
 0x363   : > { %2317 = vst [vmem:[%s3109_s20 + $0x220] sm:$0xff] %v2189_v50  ;;  %vm1906_vm6 = vcmp.eq.s32.totalorder %v1797_v5, %v3636_v21  ;;  %v2204_v19 = vsel %vm1948_vm4, %v2076_v12, 0.0  ;;  %vm1907_vm7 = vcmp.eq.s32.totalorder %v1797_v5, %v3638_v22  ;;  %vm1908_vm8 = vcmp.eq.s32.totalorder %v1797_v5, %v3640_v23  ;;  %v2058_v12 = vld [vmem:[#allocation2 + $0x200] sm:$0xff] }
 0x364   : > { %2318 = vst [vmem:[%s3109_s20 + $0x228] sm:$0xff] %v2190_v51  ;;  %v2161_v26 = vsel %vm1905_vm5, %v2033_v16, 0.0  ;;  %v2162_v27 = vsel %vm1906_vm6, %v2034_v18, 0.0  ;;  %vm1901_vm9 = vcmp.eq.s32.totalorder %v1794_v14, %v3634_v20  ;;  %v2163_v29 = vsel %vm1907_vm7, %v2035_v24, 0.0  ;;  %v2047_v51 = vld [vmem:[#allocation2 + $0x88] sm:$0xff]  ;;  %v2060_v16 = vld [vmem:[#allocation2 + $0x220] sm:$0xff] }
 0x365   : > { %2319 = vst [vmem:[%s3109_s20 + $0x230] sm:$0xff] %v2191_v53  ;;  %vm1902_vm10 = vcmp.eq.s32.totalorder %v1794_v14, %v3636_v21  ;;  %v2164_v33 = vsel %vm1908_vm8, %v2036_v25, 0.0  ;;  %vm1903_vm11 = vcmp.eq.s32.totalorder %v1794_v14, %v3638_v22  ;;  %vm1904_vm12 = vcmp.eq.s32.totalorder %v1794_v14, %v3640_v23  ;;  %v2054_v25 = vld [vmem:[#allocation2 + $0x30] sm:$0xff] }
 0x366   : > { %2320 = vst [vmem:[%s3109_s20 + $0x238] sm:$0xff] %v2192_v56  ;;  %v2157_v36 = vsel %vm1901_vm9, %v2029_v28, 0.0  ;;  %v2158_v37 = vsel %vm1902_vm10, %v2030_v30, 0.0  ;;  %v2159_v39 = vsel %vm1903_vm11, %v2031_v34, 0.0  ;;  %v2160_v42 = vsel %vm1904_vm12, %v2032_v35, 0.0  ;;  %v2041_v56 = vld [vmem:[#allocation2 + $0x230] sm:$0xff] }
 0x367   : > { %2277 = vst [vmem:[%s3109_s20 + $0xe0] sm:$0xff] %v2149_v59  ;;  %v2056_v30 = vld [vmem:[#allocation2 + $0x2a8] sm:$0xff]  ;;  %v2110_v35 = vld [vmem:[#allocation2 + $0x360] sm:$0xff] }
 0x368   : > { %2278 = vst [vmem:[%s3109_s20 + $0xe8] sm:$0xff] %v2150_v60  ;;  %v1836_v31 = vpop.permute.xlu2 %1835 }
 0x369   : > { %2279 = vst [vmem:[%s3109_s20 + $0xf0] sm:$0xff] %v2151_v62  ;;  %v1806_v32 = vpop.permute.xlu1 %1805  ;;  %vm1957_vm13 = vcmp.eq.s32.totalorder %v1836_v31, %v3634_v20  ;;  %vm1958_vm14 = vcmp.eq.s32.totalorder %v1836_v31, %v3636_v21  ;;  %v1803_v41 = vpop.permute.xlu0 %1802  ;;  %vm1959_vm15 = vcmp.eq.s32.totalorder %v1836_v31, %v3638_v22  ;;  %vm1960_vm0 = vcmp.eq.s32.totalorder %v1836_v31, %v3640_v23  ;;  %v2044_v62 = vld [vmem:[#allocation2 + $0x3a0] sm:$0xff] }
 0x36a   : > { %2280 = vst [vmem:[%s3109_s20 + $0xf8] sm:$0xff] %v2152_v1  ;;  %v2213_v45 = vsel %vm1957_vm13, %v2085_v38, 0.0  ;;  %v2214_v46 = vsel %vm1958_vm14, %v2086_v40, 0.0  ;;  %vm1917_vm1 = vcmp.eq.s32.totalorder %v1806_v32, %v3634_v20  ;;  %v2215_v48 = vsel %vm1959_vm15, %v2087_v43, 0.0  ;;  %v2112_v38 = vld [vmem:[#allocation2 + $0x348] sm:$0xff] }
 0x36b   : > { %2273 = vst [vmem:[%s3109_s20 + $0xc0] sm:$0xff] %v2145_v4  ;;  %vm1918_vm2 = vcmp.eq.s32.totalorder %v1806_v32, %v3636_v21  ;;  %v2216_v50 = vsel %vm1960_vm0, %v2088_v44, 0.0  ;;  %vm1919_vm3 = vcmp.eq.s32.totalorder %v1806_v32, %v3638_v22  ;;  %vm1920_vm4 = vcmp.eq.s32.totalorder %v1806_v32, %v3640_v23  ;;  %v2098_v4 = vld [vmem:[#allocation2 + $0x180] sm:$0xff] }
 0x36c   : > { %2274 = vst [vmem:[%s3109_s20 + $0xc8] sm:$0xff] %v2146_v6  ;;  %v2173_v53 = vsel %vm1917_vm1, %v2045_v47, 0.0  ;;  %v2174_v55 = vsel %vm1918_vm2, %v2046_v49, 0.0  ;;  %vm1913_vm5 = vcmp.eq.s32.totalorder %v1803_v41, %v3634_v20  ;;  %v2175_v57 = vsel %vm1919_vm3, %v2047_v51, 0.0  ;;  %v2099_v6 = vld [vmem:[#allocation2 + $0x170] sm:$0xff]  ;;  %v2070_v44 = vld [vmem:[#allocation2 + $0x40] sm:$0xff] }
 0x36d   : > { %2275 = vst [vmem:[%s3109_s20 + $0xd0] sm:$0xff] %v2147_v8  ;;  %vm1914_vm6 = vcmp.eq.s32.totalorder %v1803_v41, %v3636_v21  ;;  %v2176_v60 = vsel %vm1920_vm4, %v2048_v52, 0.0  ;;  %vm1915_vm7 = vcmp.eq.s32.totalorder %v1803_v41, %v3638_v22  ;;  %vm1916_vm8 = vcmp.eq.s32.totalorder %v1803_v41, %v3640_v23  ;;  %v2072_v47 = vld [vmem:[#allocation2 + $0xe8] sm:$0xff] }
 0x36e   : > { %2276 = vst [vmem:[%s3109_s20 + $0xd8] sm:$0xff] %v2148_v10  ;;  %v2169_v63 = vsel %vm1913_vm5, %v2041_v56, 0.0  ;;  %v2170_v1 = vsel %vm1914_vm6, %v2042_v58, 0.0  ;;  %v2171_v3 = vsel %vm1915_vm7, %v2043_v61, 0.0  ;;  %v2172_v5 = vsel %vm1916_vm8, %v2044_v62, 0.0  ;;  %v2057_v10 = vld [vmem:[#allocation2 + $0x130] sm:$0xff] }
 0x36f   : > { %2329 = vst [vmem:[%s3109_s20 + $0x280] sm:$0xff] %v2201_v13  ;;  %v2065_v51 = vld [vmem:[#allocation2 + $0x328] sm:$0xff]  ;;  %v2068_v56 = vld [vmem:[#allocation2 + $0x2b8] sm:$0xff] }
 0x370   : > { %2330 = vst [vmem:[%s3109_s20 + $0x288] sm:$0xff] %v2202_v15  ;;  %v1845_v59 = vpop.permute.xlu2 %1844  ;;  %v2059_v15 = vld [vmem:[#allocation2 + $0x318] sm:$0xff]  ;;  %v2082_v61 = vld [vmem:[#allocation2 + $0x1c8] sm:$0xff] }
 0x371   : > { %2331 = vst [vmem:[%s3109_s20 + $0x290] sm:$0xff] %v2203_v17  ;;  %v3772_v54 = vpop.permute.xlu1 %1814  ;;  %v1812_v0 = vpop.permute.xlu0 %1811  ;;  %vm1969_vm9 = vcmp.eq.s32.totalorder %v1845_v59, %v3634_v20  ;;  %vm1970_vm10 = vcmp.eq.s32.totalorder %v1845_v59, %v3636_v21  ;;  %vm1971_vm11 = vcmp.eq.s32.totalorder %v1845_v59, %v3638_v22  ;;  %vm1972_vm12 = vcmp.eq.s32.totalorder %v1845_v59, %v3640_v23  ;;  %v2081_v59 = vld [vmem:[#allocation2 + $0x1b0] sm:$0xff] }
 0x372   : > { %2332 = vst [vmem:[%s3109_s20 + $0x298] sm:$0xff] %v2204_v19  ;;  %v2225_v8 = vsel %vm1969_vm9, %v2097_v2, 0.0  ;;  %v2226_v9 = vsel %vm1970_vm10, %v2098_v4, 0.0  ;;  %vm1929_vm13 = vcmp.eq.s32.totalorder %v3772_v54, %v3634_v20  ;;  %v2227_v11 = vsel %vm1971_vm11, %v2099_v6, 0.0  ;;  %v2053_v19 = vld [vmem:[#allocation2 + $0x1d8] sm:$0xff]  ;;  %v2077_v4 = vld [vmem:[#allocation2 + $0x2c8] sm:$0xff] }
 0x373   : > { %2289 = vst [vmem:[%s3109_s20 + $0x140] sm:$0xff] %v2161_v26  ;;  %vm1930_vm14 = vcmp.eq.s32.totalorder %v3772_v54, %v3636_v21  ;;  %v2228_v14 = vsel %vm1972_vm12, %v2100_v7, 0.0  ;;  %vm1931_vm15 = vcmp.eq.s32.totalorder %v3772_v54, %v3638_v22  ;;  %vm1932_vm0 = vcmp.eq.s32.totalorder %v3772_v54, %v3640_v23  ;;  %v2078_v6 = vld [vmem:[#allocation2 + $0x210] sm:$0xff] }
 0x374   : > { %2290 = vst [vmem:[%s3109_s20 + $0x148] sm:$0xff] %v2162_v27  ;;  %v2185_v17 = vsel %vm1929_vm13, %v2057_v10, 0.0  ;;  %v2186_v18 = vsel %vm1930_vm14, %v2058_v12, 0.0  ;;  %vm1925_vm1 = vcmp.eq.s32.totalorder %v1812_v0, %v3634_v20  ;;  %v2187_v24 = vsel %vm1931_vm15, %v2059_v15, 0.0  ;;  %v2080_v10 = vld [vmem:[#allocation2 + $0x1e8] sm:$0xff] }
 0x375   : > { %2291 = vst [vmem:[%s3109_s20 + $0x150] sm:$0xff] %v2163_v29  ;;  %vm1926_vm2 = vcmp.eq.s32.totalorder %v1812_v0, %v3636_v21  ;;  %v2188_v28 = vsel %vm1932_vm0, %v2060_v16, 0.0  ;;  %v2055_v29 = vld [vmem:[#allocation2 + $0x140] sm:$0xff]  ;;  %vm1927_vm3 = vcmp.eq.s32.totalorder %v1812_v0, %v3638_v22  ;;  %vm1928_vm4 = vcmp.eq.s32.totalorder %v1812_v0, %v3640_v23  ;;  %v2083_v0 = vld [vmem:[#allocation2 + $0x2d0] sm:$0xff]  ;;  %v2094_v15 = vld [vmem:[#allocation2 + $0xa8] sm:$0xff] }
 0x376   : > { %2292 = vst [vmem:[%s3109_s20 + $0x158] sm:$0xff] %v2164_v33  ;;  %v2181_v31 = vsel %vm1925_vm1, %v2053_v19, 0.0  ;;  %v2182_v32 = vsel %vm1926_vm2, %v2054_v25, 0.0  ;;  %v2109_v33 = vld [vmem:[#allocation2 + $0x278] sm:$0xff]  ;;  %v2183_v34 = vsel %vm1927_vm3, %v2055_v29, 0.0 }
 0x377   : > { %2285 = vst [vmem:[%s3109_s20 + $0x120] sm:$0xff] %v2157_v36  ;;  %v2184_v36 = vsel %vm1928_vm4, %v2056_v30, 0.0  ;;  %v2091_v30 = vld [vmem:[#allocation2 + $0x398] sm:$0xff] }
 0x378   : > { %2286 = vst [vmem:[%s3109_s20 + $0x128] sm:$0xff] %v2158_v37  ;;  %v1854_v26 = vpop.permute.xlu2 %1853  ;;  %v2111_v37 = vld [vmem:[#allocation2 + $0x228] sm:$0xff] }
 0x379   : > { %2287 = vst [vmem:[%s3109_s20 + $0x130] sm:$0xff] %v2159_v39  ;;  %v3796_v13 = vpop.permute.xlu1 %1823  ;;  %v3808_v27 = vpop.permute.xlu0 %1820  ;;  %vm1981_vm5 = vcmp.eq.s32.totalorder %v1854_v26, %v3634_v20  ;;  %vm1982_vm6 = vcmp.eq.s32.totalorder %v1854_v26, %v3636_v21  ;;  %vm1983_vm7 = vcmp.eq.s32.totalorder %v1854_v26, %v3638_v22  ;;  %vm1984_vm8 = vcmp.eq.s32.totalorder %v1854_v26, %v3640_v23  ;;  %v2089_v26 = vld [vmem:[#allocation2 + $0x1f8] sm:$0xff] }
 0x37a   : > { %2288 = vst [vmem:[%s3109_s20 + $0x138] sm:$0xff] %v2160_v42  ;;  %v2237_v39 = vsel %vm1981_vm5, %v2109_v33, 0.0  ;;  %v2238_v41 = vsel %vm1982_vm6, %v2110_v35, 0.0  ;;  %v2069_v42 = vld [vmem:[#allocation2 + $0x248] sm:$0xff]  ;;  %vm1941_vm9 = vcmp.eq.s32.totalorder %v3796_v13, %v3634_v20  ;;  %v2239_v43 = vsel %vm1983_vm7, %v2111_v37, 0.0  ;;  %v2105_v35 = vld [vmem:[#allocation2 + $0x78] sm:$0xff] }
 0x37b   : > { %2341 = vst [vmem:[%s3109_s20 + $0x2e0] sm:$0xff] %v2213_v45  ;;  %vm1942_vm10 = vcmp.eq.s32.totalorder %v3796_v13, %v3636_v21  ;;  %v2240_v45 = vsel %vm1984_vm8, %v2112_v38, 0.0  ;;  %vm1943_vm11 = vcmp.eq.s32.totalorder %v3796_v13, %v3638_v22  ;;  %vm1944_vm12 = vcmp.eq.s32.totalorder %v3796_v13, %v3640_v23  ;;  %v2093_v13 = vld [vmem:[#allocation2 + $0x1a0] sm:$0xff]  ;;  %v2106_v37 = vld [vmem:[#allocation2 + $0x308] sm:$0xff] }
 0x37c   : > { %2342 = vst [vmem:[%s3109_s20 + $0x2e8] sm:$0xff] %v2214_v46  ;;  %v2071_v46 = vld [vmem:[#allocation2 + $0x20] sm:$0xff]  ;;  %vm1937_vm13 = vcmp.eq.s32.totalorder %v3808_v27, %v3634_v20  ;;  %vm1938_vm14 = vcmp.eq.s32.totalorder %v3808_v27, %v3636_v21  ;;  %v2200_v54 = vsel %vm1944_vm12, %v2072_v47, 0.0  ;;  %vm1939_vm15 = vcmp.eq.s32.totalorder %v3808_v27, %v3638_v22 }
 0x37d   : > { %2343 = vst [vmem:[%s3109_s20 + $0x2f0] sm:$0xff] %v2215_v48  ;;  %v2197_v48 = vsel %vm1941_vm9, %v2069_v42, 0.0  ;;  %v2199_v52 = vsel %vm1943_vm11, %v2071_v46, 0.0  ;;  %vm1940_vm0 = vcmp.eq.s32.totalorder %v3808_v27, %v3640_v23 }
 0x37e   : > { %2344 = vst [vmem:[%s3109_s20 + $0x2f8] sm:$0xff] %v2216_v50  ;;  %v2198_v50 = vsel %vm1942_vm10, %v2070_v44, 0.0 }
 0x37f   : > { %2301 = vst [vmem:[%s3109_s20 + $0x1a0] sm:$0xff] %v2173_v53  ;;  %v2066_v53 = vld [vmem:[#allocation2 + $0x260] sm:$0xff] }
 0x380   : > { %2302 = vst [vmem:[%s3109_s20 + $0x1a8] sm:$0xff] %v2174_v55  ;;  %v2067_v55 = vld [vmem:[#allocation2 + $0x3b8] sm:$0xff]  ;;  %v2194_v58 = vsel %vm1938_vm14, %v2066_v53, 0.0 }
 0x381   : > { %2303 = vst [vmem:[%s3109_s20 + $0x1b0] sm:$0xff] %v2175_v57  ;;  %v1833_v40 = vpop.permute.xlu1 %1832  ;;  %v1830_v49 = vpop.permute.xlu0 %1829  ;;  %v2193_v57 = vsel %vm1937_vm13, %v2065_v51, 0.0 }
 0x382   : > { %2304 = vst [vmem:[%s3109_s20 + $0x1b8] sm:$0xff] %v2176_v60  ;;  %vm1953_vm1 = vcmp.eq.s32.totalorder %v1833_v40, %v3634_v20  ;;  %v2195_v60 = vsel %vm1939_vm15, %v2067_v55, 0.0  ;;  %vm1954_vm2 = vcmp.eq.s32.totalorder %v1833_v40, %v3636_v21  ;;  %vm1955_vm3 = vcmp.eq.s32.totalorder %v1833_v40, %v3638_v22 }
 0x383   : > { %2297 = vst [vmem:[%s3109_s20 + $0x180] sm:$0xff] %v2169_v63  ;;  %v2196_v63 = vsel %vm1940_vm0, %v2068_v56, 0.0  ;;  %vm1956_vm4 = vcmp.eq.s32.totalorder %v1833_v40, %v3640_v23  ;;  %v2209_v2 = vsel %vm1953_vm1, %v2081_v59, 0.0  ;;  %vm1949_vm5 = vcmp.eq.s32.totalorder %v1830_v49, %v3634_v20  ;;  %v2108_v40 = vld [vmem:[#allocation2 + $0xc8] sm:$0xff] }
 0x384   : > { %2298 = vst [vmem:[%s3109_s20 + $0x188] sm:$0xff] %v2170_v1  ;;  %v2084_v1 = vld [vmem:[#allocation2 + $0x1d0] sm:$0xff]  ;;  %vm1950_vm6 = vcmp.eq.s32.totalorder %v1830_v49, %v3636_v21  ;;  %vm1951_vm7 = vcmp.eq.s32.totalorder %v1830_v49, %v3638_v22  ;;  %vm1952_vm8 = vcmp.eq.s32.totalorder %v1830_v49, %v3640_v23  ;;  %v2104_v49 = vld [vmem:[#allocation2 + $0x38] sm:$0xff] }
 0x385   : > { %2299 = vst [vmem:[%s3109_s20 + $0x190] sm:$0xff] %v2171_v3  ;;  %v2210_v3 = vsel %vm1954_vm2, %v2082_v61, 0.0  ;;  %v2206_v12 = vsel %vm1950_vm6, %v2078_v6, 0.0  ;;  %v2208_v16 = vsel %vm1952_vm8, %v2080_v10, 0.0  ;;  %v2113_v61 = vld [vmem:[#allocation2 + $0x148] sm:$0xff] }
 0x386   : > { %2300 = vst [vmem:[%s3109_s20 + $0x198] sm:$0xff] %v2172_v5  ;;  %v2211_v5 = vsel %vm1955_vm3, %v2083_v0, 0.0 }
 0x387   : > { %2353 = vst [vmem:[%s3109_s20 + $0x340] sm:$0xff] %v2225_v8  ;;  %v2212_v8 = vsel %vm1956_vm4, %v2084_v1, 0.0  ;;  %v2115_v1 = vld [vmem:[#allocation2 + $0x68] sm:$0xff] }
 0x388   : > { %2354 = vst [vmem:[%s3109_s20 + $0x348] sm:$0xff] %v2226_v9  ;;  %v2079_v9 = vld [vmem:[#allocation2 + $0x3d8] sm:$0xff] }
 0x389   : > { %2355 = vst [vmem:[%s3109_s20 + $0x350] sm:$0xff] %v2227_v11  ;;  %v1842_v62 = vpop.permute.xlu1 %1841  ;;  %v1839_v7 = vpop.permute.xlu0 %1838  ;;  %v2205_v11 = vsel %vm1949_vm5, %v2077_v4, 0.0 }
 0x38a   : > { %2356 = vst [vmem:[%s3109_s20 + $0x358] sm:$0xff] %v2228_v14  ;;  %vm1965_vm9 = vcmp.eq.s32.totalorder %v1842_v62, %v3634_v20  ;;  %v2207_v14 = vsel %vm1951_vm7, %v2079_v9, 0.0  ;;  %vm1966_vm10 = vcmp.eq.s32.totalorder %v1842_v62, %v3636_v21  ;;  %vm1967_vm11 = vcmp.eq.s32.totalorder %v1842_v62, %v3638_v22 }
 0x38b   : > { %2313 = vst [vmem:[%s3109_s20 + $0x200] sm:$0xff] %v2185_v17  ;;  %v2095_v17 = vld [vmem:[#allocation2 + $0x258] sm:$0xff]  ;;  %vm1968_vm12 = vcmp.eq.s32.totalorder %v1842_v62, %v3640_v23  ;;  %v2221_v19 = vsel %vm1965_vm9, %v2093_v13, 0.0  ;;  %v2222_v25 = vsel %vm1966_vm10, %v2094_v15, 0.0  ;;  %vm1961_vm13 = vcmp.eq.s32.totalorder %v1839_v7, %v3634_v20 }
 0x38c   : > { %2314 = vst [vmem:[%s3109_s20 + $0x208] sm:$0xff] %v2186_v18  ;;  %v2096_v18 = vld [vmem:[#allocation2 + $0x2d8] sm:$0xff]  ;;  %v2223_v27 = vsel %vm1967_vm11, %v2095_v17, 0.0  ;;  %vm1962_vm14 = vcmp.eq.s32.totalorder %v1839_v7, %v3636_v21  ;;  %vm1963_vm15 = vcmp.eq.s32.totalorder %v1839_v7, %v3638_v22  ;;  %vm1964_vm0 = vcmp.eq.s32.totalorder %v1839_v7, %v3640_v23 }
 0x38d   : > { %2315 = vst [vmem:[%s3109_s20 + $0x210] sm:$0xff] %v2187_v24  ;;  %v2224_v29 = vsel %vm1968_vm12, %v2096_v18, 0.0 }
 0x38e   : > { %2316 = vst [vmem:[%s3109_s20 + $0x218] sm:$0xff] %v2188_v28  ;;  %v2090_v28 = vld [vmem:[#allocation2 + $0x238] sm:$0xff] }
 0x38f   : > { %2309 = vst [vmem:[%s3109_s20 + $0x1e0] sm:$0xff] %v2181_v31  ;;  %v2092_v31 = vld [vmem:[#allocation2 + $0x390] sm:$0xff] }
 0x390   : > { %2310 = vst [vmem:[%s3109_s20 + $0x1e8] sm:$0xff] %v2182_v32  ;;  %v2217_v32 = vsel %vm1961_vm13, %v2089_v26, 0.0  ;;  %v2220_v38 = vsel %vm1964_vm0, %v2092_v31, 0.0 }
 0x391   : > { %2311 = vst [vmem:[%s3109_s20 + $0x1f0] sm:$0xff] %v2183_v34  ;;  %v1851_v24 = vpop.permute.xlu1 %1850  ;;  %v1848_v33 = vpop.permute.xlu0 %1847  ;;  %v2218_v34 = vsel %vm1962_vm14, %v2090_v28, 0.0 }
 0x392   : > { %2312 = vst [vmem:[%s3109_s20 + $0x1f8] sm:$0xff] %v2184_v36  ;;  %vm1977_vm1 = vcmp.eq.s32.totalorder %v1851_v24, %v3634_v20  ;;  %v2219_v36 = vsel %vm1963_vm15, %v2091_v30, 0.0  ;;  %vm1978_vm2 = vcmp.eq.s32.totalorder %v1851_v24, %v3636_v21  ;;  %vm1979_vm3 = vcmp.eq.s32.totalorder %v1851_v24, %v3638_v22 }
 0x393   : > { %2365 = vst [vmem:[%s3109_s20 + $0x3a0] sm:$0xff] %v2237_v39  ;;  %v2107_v39 = vld [vmem:[#allocation2 + $0x370] sm:$0xff]  ;;  %vm1980_vm4 = vcmp.eq.s32.totalorder %v1851_v24, %v3640_v23  ;;  %v2234_v42 = vsel %vm1978_vm2, %v2106_v37, 0.0  ;;  %vm1973_vm5 = vcmp.eq.s32.totalorder %v1848_v33, %v3634_v20  ;;  %vm1974_vm6 = vcmp.eq.s32.totalorder %v1848_v33, %v3636_v21 }
 0x394   : > { %2366 = vst [vmem:[%s3109_s20 + $0x3a8] sm:$0xff] %v2238_v41  ;;  %v2233_v41 = vsel %vm1977_vm1, %v2105_v35, 0.0  ;;  %v2235_v44 = vsel %vm1979_vm3, %v2107_v39, 0.0  ;;  %v2236_v47 = vsel %vm1980_vm4, %v2108_v40, 0.0  ;;  %vm1975_vm7 = vcmp.eq.s32.totalorder %v1848_v33, %v3638_v22 }
 0x395   : > { %2367 = vst [vmem:[%s3109_s20 + $0x3b0] sm:$0xff] %v2239_v43  ;;  %v2101_v43 = vld [vmem:[#allocation2 + $0x250] sm:$0xff]  ;;  %vm1976_vm8 = vcmp.eq.s32.totalorder %v1848_v33, %v3640_v23 }
 0x396   : > { %2368 = vst [vmem:[%s3109_s20 + $0x3b8] sm:$0xff] %v2240_v45  ;;  %v2102_v45 = vld [vmem:[#allocation2 + $0x378] sm:$0xff]  ;;  %v2232_v56 = vsel %vm1976_vm8, %v2104_v49, 0.0 }
 0x397   : > { %2325 = vst [vmem:[%s3109_s20 + $0x260] sm:$0xff] %v2197_v48  ;;  %v2103_v48 = vld [vmem:[#allocation2 + $0xb8] sm:$0xff]  ;;  %v2230_v51 = vsel %vm1974_vm6, %v2102_v45, 0.0 }
 0x398   : > { %2326 = vst [vmem:[%s3109_s20 + $0x268] sm:$0xff] %v2198_v50  ;;  %v2229_v50 = vsel %vm1973_vm5, %v2101_v43, 0.0  ;;  %v2231_v53 = vsel %vm1975_vm7, %v2103_v48, 0.0 }
 0x399   : > { %2327 = vst [vmem:[%s3109_s20 + $0x270] sm:$0xff] %v2199_v52  ;;  %v1860_v46 = vpop.permute.xlu1 %1859  ;;  %v2117_v52 = vld [vmem:[#allocation2 + $0x298] sm:$0xff]  ;;  %v1857_v55 = vpop.permute.xlu0 %1856 }
 0x39a   : > { %2328 = vst [vmem:[%s3109_s20 + $0x278] sm:$0xff] %v2200_v54  ;;  %vm1989_vm9 = vcmp.eq.s32.totalorder %v1860_v46, %v3634_v20  ;;  %v2118_v54 = vld [vmem:[#allocation2 + $0x270] sm:$0xff]  ;;  %vm1990_vm10 = vcmp.eq.s32.totalorder %v1860_v46, %v3636_v21  ;;  %vm1991_vm11 = vcmp.eq.s32.totalorder %v1860_v46, %v3638_v22  ;;  %vm1992_vm12 = vcmp.eq.s32.totalorder %v1860_v46, %v3640_v23 }
 0x39b   : > { %2321 = vst [vmem:[%s3109_s20 + $0x240] sm:$0xff] %v2193_v57  ;;  %v2119_v57 = vld [vmem:[#allocation2 + $0x310] sm:$0xff]  ;;  %v2245_v59 = vsel %vm1989_vm9, %v2117_v52, 0.0  ;;  %vm1985_vm13 = vcmp.eq.s32.totalorder %v1857_v55, %v3634_v20  ;;  %vm1986_vm14 = vcmp.eq.s32.totalorder %v1857_v55, %v3636_v21  ;;  %vm1987_vm15 = vcmp.eq.s32.totalorder %v1857_v55, %v3638_v22 }
 0x39c   : > { %2322 = vst [vmem:[%s3109_s20 + $0x248] sm:$0xff] %v2194_v58  ;;  %v2120_v58 = vld [vmem:[#allocation2 + $0x190] sm:$0xff]  ;;  %v2247_v62 = vsel %vm1991_vm11, %v2119_v57, 0.0  ;;  %vm1988_vm0 = vcmp.eq.s32.totalorder %v1857_v55, %v3640_v23  ;;  %v2243_v4 = vsel %vm1987_vm15, %v2115_v1, 0.0 }
 0x39d   : > { %2323 = vst [vmem:[%s3109_s20 + $0x250] sm:$0xff] %v2195_v60  ;;  %v2246_v60 = vsel %vm1990_vm10, %v2118_v54, 0.0  ;;  %v2248_v0 = vsel %vm1992_vm12, %v2120_v58, 0.0 }
 0x39e   : > { %2324 = vst [vmem:[%s3109_s20 + $0x258] sm:$0xff] %v2196_v63  ;;  %v2114_v63 = vld [vmem:[#allocation2 + $0xf8] sm:$0xff] }
 0x39f   : > { %2337 = vst [vmem:[%s3109_s20 + $0x2c0] sm:$0xff] %v2209_v2  ;;  %v2116_v2 = vld [vmem:[#allocation2] sm:$0xff]  ;;  %v2242_v20 = vsel %vm1986_vm14, %v2114_v63, 0.0 }
 0x3a0   : > { %2338 = vst [vmem:[%s3109_s20 + $0x2c8] sm:$0xff] %v2210_v3  ;;  %v2241_v3 = vsel %vm1985_vm13, %v2113_v61, 0.0 }
 0x3a1   : > { %2339 = vst [vmem:[%s3109_s20 + $0x2d0] sm:$0xff] %v2211_v5  ;;  %v2244_v5 = vsel %vm1988_vm0, %v2116_v2, 0.0 }
 0x3a2   : > { %2340 = vst [vmem:[%s3109_s20 + $0x2d8] sm:$0xff] %v2212_v8 }
 0x3a3   : > { %2333 = vst [vmem:[%s3109_s20 + $0x2a0] sm:$0xff] %v2205_v11 }
 0x3a4   : > { %2334 = vst [vmem:[%s3109_s20 + $0x2a8] sm:$0xff] %v2206_v12 }
 0x3a5   : > { %2335 = vst [vmem:[%s3109_s20 + $0x2b0] sm:$0xff] %v2207_v14 }
 0x3a6   : > { %2336 = vst [vmem:[%s3109_s20 + $0x2b8] sm:$0xff] %v2208_v16 }
 0x3a7   : > { %2349 = vst [vmem:[%s3109_s20 + $0x320] sm:$0xff] %v2221_v19 }
 0x3a8   : > { %2350 = vst [vmem:[%s3109_s20 + $0x328] sm:$0xff] %v2222_v25 }
 0x3a9   : > { %2351 = vst [vmem:[%s3109_s20 + $0x330] sm:$0xff] %v2223_v27 }
 0x3aa   : > { %2352 = vst [vmem:[%s3109_s20 + $0x338] sm:$0xff] %v2224_v29 }
 0x3ab   : > { %2345 = vst [vmem:[%s3109_s20 + $0x300] sm:$0xff] %v2217_v32 }
 0x3ac   : > { %2346 = vst [vmem:[%s3109_s20 + $0x308] sm:$0xff] %v2218_v34 }
 0x3ad   : > { %2347 = vst [vmem:[%s3109_s20 + $0x310] sm:$0xff] %v2219_v36 }
 0x3ae   : > { %2348 = vst [vmem:[%s3109_s20 + $0x318] sm:$0xff] %v2220_v38 }
 0x3af   : > { %2361 = vst [vmem:[%s3109_s20 + $0x380] sm:$0xff] %v2233_v41 }
 0x3b0   : > { %2362 = vst [vmem:[%s3109_s20 + $0x388] sm:$0xff] %v2234_v42 }
 0x3b1   : > { %2363 = vst [vmem:[%s3109_s20 + $0x390] sm:$0xff] %v2235_v44 }
 0x3b2   : > { %2364 = vst [vmem:[%s3109_s20 + $0x398] sm:$0xff] %v2236_v47 }
 0x3b3   : > { %2357 = vst [vmem:[%s3109_s20 + $0x360] sm:$0xff] %v2229_v50 }
 0x3b4   : > { %2358 = vst [vmem:[%s3109_s20 + $0x368] sm:$0xff] %v2230_v51 }
 0x3b5   : > { %2359 = vst [vmem:[%s3109_s20 + $0x370] sm:$0xff] %v2231_v53 }
 0x3b6   : > { %2360 = vst [vmem:[%s3109_s20 + $0x378] sm:$0xff] %v2232_v56 }
 0x3b7   : > { %2373 = vst [vmem:[%s3109_s20 + $0x3e0] sm:$0xff] %v2245_v59 }
 0x3b8   : > { %2374 = vst [vmem:[%s3109_s20 + $0x3e8] sm:$0xff] %v2246_v60 }
 0x3b9   : > { %2375 = vst [vmem:[%s3109_s20 + $0x3f0] sm:$0xff] %v2247_v62 }
 0x3ba   : > { %2376 = vst [vmem:[%s3109_s20 + $0x3f8] sm:$0xff] %v2248_v0 }
 0x3bb   : > { %2369 = vst [vmem:[%s3109_s20 + $0x3c0] sm:$0xff] %v2241_v3 }
 0x3bc   : > { %2370 = vst [vmem:[%s3109_s20 + $0x3c8] sm:$0xff] %v2242_v20 }
 0x3bd   : > { %2371 = vst [vmem:[%s3109_s20 + $0x3d0] sm:$0xff] %v2243_v4 }
 0x3be   : > { %2372 = vst [vmem:[%s3109_s20 + $0x3d8] sm:$0xff] %v2244_v5 }
 0x3bf PF: > { %2379 = sbr.rel (!%p3103_p0) target bundleno = 1088 (0x440), region = 60  ;;  %v2977_v21 = vmov (%p3103_p0), 0.0  }
 0x3c0   : > { %2380 = vst [vmem:[%s3109_s20] sm:$0xff] (%p3103_p0), %v2977_v21 }
 0x3c1   : > { %2381 = vst [vmem:[%s3109_s20 + $0x8] sm:$0xff] (%p3103_p0), %v2977_v21 }
 0x3c2   : > { %2382 = vst [vmem:[%s3109_s20 + $0x10] sm:$0xff] (%p3103_p0), %v2977_v21 }
 0x3c3   : > { %2383 = vst [vmem:[%s3109_s20 + $0x18] sm:$0xff] (%p3103_p0), %v2977_v21 }
 0x3c4   : > { %2384 = vst [vmem:[%s3109_s20 + $0x20] sm:$0xff] %v2977_v21 }
 0x3c5   : > { %2385 = vst [vmem:[%s3109_s20 + $0x28] sm:$0xff] %v2977_v21 }
 0x3c6   : > { %2386 = vst [vmem:[%s3109_s20 + $0x30] sm:$0xff] %v2977_v21 }
 0x3c7   : > { %2387 = vst [vmem:[%s3109_s20 + $0x38] sm:$0xff] %v2977_v21 }
 0x3c8   : > { %2388 = vst [vmem:[%s3109_s20 + $0x40] sm:$0xff] %v2977_v21 }
 0x3c9   : > { %2389 = vst [vmem:[%s3109_s20 + $0x48] sm:$0xff] %v2977_v21 }
 0x3ca   : > { %2390 = vst [vmem:[%s3109_s20 + $0x50] sm:$0xff] %v2977_v21 }
 0x3cb   : > { %2391 = vst [vmem:[%s3109_s20 + $0x58] sm:$0xff] %v2977_v21 }
 0x3cc   : > { %2392 = vst [vmem:[%s3109_s20 + $0x60] sm:$0xff] %v2977_v21 }
 0x3cd   : > { %2393 = vst [vmem:[%s3109_s20 + $0x68] sm:$0xff] %v2977_v21 }
 0x3ce   : > { %2394 = vst [vmem:[%s3109_s20 + $0x70] sm:$0xff] %v2977_v21 }
 0x3cf   : > { %2395 = vst [vmem:[%s3109_s20 + $0x78] sm:$0xff] %v2977_v21 }
 0x3d0   : > { %2396 = vst [vmem:[%s3109_s20 + $0x80] sm:$0xff] %v2977_v21 }
 0x3d1   : > { %2397 = vst [vmem:[%s3109_s20 + $0x88] sm:$0xff] %v2977_v21 }
 0x3d2   : > { %2398 = vst [vmem:[%s3109_s20 + $0x90] sm:$0xff] %v2977_v21 }
 0x3d3   : > { %2399 = vst [vmem:[%s3109_s20 + $0x98] sm:$0xff] %v2977_v21 }
 0x3d4   : > { %2400 = vst [vmem:[%s3109_s20 + $0xa0] sm:$0xff] %v2977_v21 }
 0x3d5   : > { %2401 = vst [vmem:[%s3109_s20 + $0xa8] sm:$0xff] %v2977_v21 }
 0x3d6   : > { %2402 = vst [vmem:[%s3109_s20 + $0xb0] sm:$0xff] %v2977_v21 }
 0x3d7   : > { %2403 = vst [vmem:[%s3109_s20 + $0xb8] sm:$0xff] %v2977_v21 }
 0x3d8   : > { %2404 = vst [vmem:[%s3109_s20 + $0xc0] sm:$0xff] %v2977_v21 }
 0x3d9   : > { %2405 = vst [vmem:[%s3109_s20 + $0xc8] sm:$0xff] %v2977_v21 }
 0x3da   : > { %2406 = vst [vmem:[%s3109_s20 + $0xd0] sm:$0xff] %v2977_v21 }
 0x3db   : > { %2407 = vst [vmem:[%s3109_s20 + $0xd8] sm:$0xff] %v2977_v21 }
 0x3dc   : > { %2408 = vst [vmem:[%s3109_s20 + $0xe0] sm:$0xff] %v2977_v21 }
 0x3dd   : > { %2409 = vst [vmem:[%s3109_s20 + $0xe8] sm:$0xff] %v2977_v21 }
 0x3de   : > { %2410 = vst [vmem:[%s3109_s20 + $0xf0] sm:$0xff] %v2977_v21 }
 0x3df   : > { %2411 = vst [vmem:[%s3109_s20 + $0xf8] sm:$0xff] %v2977_v21 }
 0x3e0   : > { %2412 = vst [vmem:[%s3109_s20 + $0x100] sm:$0xff] %v2977_v21 }
 0x3e1   : > { %2413 = vst [vmem:[%s3109_s20 + $0x108] sm:$0xff] %v2977_v21 }
 0x3e2   : > { %2414 = vst [vmem:[%s3109_s20 + $0x110] sm:$0xff] %v2977_v21 }
 0x3e3   : > { %2415 = vst [vmem:[%s3109_s20 + $0x118] sm:$0xff] %v2977_v21 }
 0x3e4   : > { %2416 = vst [vmem:[%s3109_s20 + $0x120] sm:$0xff] %v2977_v21 }
 0x3e5   : > { %2417 = vst [vmem:[%s3109_s20 + $0x128] sm:$0xff] %v2977_v21 }
 0x3e6   : > { %2418 = vst [vmem:[%s3109_s20 + $0x130] sm:$0xff] %v2977_v21 }
 0x3e7   : > { %2419 = vst [vmem:[%s3109_s20 + $0x138] sm:$0xff] %v2977_v21 }
 0x3e8   : > { %2420 = vst [vmem:[%s3109_s20 + $0x140] sm:$0xff] %v2977_v21 }
 0x3e9   : > { %2421 = vst [vmem:[%s3109_s20 + $0x148] sm:$0xff] %v2977_v21 }
 0x3ea   : > { %2422 = vst [vmem:[%s3109_s20 + $0x150] sm:$0xff] %v2977_v21 }
 0x3eb   : > { %2423 = vst [vmem:[%s3109_s20 + $0x158] sm:$0xff] %v2977_v21 }
 0x3ec   : > { %2424 = vst [vmem:[%s3109_s20 + $0x160] sm:$0xff] %v2977_v21 }
 0x3ed   : > { %2425 = vst [vmem:[%s3109_s20 + $0x168] sm:$0xff] %v2977_v21 }
 0x3ee   : > { %2426 = vst [vmem:[%s3109_s20 + $0x170] sm:$0xff] %v2977_v21 }
 0x3ef   : > { %2427 = vst [vmem:[%s3109_s20 + $0x178] sm:$0xff] %v2977_v21 }
 0x3f0   : > { %2428 = vst [vmem:[%s3109_s20 + $0x180] sm:$0xff] %v2977_v21 }
 0x3f1   : > { %2429 = vst [vmem:[%s3109_s20 + $0x188] sm:$0xff] %v2977_v21 }
 0x3f2   : > { %2430 = vst [vmem:[%s3109_s20 + $0x190] sm:$0xff] %v2977_v21 }
 0x3f3   : > { %2431 = vst [vmem:[%s3109_s20 + $0x198] sm:$0xff] %v2977_v21 }
 0x3f4   : > { %2432 = vst [vmem:[%s3109_s20 + $0x1a0] sm:$0xff] %v2977_v21 }
 0x3f5   : > { %2433 = vst [vmem:[%s3109_s20 + $0x1a8] sm:$0xff] %v2977_v21 }
 0x3f6   : > { %2434 = vst [vmem:[%s3109_s20 + $0x1b0] sm:$0xff] %v2977_v21 }
 0x3f7   : > { %2435 = vst [vmem:[%s3109_s20 + $0x1b8] sm:$0xff] %v2977_v21 }
 0x3f8   : > { %2436 = vst [vmem:[%s3109_s20 + $0x1c0] sm:$0xff] %v2977_v21 }
 0x3f9   : > { %2437 = vst [vmem:[%s3109_s20 + $0x1c8] sm:$0xff] %v2977_v21 }
 0x3fa   : > { %2438 = vst [vmem:[%s3109_s20 + $0x1d0] sm:$0xff] %v2977_v21 }
 0x3fb   : > { %2439 = vst [vmem:[%s3109_s20 + $0x1d8] sm:$0xff] %v2977_v21 }
 0x3fc   : > { %2440 = vst [vmem:[%s3109_s20 + $0x1e0] sm:$0xff] %v2977_v21 }
 0x3fd   : > { %2441 = vst [vmem:[%s3109_s20 + $0x1e8] sm:$0xff] %v2977_v21 }
 0x3fe   : > { %2442 = vst [vmem:[%s3109_s20 + $0x1f0] sm:$0xff] %v2977_v21 }
 0x3ff   : > { %2443 = vst [vmem:[%s3109_s20 + $0x1f8] sm:$0xff] %v2977_v21 }
 0x400   : > { %2444 = vst [vmem:[%s3109_s20 + $0x200] sm:$0xff] %v2977_v21 }
 0x401   : > { %2445 = vst [vmem:[%s3109_s20 + $0x208] sm:$0xff] %v2977_v21 }
 0x402   : > { %2446 = vst [vmem:[%s3109_s20 + $0x210] sm:$0xff] %v2977_v21 }
 0x403   : > { %2447 = vst [vmem:[%s3109_s20 + $0x218] sm:$0xff] %v2977_v21 }
 0x404   : > { %2448 = vst [vmem:[%s3109_s20 + $0x220] sm:$0xff] %v2977_v21 }
 0x405   : > { %2449 = vst [vmem:[%s3109_s20 + $0x228] sm:$0xff] %v2977_v21 }
 0x406   : > { %2450 = vst [vmem:[%s3109_s20 + $0x230] sm:$0xff] %v2977_v21 }
 0x407   : > { %2451 = vst [vmem:[%s3109_s20 + $0x238] sm:$0xff] %v2977_v21 }
 0x408   : > { %2452 = vst [vmem:[%s3109_s20 + $0x240] sm:$0xff] %v2977_v21 }
 0x409   : > { %2453 = vst [vmem:[%s3109_s20 + $0x248] sm:$0xff] %v2977_v21 }
 0x40a   : > { %2454 = vst [vmem:[%s3109_s20 + $0x250] sm:$0xff] %v2977_v21 }
 0x40b   : > { %2455 = vst [vmem:[%s3109_s20 + $0x258] sm:$0xff] %v2977_v21 }
 0x40c   : > { %2456 = vst [vmem:[%s3109_s20 + $0x260] sm:$0xff] %v2977_v21 }
 0x40d   : > { %2457 = vst [vmem:[%s3109_s20 + $0x268] sm:$0xff] %v2977_v21 }
 0x40e   : > { %2458 = vst [vmem:[%s3109_s20 + $0x270] sm:$0xff] %v2977_v21 }
 0x40f   : > { %2459 = vst [vmem:[%s3109_s20 + $0x278] sm:$0xff] %v2977_v21 }
 0x410   : > { %2460 = vst [vmem:[%s3109_s20 + $0x280] sm:$0xff] %v2977_v21 }
 0x411   : > { %2461 = vst [vmem:[%s3109_s20 + $0x288] sm:$0xff] %v2977_v21 }
 0x412   : > { %2462 = vst [vmem:[%s3109_s20 + $0x290] sm:$0xff] %v2977_v21 }
 0x413   : > { %2463 = vst [vmem:[%s3109_s20 + $0x298] sm:$0xff] %v2977_v21 }
 0x414   : > { %2464 = vst [vmem:[%s3109_s20 + $0x2a0] sm:$0xff] %v2977_v21 }
 0x415   : > { %2465 = vst [vmem:[%s3109_s20 + $0x2a8] sm:$0xff] %v2977_v21 }
 0x416   : > { %2466 = vst [vmem:[%s3109_s20 + $0x2b0] sm:$0xff] %v2977_v21 }
 0x417   : > { %2467 = vst [vmem:[%s3109_s20 + $0x2b8] sm:$0xff] %v2977_v21 }
 0x418   : > { %2468 = vst [vmem:[%s3109_s20 + $0x2c0] sm:$0xff] %v2977_v21 }
 0x419   : > { %2469 = vst [vmem:[%s3109_s20 + $0x2c8] sm:$0xff] %v2977_v21 }
 0x41a   : > { %2470 = vst [vmem:[%s3109_s20 + $0x2d0] sm:$0xff] %v2977_v21 }
 0x41b   : > { %2471 = vst [vmem:[%s3109_s20 + $0x2d8] sm:$0xff] %v2977_v21 }
 0x41c   : > { %2472 = vst [vmem:[%s3109_s20 + $0x2e0] sm:$0xff] %v2977_v21 }
 0x41d   : > { %2473 = vst [vmem:[%s3109_s20 + $0x2e8] sm:$0xff] %v2977_v21 }
 0x41e   : > { %2474 = vst [vmem:[%s3109_s20 + $0x2f0] sm:$0xff] %v2977_v21 }
 0x41f   : > { %2475 = vst [vmem:[%s3109_s20 + $0x2f8] sm:$0xff] %v2977_v21 }
 0x420   : > { %2476 = vst [vmem:[%s3109_s20 + $0x300] sm:$0xff] %v2977_v21 }
 0x421   : > { %2477 = vst [vmem:[%s3109_s20 + $0x308] sm:$0xff] %v2977_v21 }
 0x422   : > { %2478 = vst [vmem:[%s3109_s20 + $0x310] sm:$0xff] %v2977_v21 }
 0x423   : > { %2479 = vst [vmem:[%s3109_s20 + $0x318] sm:$0xff] %v2977_v21 }
 0x424   : > { %2480 = vst [vmem:[%s3109_s20 + $0x320] sm:$0xff] %v2977_v21 }
 0x425   : > { %2481 = vst [vmem:[%s3109_s20 + $0x328] sm:$0xff] %v2977_v21 }
 0x426   : > { %2482 = vst [vmem:[%s3109_s20 + $0x330] sm:$0xff] %v2977_v21 }
 0x427   : > { %2483 = vst [vmem:[%s3109_s20 + $0x338] sm:$0xff] %v2977_v21 }
 0x428   : > { %2484 = vst [vmem:[%s3109_s20 + $0x340] sm:$0xff] %v2977_v21 }
 0x429   : > { %2485 = vst [vmem:[%s3109_s20 + $0x348] sm:$0xff] %v2977_v21 }
 0x42a   : > { %2486 = vst [vmem:[%s3109_s20 + $0x350] sm:$0xff] %v2977_v21 }
 0x42b   : > { %2487 = vst [vmem:[%s3109_s20 + $0x358] sm:$0xff] %v2977_v21 }
 0x42c   : > { %2488 = vst [vmem:[%s3109_s20 + $0x360] sm:$0xff] %v2977_v21 }
 0x42d   : > { %2489 = vst [vmem:[%s3109_s20 + $0x368] sm:$0xff] %v2977_v21 }
 0x42e   : > { %2490 = vst [vmem:[%s3109_s20 + $0x370] sm:$0xff] %v2977_v21 }
 0x42f   : > { %2491 = vst [vmem:[%s3109_s20 + $0x378] sm:$0xff] %v2977_v21 }
 0x430   : > { %2492 = vst [vmem:[%s3109_s20 + $0x380] sm:$0xff] %v2977_v21 }
 0x431   : > { %2493 = vst [vmem:[%s3109_s20 + $0x388] sm:$0xff] %v2977_v21 }
 0x432   : > { %2494 = vst [vmem:[%s3109_s20 + $0x390] sm:$0xff] %v2977_v21 }
 0x433   : > { %2495 = vst [vmem:[%s3109_s20 + $0x398] sm:$0xff] %v2977_v21 }
 0x434   : > { %2496 = vst [vmem:[%s3109_s20 + $0x3a0] sm:$0xff] %v2977_v21 }
 0x435   : > { %2497 = vst [vmem:[%s3109_s20 + $0x3a8] sm:$0xff] %v2977_v21 }
 0x436   : > { %2498 = vst [vmem:[%s3109_s20 + $0x3b0] sm:$0xff] %v2977_v21 }
 0x437   : > { %2499 = vst [vmem:[%s3109_s20 + $0x3b8] sm:$0xff] %v2977_v21 }
 0x438   : > { %2500 = vst [vmem:[%s3109_s20 + $0x3c0] sm:$0xff] %v2977_v21 }
 0x439   : > { %2501 = vst [vmem:[%s3109_s20 + $0x3c8] sm:$0xff] %v2977_v21 }
 0x43a   : > { %2502 = vst [vmem:[%s3109_s20 + $0x3d0] sm:$0xff] %v2977_v21 }
 0x43b   : > { %2503 = vst [vmem:[%s3109_s20 + $0x3d8] sm:$0xff] %v2977_v21 }
 0x43c   : > { %2504 = vst [vmem:[%s3109_s20 + $0x3e0] sm:$0xff] %v2977_v21 }
 0x43d   : > { %2505 = vst [vmem:[%s3109_s20 + $0x3e8] sm:$0xff] %v2977_v21 }
 0x43e   : > { %2506 = vst [vmem:[%s3109_s20 + $0x3f0] sm:$0xff] %v2977_v21 }
 0x43f   : > { %2507 = vst [vmem:[%s3109_s20 + $0x3f8] sm:$0xff] %v2977_v21 }
 0x440 PF: > { %s2801_s27 = sshll.u32 %s2963_s7, 10  ;;  %s2524_s23 = sshll.u32 %s3109_s20, 4  ;;  %s2525_s23 = int_to_ptr.vmem [resolvable:$true] %s2524_s23 }
 0x441   : > { %s2523_s18 = scalar_lea.hbm %s4218_s6, %s2801_s27  ;;  %s4229_s26 = sand.u32 1, %s2955_s30  }
 0x442   : > { %s2526_s25 = sshll.u32 %s2523_s18, 4  ;;  %s2509_s28 = scalar_lea.sflag [#allocation7], %s4229_s26  ;;  %s2527_s25 = int_to_ptr.hbm [resolvable:$true] %s2526_s25 }
 0x443   : > { %s2905_s17 = sshra.s32 %s2527_s25, 4  ;;  %s2911_s7 = scalar_lea.hbm %s4218_s6, 2048  ;;  %s2906_s17 = int_to_ptr.hbm [resolvable:$true] %s2905_s17 }
 0x444   : > { %s2907_s9 = scalar_lea.hbm %s2906_s17, 1024  ;;  %p2912_p2 = scmp.lt.s32.totalorder %s2906_s17, %s4218_s6 }
 0x445   : > { %p2908_p13 = scmp.ne.s32.totalorder %s2906_s17, %s2907_s9  ;;  %p2913_p3 = scmp.lt.s32.totalorder %s2911_s7, %s2907_s9 }
 0x447   : > { %p2909_p0 = pnand %p2908_p13, %p3061_p4  ;;  %p2914_p5 = por %p2913_p3, %p2912_p2 }
 0x449   : > { %p2910_p1 = pneg %p2909_p0 }
 0x44b   : > { %p2915_p6 = pnand %p2914_p5, %p2910_p1 }
 0x44d   : > { %2918 = shalt.err (!%p2915_p6)
}
 0x44e   : > { %s2978_s20 = smov 512   ;;  %s2979_s10 = smov 32  }
 0x44f   : > { %2802 = dma.vmem_to_hbm [thread:$0]  (%p3061_p4), %s2525_s23, 16384, %s2527_s25, %s2509_s28, %s2978_s20, %s2978_s20, %s2979_s10  }
 0x450 PF: > { %p2808_p7 = scmp.ge.s32.totalorder %s2971_s8, 2  ;;  %s2541_s21 = sand.u32 1, %s2951_s29  }
 0x451   : > { %s2542_s24 = scalar_lea.sflag [#allocation7], %s2541_s21 }
 0x452   : > { %p2805_p9 = pnand %p2808_p7, %p3068_p8 }
 0x454   : > { %p2806_p10 = pneg %p2805_p9 }
 0x456   : > { %2946 = dma.done.wait (%p2806_p10), %s2542_s24, 16384  }
 0x457   : > { %2948 = vsyncadd (%p2806_p10), %s2542_s24, 4294950912  ;;  %s32_s8 = sadd.s32 1, %s2971_s8   ;;  %s4230_s29 = smov %s2955_s30 }
 0x458   : > { %p29_p11 = scmp.ge.s32.totalorder %s32_s8, 4   ;;  %s4231_s30 = smov %s2959_s0 }
 0x459   : > { %s4232_s0 = smov %s3074_s16  ;;  %s4233_s7 = smov %s2967_s1 }
 0x45a   : > { %s4234_s1 = smov %s4236_s11  ;;  %31 = sbr.rel (!%p29_p11) target bundleno = 12 (0xc), region = 104 }
 0x45f   :  { %2548 = vsyncpa [#allocation7], 1 }
 0x460   :  { %2550 = vsyncpa [#allocation7 + $0x1], 1 }

</bundles_post_ra>
